<compile_context>
chip_gen: v6e
topology: v6e:2x2x1
jax: 0.10.0
libtpu: 0.0.40
codegen_flags: <defaults>
</compile_context>

<pallas_src>
import functools

import jax
import jax.numpy as jnp
from jax.experimental import pallas as pl
from jax.experimental.pallas import tpu as pltpu

LANE = 128


def _round_up(x, m):
    return (x + m - 1) // m * m


def _zero_halo(pad_ref, N, Ho, Wo, C):
    """Zero only the 1-pixel border of the (N, Ho+2, Wo+2, C) pad buffer."""
    pad_ref[:, 0:1, :, :] = jnp.zeros((N, 1, Wo + 2, C), jnp.float32)
    pad_ref[:, Ho + 1:Ho + 2, :, :] = jnp.zeros((N, 1, Wo + 2, C), jnp.float32)
    pad_ref[:, :, 0:1, :] = jnp.zeros((N, Ho + 2, 1, C), jnp.float32)
    pad_ref[:, :, Wo + 1:Wo + 2, :] = jnp.zeros((N, Ho + 2, 1, C), jnp.float32)


def _conv3x3(pad_ref, w_ref, N, Ho, Wo, Cin, Cout):
    """3x3 conv (pad 1) as 9 tap-accumulated MXU matmuls, bf16 in / f32 acc.

    No materialized im2col: each tap is a shifted view of the padded buffer
    reshaped to (M, Cin) and multiplied by the (Cin, Cout) weight block.
    """
    M = N * Ho * Wo
    acc = jnp.zeros((M, Cout), jnp.float32)
    for dy in range(3):
        for dx in range(3):
            k = 3 * dy + dx
            xt = pad_ref[:, dy:dy + Ho, dx:dx + Wo, :].reshape(M, Cin)
            acc = acc + jnp.dot(xt.astype(jnp.bfloat16), w_ref[k],
                                preferred_element_type=jnp.float32)
    return acc


def _bn_relu(y, gamma, beta, inv_cnt, eps):
    """BatchNorm2d (batch mean, biased var) + ReLU on the (M, Cout) slab."""
    mean = jnp.sum(y, axis=0, keepdims=True) * inv_cnt
    d = y - mean
    var = jnp.sum(d * d, axis=0, keepdims=True) * inv_cnt
    scale = gamma * jax.lax.rsqrt(var + eps)        # EUP rsqrt, hoisted
    shift = beta - mean * scale                     # hoisted (1, Cout)
    return jnp.maximum(y * scale + shift, 0.0)      # fused FMA + max on VPU


def down_kernel(x_ref, w1_ref, w2_ref, g_ref, bt_ref, o_ref,
                pad1_ref, pad2_ref, *, N, Ho, Wo, Cin, Cout, eps):
    # Cin / Cout here are the lane-padded (multiple-of-128) channel counts.
    inv_cnt = jnp.float32(1.0 / (N * Ho * Wo))

    # --- MaxPool2d(2, 2): tap-major input -> 3 elementwise VPU maxes -------
    pooled = jnp.maximum(
        jnp.maximum(x_ref[0, 0, :, :, :, :], x_ref[0, 1, :, :, :, :]),
        jnp.maximum(x_ref[1, 0, :, :, :, :], x_ref[1, 1, :, :, :, :]))

    # --- conv1 (3x3, stride 1, pad 1) + BN + ReLU ---------------------------
    _zero_halo(pad1_ref, N, Ho, Wo, Cin)
    pad1_ref[:, 1:Ho + 1, 1:Wo + 1, :] = pooled
    y1 = _conv3x3(pad1_ref, w1_ref, N, Ho, Wo, Cin, Cout)
    h1 = _bn_relu(y1, g_ref[...], bt_ref[...], inv_cnt, eps)

    # --- conv2 (3x3, pad 1) + BN (same shared gamma/beta) + ReLU ------------
    _zero_halo(pad2_ref, N, Ho, Wo, Cout)
    pad2_ref[:, 1:Ho + 1, 1:Wo + 1, :] = h1.reshape(N, Ho, Wo, Cout)
    y2 = _conv3x3(pad2_ref, w2_ref, N, Ho, Wo, Cout, Cout)
    h2 = _bn_relu(y2, g_ref[...], bt_ref[...], inv_cnt, eps)

    # --- single contiguous, lane-dense (M, Cout_padded) output store --------
    o_ref[...] = h2.astype(o_ref.dtype)


def _vmem_limit_bytes(N, Ho, Wo, Cin, Cout):
    """Tight working-set budget (no grid => no double buffering), clamped to
    the physical VMEM capacity of the current device."""
    M = N * Ho * Wo
    f32, bf16 = 4, 2
    inputs = (4 * M * Cin * f32                       # tap-major x
              + 9 * Cin * Cout * bf16                 # w1 taps
              + 9 * Cout * Cout * bf16                # w2 taps
              + 2 * Cout * f32)                       # gamma, beta
    out = M * Cout * f32
    scratch = N * (Ho + 2) * (Wo + 2) * (Cin + Cout) * f32
    temps = (M * Cin + 3 * M * Cout) * f32            # pooled + acc + BN temps
    need = inputs + out + scratch + temps + (8 << 20)  # headroom
    try:
        cap = pltpu.get_tpu_info().vmem_capacity_bytes
    except Exception:
        cap = 64 << 20                                # v7x per-TC capacity
    return int(min(need, cap))


def down_forward(x_nchw, params, *, eps=1e-5):
    """Pallas implementation of Down.forward.  Input/output in NCHW."""
    w1, b1, w2, b2, gamma, beta = params              # conv weights in HWIO
    del b1, b2  # per-channel conv bias cancels exactly under batch-stat BN
    N, Cin, H, W = x_nchw.shape
    if H % 2 or W % 2:
        raise ValueError("Down expects even spatial dims (MaxPool2d(2,2)).")
    Ho, Wo = H // 2, W // 2
    Cout = w1.shape[-1]
    M = N * Ho * Wo

    # Lane-pad channel counts to multiples of 128 (gated: no-op when already
    # aligned, e.g. real U-Net layers with C in {128, 256, 512}).
    Cpi = _round_up(Cin, LANE)
    Cpo = _round_up(Cout, LANE)

    # Tap-major glue layout: x_taps[i, j, n, h, w, c] = x[n, c, 2h+i, 2w+j]
    x = x_nchw.astype(jnp.float32)
    if Cpi != Cin:
        x = jnp.pad(x, ((0, 0), (0, Cpi - Cin), (0, 0), (0, 0)))
    x_taps = x.reshape(N, Cpi, Ho, 2, Wo, 2).transpose(3, 5, 0, 2, 4, 1)

    def prep_w(w, cpi):
        w = w.astype(jnp.float32)
        w = jnp.pad(w, ((0, 0), (0, 0),
                        (0, cpi - w.shape[2]), (0, Cpo - w.shape[3])))
        return w.reshape(9, cpi, Cpo).astype(jnp.bfloat16)

    w1f = prep_w(w1, Cpi)                             # (9, Cpi, Cpo) bf16
    w2f = prep_w(w2, Cpo)                             # (9, Cpo, Cpo) bf16
    g = jnp.pad(gamma.astype(jnp.float32), (0, Cpo - Cout)).reshape(1, Cpo)
    bt = jnp.pad(beta.astype(jnp.float32), (0, Cpo - Cout)).reshape(1, Cpo)

    kernel = functools.partial(down_kernel, N=N, Ho=Ho, Wo=Wo,
                               Cin=Cpi, Cout=Cpo, eps=eps)
    vmem = pl.BlockSpec(memory_space=pltpu.MemorySpace.VMEM)

    out2d = pl.pallas_call(
        kernel,
        out_shape=jax.ShapeDtypeStruct((M, Cpo), jnp.float32),
        in_specs=[vmem] * 5,
        out_specs=vmem,
        scratch_shapes=[
            pltpu.VMEM((N, Ho + 2, Wo + 2, Cpi), jnp.float32),  # padded conv1 in
            pltpu.VMEM((N, Ho + 2, Wo + 2, Cpo), jnp.float32),  # padded conv2 in
        ],
        compiler_params=pltpu.CompilerParams(
            vmem_limit_bytes=_vmem_limit_bytes(N, Ho, Wo, Cpi, Cpo)),
    )(x_taps, w1f, w2f, g, bt)

    out = out2d[:, :Cout].reshape(N, Ho, Wo, Cout)
    return jnp.transpose(out, (0, 3, 1, 2))


def down_ref(x, w1, b1, w2, b2, gamma, beta, eps=1e-5):
    """Pure-JAX f32 reference (NCHW, Precision.HIGHEST, with conv biases)."""
    N, C, H, W = x.shape
    xp = x.reshape(N, C, H // 2, 2, W // 2, 2).max(axis=(3, 5))

    def conv(z, w, b):
        y = jax.lax.conv_general_dilated(
            z, w, window_strides=(1, 1), padding=((1, 1), (1, 1)),
            dimension_numbers=("NCHW", "HWIO", "NCHW"),
            precision=jax.lax.Precision.HIGHEST)
        return y + b.reshape(1, -1, 1, 1)

    def bn_relu(z):
        mean = jnp.mean(z, axis=(0, 2, 3), keepdims=True)
        var = jnp.mean((z - mean) ** 2, axis=(0, 2, 3), keepdims=True)
        zh = (z - mean) * jax.lax.rsqrt(var + eps)
        return jnp.maximum(zh * gamma.reshape(1, -1, 1, 1)
                           + beta.reshape(1, -1, 1, 1), 0.0)

    z = bn_relu(conv(xp, w1, b1))
    z = bn_relu(conv(z, w2, b2))
    return z


if __name__ == "__main__":
    N, Cin, H, W, Cout = 2, 4, 16, 16, 8

    key = jax.random.PRNGKey(0)
    ks = jax.random.split(key, 7)
    x = jax.random.normal(ks[0], (N, Cin, H, W), jnp.float32)
    # deterministic synthetic parameters (HWIO conv weights)
    w1 = 0.2 * jax.random.normal(ks[1], (3, 3, Cin, Cout), jnp.float32)
    b1 = 0.1 * jax.random.normal(ks[2], (Cout,), jnp.float32)
    w2 = 0.2 * jax.random.normal(ks[3], (3, 3, Cout, Cout), jnp.float32)
    b2 = 0.1 * jax.random.normal(ks[4], (Cout,), jnp.float32)
    gamma = 1.0 + 0.1 * jax.random.normal(ks[5], (Cout,), jnp.float32)
    beta = 0.1 * jax.random.normal(ks[6], (Cout,), jnp.float32)

    out = down_forward(x, (w1, b1, w2, b2, gamma, beta))
    out = jax.block_until_ready(out)

    ref = down_ref(x, w1, b1, w2, b2, gamma, beta)
    assert out.shape == (N, Cout, H // 2, W // 2), out.shape
    assert out.dtype == jnp.float32
    # bf16 MXU operands vs. f32 HIGHEST reference through two conv+BN stages;
    # also proves the conv-bias cancellation (ref applies biases, kernel doesn't).
    err = float(jnp.max(jnp.abs(out - ref)))
    assert jnp.allclose(out, ref, atol=5e-2, rtol=5e-2), err

    print("KERNEL_OK")
</pallas_src>

<mosaic_0001>
module attributes {stable_mosaic.version = 11 : i64} {
  func.func @down_kernel(%arg0: memref<2x2x2x8x8x128xf32, #tpu.memory_space<vmem>>, %arg1: memref<9x128x128xbf16, #tpu.memory_space<vmem>>, %arg2: memref<9x128x128xbf16, #tpu.memory_space<vmem>>, %arg3: memref<1x128xf32, #tpu.memory_space<vmem>>, %arg4: memref<1x128xf32, #tpu.memory_space<vmem>>, %arg5: memref<128x128xf32, #tpu.memory_space<vmem>>, %arg6: memref<2x10x10x128xf32, #tpu.memory_space<vmem>>, %arg7: memref<2x10x10x128xf32, #tpu.memory_space<vmem>>) attributes {dimension_semantics = [], scalar_prefetch = 0 : i64, scratch_operands = 2 : i64, tpu.core_type = #tpu.core_type<tc>} {
    %c0 = arith.constant 0 : index
    %c0_0 = arith.constant 0 : index
    %c0_1 = arith.constant 0 : index
    %c0_2 = arith.constant 0 : index
    %c0_3 = arith.constant 0 : index
    %c0_4 = arith.constant 0 : index
    %0 = vector.load %arg0[%c0, %c0_0, %c0_1, %c0_2, %c0_3, %c0_4] : memref<2x2x2x8x8x128xf32, #tpu.memory_space<vmem>>, vector<1x1x2x8x8x128xf32>
    %1 = vector.shape_cast %0 : vector<1x1x2x8x8x128xf32> to vector<2x8x8x128xf32>
    %c0_5 = arith.constant 0 : index
    %c1 = arith.constant 1 : index
    %c0_6 = arith.constant 0 : index
    %c0_7 = arith.constant 0 : index
    %c0_8 = arith.constant 0 : index
    %c0_9 = arith.constant 0 : index
    %2 = vector.load %arg0[%c0_5, %c1, %c0_6, %c0_7, %c0_8, %c0_9] : memref<2x2x2x8x8x128xf32, #tpu.memory_space<vmem>>, vector<1x1x2x8x8x128xf32>
    %3 = vector.shape_cast %2 : vector<1x1x2x8x8x128xf32> to vector<2x8x8x128xf32>
    %4 = arith.maximumf %1, %3 : vector<2x8x8x128xf32>
    %c1_10 = arith.constant 1 : index
    %c0_11 = arith.constant 0 : index
    %c0_12 = arith.constant 0 : index
    %c0_13 = arith.constant 0 : index
    %c0_14 = arith.constant 0 : index
    %c0_15 = arith.constant 0 : index
    %5 = vector.load %arg0[%c1_10, %c0_11, %c0_12, %c0_13, %c0_14, %c0_15] : memref<2x2x2x8x8x128xf32, #tpu.memory_space<vmem>>, vector<1x1x2x8x8x128xf32>
    %6 = vector.shape_cast %5 : vector<1x1x2x8x8x128xf32> to vector<2x8x8x128xf32>
    %c1_16 = arith.constant 1 : index
    %c1_17 = arith.constant 1 : index
    %c0_18 = arith.constant 0 : index
    %c0_19 = arith.constant 0 : index
    %c0_20 = arith.constant 0 : index
    %c0_21 = arith.constant 0 : index
    %7 = vector.load %arg0[%c1_16, %c1_17, %c0_18, %c0_19, %c0_20, %c0_21] : memref<2x2x2x8x8x128xf32, #tpu.memory_space<vmem>>, vector<1x1x2x8x8x128xf32>
    %8 = vector.shape_cast %7 : vector<1x1x2x8x8x128xf32> to vector<2x8x8x128xf32>
    %9 = arith.maximumf %6, %8 : vector<2x8x8x128xf32>
    %10 = arith.maximumf %4, %9 : vector<2x8x8x128xf32>
    %cst = arith.constant 0.000000e+00 : f32
    %11 = vector.broadcast %cst : f32 to vector<2x1x10x128xf32>
    %c0_22 = arith.constant 0 : index
    %c0_23 = arith.constant 0 : index
    %c0_24 = arith.constant 0 : index
    %c0_25 = arith.constant 0 : index
    %12 = vector.load %arg6[%c0_22, %c0_23, %c0_24, %c0_25] : memref<2x10x10x128xf32, #tpu.memory_space<vmem>>, vector<2x1x10x128xf32>
    tpu.vector_store %arg6[%c0_22, %c0_23, %c0_24, %c0_25], %11 {strides = array<i32>} : memref<2x10x10x128xf32, #tpu.memory_space<vmem>>, vector<2x1x10x128xf32>,
    %cst_26 = arith.constant 0.000000e+00 : f32
    %13 = vector.broadcast %cst_26 : f32 to vector<2x1x10x128xf32>
    %c0_27 = arith.constant 0 : index
    %c9 = arith.constant 9 : index
    %c0_28 = arith.constant 0 : index
    %c0_29 = arith.constant 0 : index
    %14 = vector.load %arg6[%c0_27, %c9, %c0_28, %c0_29] : memref<2x10x10x128xf32, #tpu.memory_space<vmem>>, vector<2x1x10x128xf32>
    tpu.vector_store %arg6[%c0_27, %c9, %c0_28, %c0_29], %13 {strides = array<i32>} : memref<2x10x10x128xf32, #tpu.memory_space<vmem>>, vector<2x1x10x128xf32>,
    %cst_30 = arith.constant 0.000000e+00 : f32
    %15 = vector.broadcast %cst_30 : f32 to vector<2x10x1x128xf32>
    %c0_31 = arith.constant 0 : index
    %c0_32 = arith.constant 0 : index
    %c0_33 = arith.constant 0 : index
    %c0_34 = arith.constant 0 : index
    %16 = vector.load %arg6[%c0_31, %c0_32, %c0_33, %c0_34] : memref<2x10x10x128xf32, #tpu.memory_space<vmem>>, vector<2x10x1x128xf32>
    tpu.vector_store %arg6[%c0_31, %c0_32, %c0_33, %c0_34], %15 {strides = array<i32>} : memref<2x10x10x128xf32, #tpu.memory_space<vmem>>, vector<2x10x1x128xf32>,
    %cst_35 = arith.constant 0.000000e+00 : f32
    %17 = vector.broadcast %cst_35 : f32 to vector<2x10x1x128xf32>
    %c0_36 = arith.constant 0 : index
    %c0_37 = arith.constant 0 : index
    %c9_38 = arith.constant 9 : index
    %c0_39 = arith.constant 0 : index
    %18 = vector.load %arg6[%c0_36, %c0_37, %c9_38, %c0_39] : memref<2x10x10x128xf32, #tpu.memory_space<vmem>>, vector<2x10x1x128xf32>
    tpu.vector_store %arg6[%c0_36, %c0_37, %c9_38, %c0_39], %17 {strides = array<i32>} : memref<2x10x10x128xf32, #tpu.memory_space<vmem>>, vector<2x10x1x128xf32>,
    %c0_40 = arith.constant 0 : index
    %c1_41 = arith.constant 1 : index
    %c1_42 = arith.constant 1 : index
    %c0_43 = arith.constant 0 : index
    %19 = vector.load %arg6[%c0_40, %c1_41, %c1_42, %c0_43] : memref<2x10x10x128xf32, #tpu.memory_space<vmem>>, vector<2x8x8x128xf32>
    tpu.vector_store %arg6[%c0_40, %c1_41, %c1_42, %c0_43], %10 {strides = array<i32>} : memref<2x10x10x128xf32, #tpu.memory_space<vmem>>, vector<2x8x8x128xf32>,
    %cst_44 = arith.constant 0.000000e+00 : f32
    %20 = vector.broadcast %cst_44 : f32 to vector<128x128xf32>
    %c0_45 = arith.constant 0 : index
    %c0_46 = arith.constant 0 : index
    %c0_47 = arith.constant 0 : index
    %c0_48 = arith.constant 0 : index
    %21 = vector.load %arg6[%c0_45, %c0_46, %c0_47, %c0_48] : memref<2x10x10x128xf32, #tpu.memory_space<vmem>>, vector<2x8x8x128xf32>
    %22 = vector.shape_cast %21 : vector<2x8x8x128xf32> to vector<128x128xf32>
    %23 = arith.truncf %22 : vector<128x128xf32> to vector<128x128xbf16>
    %c0_49 = arith.constant 0 : index
    %c0_50 = arith.constant 0 : index
    %c0_51 = arith.constant 0 : index
    %24 = vector.load %arg1[%c0_49, %c0_50, %c0_51] : memref<9x128x128xbf16, #tpu.memory_space<vmem>>, vector<1x128x128xbf16>
    %25 = vector.shape_cast %24 : vector<1x128x128xbf16> to vector<128x128xbf16>
    %cst_52 = arith.constant dense<0.000000e+00> : vector<128x128xf32>
    %26 = tpu.matmul %23, %25, %cst_52 {dimension_numbers = #tpu.dot_dimension_numbers<[1], [0], [0], [1], [0, 0, 1, 1], [], []>} : vector<128x128xbf16>, vector<128x128xbf16>, vector<128x128xf32> -> vector<128x128xf32>
    %27 = arith.addf %20, %26 : vector<128x128xf32>
    %c0_53 = arith.constant 0 : index
    %c0_54 = arith.constant 0 : index
    %c1_55 = arith.constant 1 : index
    %c0_56 = arith.constant 0 : index
    %28 = vector.load %arg6[%c0_53, %c0_54, %c1_55, %c0_56] : memref<2x10x10x128xf32, #tpu.memory_space<vmem>>, vector<2x8x8x128xf32>
    %29 = vector.shape_cast %28 : vector<2x8x8x128xf32> to vector<128x128xf32>
    %30 = arith.truncf %29 : vector<128x128xf32> to vector<128x128xbf16>
    %c1_57 = arith.constant 1 : index
    %c0_58 = arith.constant 0 : index
    %c0_59 = arith.constant 0 : index
    %31 = vector.load %arg1[%c1_57, %c0_58, %c0_59] : memref<9x128x128xbf16, #tpu.memory_space<vmem>>, vector<1x128x128xbf16>
    %32 = vector.shape_cast %31 : vector<1x128x128xbf16> to vector<128x128xbf16>
    %cst_60 = arith.constant dense<0.000000e+00> : vector<128x128xf32>
    %33 = tpu.matmul %30, %32, %cst_60 {dimension_numbers = #tpu.dot_dimension_numbers<[1], [0], [0], [1], [0, 0, 1, 1], [], []>} : vector<128x128xbf16>, vector<128x128xbf16>, vector<128x128xf32> -> vector<128x128xf32>
    %34 = arith.addf %27, %33 : vector<128x128xf32>
    %c0_61 = arith.constant 0 : index
    %c0_62 = arith.constant 0 : index
    %c2 = arith.constant 2 : index
    %c0_63 = arith.constant 0 : index
    %35 = vector.load %arg6[%c0_61, %c0_62, %c2, %c0_63] : memref<2x10x10x128xf32, #tpu.memory_space<vmem>>, vector<2x8x8x128xf32>
    %36 = vector.shape_cast %35 : vector<2x8x8x128xf32> to vector<128x128xf32>
    %37 = arith.truncf %36 : vector<128x128xf32> to vector<128x128xbf16>
    %c2_64 = arith.constant 2 : index
    %c0_65 = arith.constant 0 : index
    %c0_66 = arith.constant 0 : index
    %38 = vector.load %arg1[%c2_64, %c0_65, %c0_66] : memref<9x128x128xbf16, #tpu.memory_space<vmem>>, vector<1x128x128xbf16>
    %39 = vector.shape_cast %38 : vector<1x128x128xbf16> to vector<128x128xbf16>
    %cst_67 = arith.constant dense<0.000000e+00> : vector<128x128xf32>
    %40 = tpu.matmul %37, %39, %cst_67 {dimension_numbers = #tpu.dot_dimension_numbers<[1], [0], [0], [1], [0, 0, 1, 1], [], []>} : vector<128x128xbf16>, vector<128x128xbf16>, vector<128x128xf32> -> vector<128x128xf32>
    %41 = arith.addf %34, %40 : vector<128x128xf32>
    %c0_68 = arith.constant 0 : index
    %c1_69 = arith.constant 1 : index
    %c0_70 = arith.constant 0 : index
    %c0_71 = arith.constant 0 : index
    %42 = vector.load %arg6[%c0_68, %c1_69, %c0_70, %c0_71] : memref<2x10x10x128xf32, #tpu.memory_space<vmem>>, vector<2x8x8x128xf32>
    %43 = vector.shape_cast %42 : vector<2x8x8x128xf32> to vector<128x128xf32>
    %44 = arith.truncf %43 : vector<128x128xf32> to vector<128x128xbf16>
    %c3 = arith.constant 3 : index
    %c0_72 = arith.constant 0 : index
    %c0_73 = arith.constant 0 : index
    %45 = vector.load %arg1[%c3, %c0_72, %c0_73] : memref<9x128x128xbf16, #tpu.memory_space<vmem>>, vector<1x128x128xbf16>
    %46 = vector.shape_cast %45 : vector<1x128x128xbf16> to vector<128x128xbf16>
    %cst_74 = arith.constant dense<0.000000e+00> : vector<128x128xf32>
    %47 = tpu.matmul %44, %46, %cst_74 {dimension_numbers = #tpu.dot_dimension_numbers<[1], [0], [0], [1], [0, 0, 1, 1], [], []>} : vector<128x128xbf16>, vector<128x128xbf16>, vector<128x128xf32> -> vector<128x128xf32>
    %48 = arith.addf %41, %47 : vector<128x128xf32>
    %c0_75 = arith.constant 0 : index
    %c1_76 = arith.constant 1 : index
    %c1_77 = arith.constant 1 : index
    %c0_78 = arith.constant 0 : index
    %49 = vector.load %arg6[%c0_75, %c1_76, %c1_77, %c0_78] : memref<2x10x10x128xf32, #tpu.memory_space<vmem>>, vector<2x8x8x128xf32>
    %50 = vector.shape_cast %49 : vector<2x8x8x128xf32> to vector<128x128xf32>
    %51 = arith.truncf %50 : vector<128x128xf32> to vector<128x128xbf16>
    %c4 = arith.constant 4 : index
    %c0_79 = arith.constant 0 : index
    %c0_80 = arith.constant 0 : index
    %52 = vector.load %arg1[%c4, %c0_79, %c0_80] : memref<9x128x128xbf16, #tpu.memory_space<vmem>>, vector<1x128x128xbf16>
    %53 = vector.shape_cast %52 : vector<1x128x128xbf16> to vector<128x128xbf16>
    %cst_81 = arith.constant dense<0.000000e+00> : vector<128x128xf32>
    %54 = tpu.matmul %51, %53, %cst_81 {dimension_numbers = #tpu.dot_dimension_numbers<[1], [0], [0], [1], [0, 0, 1, 1], [], []>} : vector<128x128xbf16>, vector<128x128xbf16>, vector<128x128xf32> -> vector<128x128xf32>
    %55 = arith.addf %48, %54 : vector<128x128xf32>
    %c0_82 = arith.constant 0 : index
    %c1_83 = arith.constant 1 : index
    %c2_84 = arith.constant 2 : index
    %c0_85 = arith.constant 0 : index
    %56 = vector.load %arg6[%c0_82, %c1_83, %c2_84, %c0_85] : memref<2x10x10x128xf32, #tpu.memory_space<vmem>>, vector<2x8x8x128xf32>
    %57 = vector.shape_cast %56 : vector<2x8x8x128xf32> to vector<128x128xf32>
    %58 = arith.truncf %57 : vector<128x128xf32> to vector<128x128xbf16>
    %c5 = arith.constant 5 : index
    %c0_86 = arith.constant 0 : index
    %c0_87 = arith.constant 0 : index
    %59 = vector.load %arg1[%c5, %c0_86, %c0_87] : memref<9x128x128xbf16, #tpu.memory_space<vmem>>, vector<1x128x128xbf16>
    %60 = vector.shape_cast %59 : vector<1x128x128xbf16> to vector<128x128xbf16>
    %cst_88 = arith.constant dense<0.000000e+00> : vector<128x128xf32>
    %61 = tpu.matmul %58, %60, %cst_88 {dimension_numbers = #tpu.dot_dimension_numbers<[1], [0], [0], [1], [0, 0, 1, 1], [], []>} : vector<128x128xbf16>, vector<128x128xbf16>, vector<128x128xf32> -> vector<128x128xf32>
    %62 = arith.addf %55, %61 : vector<128x128xf32>
    %c0_89 = arith.constant 0 : index
    %c2_90 = arith.constant 2 : index
    %c0_91 = arith.constant 0 : index
    %c0_92 = arith.constant 0 : index
    %63 = vector.load %arg6[%c0_89, %c2_90, %c0_91, %c0_92] : memref<2x10x10x128xf32, #tpu.memory_space<vmem>>, vector<2x8x8x128xf32>
    %64 = vector.shape_cast %63 : vector<2x8x8x128xf32> to vector<128x128xf32>
    %65 = arith.truncf %64 : vector<128x128xf32> to vector<128x128xbf16>
    %c6 = arith.constant 6 : index
    %c0_93 = arith.constant 0 : index
    %c0_94 = arith.constant 0 : index
    %66 = vector.load %arg1[%c6, %c0_93, %c0_94] : memref<9x128x128xbf16, #tpu.memory_space<vmem>>, vector<1x128x128xbf16>
    %67 = vector.shape_cast %66 : vector<1x128x128xbf16> to vector<128x128xbf16>
    %cst_95 = arith.constant dense<0.000000e+00> : vector<128x128xf32>
    %68 = tpu.matmul %65, %67, %cst_95 {dimension_numbers = #tpu.dot_dimension_numbers<[1], [0], [0], [1], [0, 0, 1, 1], [], []>} : vector<128x128xbf16>, vector<128x128xbf16>, vector<128x128xf32> -> vector<128x128xf32>
    %69 = arith.addf %62, %68 : vector<128x128xf32>
    %c0_96 = arith.constant 0 : index
    %c2_97 = arith.constant 2 : index
    %c1_98 = arith.constant 1 : index
    %c0_99 = arith.constant 0 : index
    %70 = vector.load %arg6[%c0_96, %c2_97, %c1_98, %c0_99] : memref<2x10x10x128xf32, #tpu.memory_space<vmem>>, vector<2x8x8x128xf32>
    %71 = vector.shape_cast %70 : vector<2x8x8x128xf32> to vector<128x128xf32>
    %72 = arith.truncf %71 : vector<128x128xf32> to vector<128x128xbf16>
    %c7 = arith.constant 7 : index
    %c0_100 = arith.constant 0 : index
    %c0_101 = arith.constant 0 : index
    %73 = vector.load %arg1[%c7, %c0_100, %c0_101] : memref<9x128x128xbf16, #tpu.memory_space<vmem>>, vector<1x128x128xbf16>
    %74 = vector.shape_cast %73 : vector<1x128x128xbf16> to vector<128x128xbf16>
    %cst_102 = arith.constant dense<0.000000e+00> : vector<128x128xf32>
    %75 = tpu.matmul %72, %74, %cst_102 {dimension_numbers = #tpu.dot_dimension_numbers<[1], [0], [0], [1], [0, 0, 1, 1], [], []>} : vector<128x128xbf16>, vector<128x128xbf16>, vector<128x128xf32> -> vector<128x128xf32>
    %76 = arith.addf %69, %75 : vector<128x128xf32>
    %c0_103 = arith.constant 0 : index
    %c2_104 = arith.constant 2 : index
    %c2_105 = arith.constant 2 : index
    %c0_106 = arith.constant 0 : index
    %77 = vector.load %arg6[%c0_103, %c2_104, %c2_105, %c0_106] : memref<2x10x10x128xf32, #tpu.memory_space<vmem>>, vector<2x8x8x128xf32>
    %78 = vector.shape_cast %77 : vector<2x8x8x128xf32> to vector<128x128xf32>
    %79 = arith.truncf %78 : vector<128x128xf32> to vector<128x128xbf16>
    %c8 = arith.constant 8 : index
    %c0_107 = arith.constant 0 : index
    %c0_108 = arith.constant 0 : index
    %80 = vector.load %arg1[%c8, %c0_107, %c0_108] : memref<9x128x128xbf16, #tpu.memory_space<vmem>>, vector<1x128x128xbf16>
    %81 = vector.shape_cast %80 : vector<1x128x128xbf16> to vector<128x128xbf16>
    %cst_109 = arith.constant dense<0.000000e+00> : vector<128x128xf32>
    %82 = tpu.matmul %79, %81, %cst_109 {dimension_numbers = #tpu.dot_dimension_numbers<[1], [0], [0], [1], [0, 0, 1, 1], [], []>} : vector<128x128xbf16>, vector<128x128xbf16>, vector<128x128xf32> -> vector<128x128xf32>
    %83 = arith.addf %76, %82 : vector<128x128xf32>
    %c0_110 = arith.constant 0 : index
    %c0_111 = arith.constant 0 : index
    %84 = vector.load %arg3[%c0_110, %c0_111] : memref<1x128xf32, #tpu.memory_space<vmem>>, vector<1x128xf32>
    %c0_112 = arith.constant 0 : index
    %c0_113 = arith.constant 0 : index
    %85 = vector.load %arg4[%c0_112, %c0_113] : memref<1x128xf32, #tpu.memory_space<vmem>>, vector<1x128xf32>
    %cst_114 = arith.constant dense<0.000000e+00> : vector<128xf32>
    %86 = vector.multi_reduction <add>, %83, %cst_114 [0] : vector<128x128xf32> to vector<128xf32>
    %87 = vector.shape_cast %86 : vector<128xf32> to vector<1x128xf32>
    %cst_115 = arith.constant 7.812500e-03 : f32
    %88 = vector.broadcast %cst_115 : f32 to vector<1x128xf32>
    %89 = arith.mulf %87, %88 : vector<1x128xf32>
    %90 = vector.broadcast %89 : vector<1x128xf32> to vector<128x128xf32>
    %91 = arith.subf %83, %90 : vector<128x128xf32>
    %92 = arith.mulf %91, %91 : vector<128x128xf32>
    %cst_116 = arith.constant dense<0.000000e+00> : vector<128xf32>
    %93 = vector.multi_reduction <add>, %92, %cst_116 [0] : vector<128x128xf32> to vector<128xf32>
    %94 = vector.shape_cast %93 : vector<128xf32> to vector<1x128xf32>
    %cst_117 = arith.constant 7.812500e-03 : f32
    %95 = vector.broadcast %cst_117 : f32 to vector<1x128xf32>
    %96 = arith.mulf %94, %95 : vector<1x128xf32>
    %cst_118 = arith.constant 9.99999974E-6 : f32
    %97 = vector.broadcast %cst_118 : f32 to vector<1x128xf32>
    %98 = arith.addf %96, %97 : vector<1x128xf32>
    %99 = math.rsqrt %98 : vector<1x128xf32>
    %100 = arith.mulf %84, %99 : vector<1x128xf32>
    %101 = arith.mulf %89, %100 : vector<1x128xf32>
    %102 = arith.subf %85, %101 : vector<1x128xf32>
    %103 = vector.broadcast %100 : vector<1x128xf32> to vector<128x128xf32>
    %104 = arith.mulf %83, %103 : vector<128x128xf32>
    %105 = vector.broadcast %102 : vector<1x128xf32> to vector<128x128xf32>
    %106 = arith.addf %104, %105 : vector<128x128xf32>
    %cst_119 = arith.constant 0.000000e+00 : f32
    %107 = vector.broadcast %cst_119 : f32 to vector<128x128xf32>
    %108 = arith.maximumf %106, %107 : vector<128x128xf32>
    %cst_120 = arith.constant 0.000000e+00 : f32
    %109 = vector.broadcast %cst_120 : f32 to vector<2x1x10x128xf32>
    %c0_121 = arith.constant 0 : index
    %c0_122 = arith.constant 0 : index
    %c0_123 = arith.constant 0 : index
    %c0_124 = arith.constant 0 : index
    %110 = vector.load %arg7[%c0_121, %c0_122, %c0_123, %c0_124] : memref<2x10x10x128xf32, #tpu.memory_space<vmem>>, vector<2x1x10x128xf32>
    tpu.vector_store %arg7[%c0_121, %c0_122, %c0_123, %c0_124], %109 {strides = array<i32>} : memref<2x10x10x128xf32, #tpu.memory_space<vmem>>, vector<2x1x10x128xf32>,
    %cst_125 = arith.constant 0.000000e+00 : f32
    %111 = vector.broadcast %cst_125 : f32 to vector<2x1x10x128xf32>
    %c0_126 = arith.constant 0 : index
    %c9_127 = arith.constant 9 : index
    %c0_128 = arith.constant 0 : index
    %c0_129 = arith.constant 0 : index
    %112 = vector.load %arg7[%c0_126, %c9_127, %c0_128, %c0_129] : memref<2x10x10x128xf32, #tpu.memory_space<vmem>>, vector<2x1x10x128xf32>
    tpu.vector_store %arg7[%c0_126, %c9_127, %c0_128, %c0_129], %111 {strides = array<i32>} : memref<2x10x10x128xf32, #tpu.memory_space<vmem>>, vector<2x1x10x128xf32>,
    %cst_130 = arith.constant 0.000000e+00 : f32
    %113 = vector.broadcast %cst_130 : f32 to vector<2x10x1x128xf32>
    %c0_131 = arith.constant 0 : index
    %c0_132 = arith.constant 0 : index
    %c0_133 = arith.constant 0 : index
    %c0_134 = arith.constant 0 : index
    %114 = vector.load %arg7[%c0_131, %c0_132, %c0_133, %c0_134] : memref<2x10x10x128xf32, #tpu.memory_space<vmem>>, vector<2x10x1x128xf32>
    tpu.vector_store %arg7[%c0_131, %c0_132, %c0_133, %c0_134], %113 {strides = array<i32>} : memref<2x10x10x128xf32, #tpu.memory_space<vmem>>, vector<2x10x1x128xf32>,
    %cst_135 = arith.constant 0.000000e+00 : f32
    %115 = vector.broadcast %cst_135 : f32 to vector<2x10x1x128xf32>
    %c0_136 = arith.constant 0 : index
    %c0_137 = arith.constant 0 : index
    %c9_138 = arith.constant 9 : index
    %c0_139 = arith.constant 0 : index
    %116 = vector.load %arg7[%c0_136, %c0_137, %c9_138, %c0_139] : memref<2x10x10x128xf32, #tpu.memory_space<vmem>>, vector<2x10x1x128xf32>
    tpu.vector_store %arg7[%c0_136, %c0_137, %c9_138, %c0_139], %115 {strides = array<i32>} : memref<2x10x10x128xf32, #tpu.memory_space<vmem>>, vector<2x10x1x128xf32>,
    %117 = vector.shape_cast %108 : vector<128x128xf32> to vector<2x8x8x128xf32>
    %c0_140 = arith.constant 0 : index
    %c1_141 = arith.constant 1 : index
    %c1_142 = arith.constant 1 : index
    %c0_143 = arith.constant 0 : index
    %118 = vector.load %arg7[%c0_140, %c1_141, %c1_142, %c0_143] : memref<2x10x10x128xf32, #tpu.memory_space<vmem>>, vector<2x8x8x128xf32>
    tpu.vector_store %arg7[%c0_140, %c1_141, %c1_142, %c0_143], %117 {strides = array<i32>} : memref<2x10x10x128xf32, #tpu.memory_space<vmem>>, vector<2x8x8x128xf32>,
    %cst_144 = arith.constant 0.000000e+00 : f32
    %119 = vector.broadcast %cst_144 : f32 to vector<128x128xf32>
    %c0_145 = arith.constant 0 : index
    %c0_146 = arith.constant 0 : index
    %c0_147 = arith.constant 0 : index
    %c0_148 = arith.constant 0 : index
    %120 = vector.load %arg7[%c0_145, %c0_146, %c0_147, %c0_148] : memref<2x10x10x128xf32, #tpu.memory_space<vmem>>, vector<2x8x8x128xf32>
    %121 = vector.shape_cast %120 : vector<2x8x8x128xf32> to vector<128x128xf32>
    %122 = arith.truncf %121 : vector<128x128xf32> to vector<128x128xbf16>
    %c0_149 = arith.constant 0 : index
    %c0_150 = arith.constant 0 : index
    %c0_151 = arith.constant 0 : index
    %123 = vector.load %arg2[%c0_149, %c0_150, %c0_151] : memref<9x128x128xbf16, #tpu.memory_space<vmem>>, vector<1x128x128xbf16>
    %124 = vector.shape_cast %123 : vector<1x128x128xbf16> to vector<128x128xbf16>
    %cst_152 = arith.constant dense<0.000000e+00> : vector<128x128xf32>
    %125 = tpu.matmul %122, %124, %cst_152 {dimension_numbers = #tpu.dot_dimension_numbers<[1], [0], [0], [1], [0, 0, 1, 1], [], []>} : vector<128x128xbf16>, vector<128x128xbf16>, vector<128x128xf32> -> vector<128x128xf32>
    %126 = arith.addf %119, %125 : vector<128x128xf32>
    %c0_153 = arith.constant 0 : index
    %c0_154 = arith.constant 0 : index
    %c1_155 = arith.constant 1 : index
    %c0_156 = arith.constant 0 : index
    %127 = vector.load %arg7[%c0_153, %c0_154, %c1_155, %c0_156] : memref<2x10x10x128xf32, #tpu.memory_space<vmem>>, vector<2x8x8x128xf32>
    %128 = vector.shape_cast %127 : vector<2x8x8x128xf32> to vector<128x128xf32>
    %129 = arith.truncf %128 : vector<128x128xf32> to vector<128x128xbf16>
    %c1_157 = arith.constant 1 : index
    %c0_158 = arith.constant 0 : index
    %c0_159 = arith.constant 0 : index
    %130 = vector.load %arg2[%c1_157, %c0_158, %c0_159] : memref<9x128x128xbf16, #tpu.memory_space<vmem>>, vector<1x128x128xbf16>
    %131 = vector.shape_cast %130 : vector<1x128x128xbf16> to vector<128x128xbf16>
    %cst_160 = arith.constant dense<0.000000e+00> : vector<128x128xf32>
    %132 = tpu.matmul %129, %131, %cst_160 {dimension_numbers = #tpu.dot_dimension_numbers<[1], [0], [0], [1], [0, 0, 1, 1], [], []>} : vector<128x128xbf16>, vector<128x128xbf16>, vector<128x128xf32> -> vector<128x128xf32>
    %133 = arith.addf %126, %132 : vector<128x128xf32>
    %c0_161 = arith.constant 0 : index
    %c0_162 = arith.constant 0 : index
    %c2_163 = arith.constant 2 : index
    %c0_164 = arith.constant 0 : index
    %134 = vector.load %arg7[%c0_161, %c0_162, %c2_163, %c0_164] : memref<2x10x10x128xf32, #tpu.memory_space<vmem>>, vector<2x8x8x128xf32>
    %135 = vector.shape_cast %134 : vector<2x8x8x128xf32> to vector<128x128xf32>
    %136 = arith.truncf %135 : vector<128x128xf32> to vector<128x128xbf16>
    %c2_165 = arith.constant 2 : index
    %c0_166 = arith.constant 0 : index
    %c0_167 = arith.constant 0 : index
    %137 = vector.load %arg2[%c2_165, %c0_166, %c0_167] : memref<9x128x128xbf16, #tpu.memory_space<vmem>>, vector<1x128x128xbf16>
    %138 = vector.shape_cast %137 : vector<1x128x128xbf16> to vector<128x128xbf16>
    %cst_168 = arith.constant dense<0.000000e+00> : vector<128x128xf32>
    %139 = tpu.matmul %136, %138, %cst_168 {dimension_numbers = #tpu.dot_dimension_numbers<[1], [0], [0], [1], [0, 0, 1, 1], [], []>} : vector<128x128xbf16>, vector<128x128xbf16>, vector<128x128xf32> -> vector<128x128xf32>
    %140 = arith.addf %133, %139 : vector<128x128xf32>
    %c0_169 = arith.constant 0 : index
    %c1_170 = arith.constant 1 : index
    %c0_171 = arith.constant 0 : index
    %c0_172 = arith.constant 0 : index
    %141 = vector.load %arg7[%c0_169, %c1_170, %c0_171, %c0_172] : memref<2x10x10x128xf32, #tpu.memory_space<vmem>>, vector<2x8x8x128xf32>
    %142 = vector.shape_cast %141 : vector<2x8x8x128xf32> to vector<128x128xf32>
    %143 = arith.truncf %142 : vector<128x128xf32> to vector<128x128xbf16>
    %c3_173 = arith.constant 3 : index
    %c0_174 = arith.constant 0 : index
    %c0_175 = arith.constant 0 : index
    %144 = vector.load %arg2[%c3_173, %c0_174, %c0_175] : memref<9x128x128xbf16, #tpu.memory_space<vmem>>, vector<1x128x128xbf16>
    %145 = vector.shape_cast %144 : vector<1x128x128xbf16> to vector<128x128xbf16>
    %cst_176 = arith.constant dense<0.000000e+00> : vector<128x128xf32>
    %146 = tpu.matmul %143, %145, %cst_176 {dimension_numbers = #tpu.dot_dimension_numbers<[1], [0], [0], [1], [0, 0, 1, 1], [], []>} : vector<128x128xbf16>, vector<128x128xbf16>, vector<128x128xf32> -> vector<128x128xf32>
    %147 = arith.addf %140, %146 : vector<128x128xf32>
    %c0_177 = arith.constant 0 : index
    %c1_178 = arith.constant 1 : index
    %c1_179 = arith.constant 1 : index
    %c0_180 = arith.constant 0 : index
    %148 = vector.load %arg7[%c0_177, %c1_178, %c1_179, %c0_180] : memref<2x10x10x128xf32, #tpu.memory_space<vmem>>, vector<2x8x8x128xf32>
    %149 = vector.shape_cast %148 : vector<2x8x8x128xf32> to vector<128x128xf32>
    %150 = arith.truncf %149 : vector<128x128xf32> to vector<128x128xbf16>
    %c4_181 = arith.constant 4 : index
    %c0_182 = arith.constant 0 : index
    %c0_183 = arith.constant 0 : index
    %151 = vector.load %arg2[%c4_181, %c0_182, %c0_183] : memref<9x128x128xbf16, #tpu.memory_space<vmem>>, vector<1x128x128xbf16>
    %152 = vector.shape_cast %151 : vector<1x128x128xbf16> to vector<128x128xbf16>
    %cst_184 = arith.constant dense<0.000000e+00> : vector<128x128xf32>
    %153 = tpu.matmul %150, %152, %cst_184 {dimension_numbers = #tpu.dot_dimension_numbers<[1], [0], [0], [1], [0, 0, 1, 1], [], []>} : vector<128x128xbf16>, vector<128x128xbf16>, vector<128x128xf32> -> vector<128x128xf32>
    %154 = arith.addf %147, %153 : vector<128x128xf32>
    %c0_185 = arith.constant 0 : index
    %c1_186 = arith.constant 1 : index
    %c2_187 = arith.constant 2 : index
    %c0_188 = arith.constant 0 : index
    %155 = vector.load %arg7[%c0_185, %c1_186, %c2_187, %c0_188] : memref<2x10x10x128xf32, #tpu.memory_space<vmem>>, vector<2x8x8x128xf32>
    %156 = vector.shape_cast %155 : vector<2x8x8x128xf32> to vector<128x128xf32>
    %157 = arith.truncf %156 : vector<128x128xf32> to vector<128x128xbf16>
    %c5_189 = arith.constant 5 : index
    %c0_190 = arith.constant 0 : index
    %c0_191 = arith.constant 0 : index
    %158 = vector.load %arg2[%c5_189, %c0_190, %c0_191] : memref<9x128x128xbf16, #tpu.memory_space<vmem>>, vector<1x128x128xbf16>
    %159 = vector.shape_cast %158 : vector<1x128x128xbf16> to vector<128x128xbf16>
    %cst_192 = arith.constant dense<0.000000e+00> : vector<128x128xf32>
    %160 = tpu.matmul %157, %159, %cst_192 {dimension_numbers = #tpu.dot_dimension_numbers<[1], [0], [0], [1], [0, 0, 1, 1], [], []>} : vector<128x128xbf16>, vector<128x128xbf16>, vector<128x128xf32> -> vector<128x128xf32>
    %161 = arith.addf %154, %160 : vector<128x128xf32>
    %c0_193 = arith.constant 0 : index
    %c2_194 = arith.constant 2 : index
    %c0_195 = arith.constant 0 : index
    %c0_196 = arith.constant 0 : index
    %162 = vector.load %arg7[%c0_193, %c2_194, %c0_195, %c0_196] : memref<2x10x10x128xf32, #tpu.memory_space<vmem>>, vector<2x8x8x128xf32>
    %163 = vector.shape_cast %162 : vector<2x8x8x128xf32> to vector<128x128xf32>
    %164 = arith.truncf %163 : vector<128x128xf32> to vector<128x128xbf16>
    %c6_197 = arith.constant 6 : index
    %c0_198 = arith.constant 0 : index
    %c0_199 = arith.constant 0 : index
    %165 = vector.load %arg2[%c6_197, %c0_198, %c0_199] : memref<9x128x128xbf16, #tpu.memory_space<vmem>>, vector<1x128x128xbf16>
    %166 = vector.shape_cast %165 : vector<1x128x128xbf16> to vector<128x128xbf16>
    %cst_200 = arith.constant dense<0.000000e+00> : vector<128x128xf32>
    %167 = tpu.matmul %164, %166, %cst_200 {dimension_numbers = #tpu.dot_dimension_numbers<[1], [0], [0], [1], [0, 0, 1, 1], [], []>} : vector<128x128xbf16>, vector<128x128xbf16>, vector<128x128xf32> -> vector<128x128xf32>
    %168 = arith.addf %161, %167 : vector<128x128xf32>
    %c0_201 = arith.constant 0 : index
    %c2_202 = arith.constant 2 : index
    %c1_203 = arith.constant 1 : index
    %c0_204 = arith.constant 0 : index
    %169 = vector.load %arg7[%c0_201, %c2_202, %c1_203, %c0_204] : memref<2x10x10x128xf32, #tpu.memory_space<vmem>>, vector<2x8x8x128xf32>
    %170 = vector.shape_cast %169 : vector<2x8x8x128xf32> to vector<128x128xf32>
    %171 = arith.truncf %170 : vector<128x128xf32> to vector<128x128xbf16>
    %c7_205 = arith.constant 7 : index
    %c0_206 = arith.constant 0 : index
    %c0_207 = arith.constant 0 : index
    %172 = vector.load %arg2[%c7_205, %c0_206, %c0_207] : memref<9x128x128xbf16, #tpu.memory_space<vmem>>, vector<1x128x128xbf16>
    %173 = vector.shape_cast %172 : vector<1x128x128xbf16> to vector<128x128xbf16>
    %cst_208 = arith.constant dense<0.000000e+00> : vector<128x128xf32>
    %174 = tpu.matmul %171, %173, %cst_208 {dimension_numbers = #tpu.dot_dimension_numbers<[1], [0], [0], [1], [0, 0, 1, 1], [], []>} : vector<128x128xbf16>, vector<128x128xbf16>, vector<128x128xf32> -> vector<128x128xf32>
    %175 = arith.addf %168, %174 : vector<128x128xf32>
    %c0_209 = arith.constant 0 : index
    %c2_210 = arith.constant 2 : index
    %c2_211 = arith.constant 2 : index
    %c0_212 = arith.constant 0 : index
    %176 = vector.load %arg7[%c0_209, %c2_210, %c2_211, %c0_212] : memref<2x10x10x128xf32, #tpu.memory_space<vmem>>, vector<2x8x8x128xf32>
    %177 = vector.shape_cast %176 : vector<2x8x8x128xf32> to vector<128x128xf32>
    %178 = arith.truncf %177 : vector<128x128xf32> to vector<128x128xbf16>
    %c8_213 = arith.constant 8 : index
    %c0_214 = arith.constant 0 : index
    %c0_215 = arith.constant 0 : index
    %179 = vector.load %arg2[%c8_213, %c0_214, %c0_215] : memref<9x128x128xbf16, #tpu.memory_space<vmem>>, vector<1x128x128xbf16>
    %180 = vector.shape_cast %179 : vector<1x128x128xbf16> to vector<128x128xbf16>
    %cst_216 = arith.constant dense<0.000000e+00> : vector<128x128xf32>
    %181 = tpu.matmul %178, %180, %cst_216 {dimension_numbers = #tpu.dot_dimension_numbers<[1], [0], [0], [1], [0, 0, 1, 1], [], []>} : vector<128x128xbf16>, vector<128x128xbf16>, vector<128x128xf32> -> vector<128x128xf32>
    %182 = arith.addf %175, %181 : vector<128x128xf32>
    %c0_217 = arith.constant 0 : index
    %c0_218 = arith.constant 0 : index
    %183 = vector.load %arg3[%c0_217, %c0_218] : memref<1x128xf32, #tpu.memory_space<vmem>>, vector<1x128xf32>
    %c0_219 = arith.constant 0 : index
    %c0_220 = arith.constant 0 : index
    %184 = vector.load %arg4[%c0_219, %c0_220] : memref<1x128xf32, #tpu.memory_space<vmem>>, vector<1x128xf32>
    %cst_221 = arith.constant dense<0.000000e+00> : vector<128xf32>
    %185 = vector.multi_reduction <add>, %182, %cst_221 [0] : vector<128x128xf32> to vector<128xf32>
    %186 = vector.shape_cast %185 : vector<128xf32> to vector<1x128xf32>
    %cst_222 = arith.constant 7.812500e-03 : f32
    %187 = vector.broadcast %cst_222 : f32 to vector<1x128xf32>
    %188 = arith.mulf %186, %187 : vector<1x128xf32>
    %189 = vector.broadcast %188 : vector<1x128xf32> to vector<128x128xf32>
    %190 = arith.subf %182, %189 : vector<128x128xf32>
    %191 = arith.mulf %190, %190 : vector<128x128xf32>
    %cst_223 = arith.constant dense<0.000000e+00> : vector<128xf32>
    %192 = vector.multi_reduction <add>, %191, %cst_223 [0] : vector<128x128xf32> to vector<128xf32>
    %193 = vector.shape_cast %192 : vector<128xf32> to vector<1x128xf32>
    %cst_224 = arith.constant 7.812500e-03 : f32
    %194 = vector.broadcast %cst_224 : f32 to vector<1x128xf32>
    %195 = arith.mulf %193, %194 : vector<1x128xf32>
    %cst_225 = arith.constant 9.99999974E-6 : f32
    %196 = vector.broadcast %cst_225 : f32 to vector<1x128xf32>
    %197 = arith.addf %195, %196 : vector<1x128xf32>
    %198 = math.rsqrt %197 : vector<1x128xf32>
    %199 = arith.mulf %183, %198 : vector<1x128xf32>
    %200 = arith.mulf %188, %199 : vector<1x128xf32>
    %201 = arith.subf %184, %200 : vector<1x128xf32>
    %202 = vector.broadcast %199 : vector<1x128xf32> to vector<128x128xf32>
    %203 = arith.mulf %182, %202 : vector<128x128xf32>
    %204 = vector.broadcast %201 : vector<1x128xf32> to vector<128x128xf32>
    %205 = arith.addf %203, %204 : vector<128x128xf32>
    %cst_226 = arith.constant 0.000000e+00 : f32
    %206 = vector.broadcast %cst_226 : f32 to vector<128x128xf32>
    %207 = arith.maximumf %205, %206 : vector<128x128xf32>
    %c0_227 = arith.constant 0 : index
    %c0_228 = arith.constant 0 : index
    %208 = vector.load %arg5[%c0_227, %c0_228] : memref<128x128xf32, #tpu.memory_space<vmem>>, vector<128x128xf32>
    tpu.vector_store %arg5[%c0_227, %c0_228], %207 {strides = array<i32>} : memref<128x128xf32, #tpu.memory_space<vmem>>, vector<128x128xf32>,
    return
  }
}

</mosaic_0001>

<bundles_post_ra>
// kernel: tpu_custom_call.1
= control target key start
LH: loop header
LB: loop body
LE: loop exit
PB: predicated region body
PF: predicated region fallthrough
CT: control target
= control target key end

     0   :  { %10 = vsyncpa [#allocation5], 0  ;;  %s6885_s0 = inlined_call_operand.hbm [shape: f32[2,2,2,8,8,128], index: 0, kind: input, shape index: {}]   ;;  %s6886_s1 = inlined_call_operand.hbm [shape: bf16[9,128,128], index: 1, kind: input, shape index: {}]   ;;  %s6887_s2 = inlined_call_operand.hbm [shape: bf16[9,128,128], index: 2, kind: input, shape index: {}]   ;;  %s6888_s3 = inlined_call_operand.vmem [shape: f32[1,128], index: 3, kind: input, shape index: {}]   ;;  %s6889_s4 = inlined_call_operand.vmem [shape: f32[1,128], index: 4, kind: input, shape index: {}]   ;;  %s6890_s5 = inlined_call_operand.hbm [shape: f32[128,128], index: 5, kind: output, shape index: {}]  }
   0x1   :  { %11 = vsyncpa [#allocation8], 0 }
   0x2   :  { %12 = vsyncpa [#allocation6], 0  ;;  %s5453_s18 = smov [#allocation7]  }
   0x3   :  { %s30_s19 = sshll.u32 %s5453_s18, 4  ;;  %s31_s19 = int_to_ptr.vmem [resolvable:$true] %s30_s19 }
   0x4   :  { %s5375_s20 = scalar_lea.vmem %s31_s19, 9216  ;;  %p5380_p1 = scmp.lt.s32.totalorder %s31_s19, %s31_s19 }
   0x5   :  { %p5376_p0 = scmp.ne.s32.totalorder %s31_s19, %s5375_s20  ;;  %p5381_p2 = scmp.lt.s32.totalorder %s5375_s20, %s5375_s20 }
   0x7   :  { %p5382_p3 = por %p5381_p2, %p5380_p1 }
   0x9   :  { %p5383_p4 = pnand %p5382_p3, %p5376_p0 }
   0xb   :  { %5386 = shalt.err (!%p5383_p4)
}
   0xc   :  { %s5454_s21 = smov 64   ;;  %s5455_s22 = smov 4  }
   0xd   :  { %36 = dma.hbm_to_vmem [thread:$0]  %s6886_s1, 9216, %s31_s19, [#allocation8], %s5454_s21, %s5454_s21, %s5455_s22  }
   0xe   :  { %s5456_s25 = smov [#allocation4]  }
   0xf   :  { %s18_s26 = sshll.u32 %s5456_s25, 4  ;;  %s19_s26 = int_to_ptr.vmem [resolvable:$true] %s18_s26 }
  0x10   :  { %s5395_s27 = scalar_lea.vmem %s19_s26, 8192  ;;  %p5400_p6 = scmp.lt.s32.totalorder %s19_s26, %s19_s26 }
  0x11   :  { %p5396_p5 = scmp.ne.s32.totalorder %s19_s26, %s5395_s27  ;;  %p5401_p7 = scmp.lt.s32.totalorder %s5395_s27, %s5395_s27 }
  0x13   :  { %p5402_p8 = por %p5401_p7, %p5400_p6 }
  0x15   :  { %p5403_p9 = pnand %p5402_p8, %p5396_p5 }
  0x17   :  { %5406 = shalt.err (!%p5403_p9)
}
  0x18   :  { %s5457_s28 = smov 128   ;;  %s5458_s29 = smov 8  }
  0x19   :  { %24 = dma.hbm_to_vmem [thread:$0]  %s6885_s0, 8192, %s19_s26, [#allocation5], %s5457_s28, %s5457_s28, %s5458_s29  }
  0x1a   :  { %s5459_s1 = smov [#allocation9]  }
  0x1b   :  { %s42_s7 = sshll.u32 %s5459_s1, 4  ;;  %s43_s7 = int_to_ptr.vmem [resolvable:$true] %s42_s7 }
  0x1c   :  { %s5415_s8 = scalar_lea.vmem %s43_s7, 9216  ;;  %p5420_p11 = scmp.lt.s32.totalorder %s43_s7, %s43_s7 }
  0x1d   :  { %p5416_p10 = scmp.ne.s32.totalorder %s43_s7, %s5415_s8  ;;  %p5421_p12 = scmp.lt.s32.totalorder %s5415_s8, %s5415_s8 }
  0x1f   :  { %p5422_p13 = por %p5421_p12, %p5420_p11 }
  0x21   :  { %p5423_p0 = pnand %p5422_p13, %p5416_p10 }
  0x23   :  { %5426 = shalt.err (!%p5423_p0)
}
  0x24   :  { %48 = dma.hbm_to_vmem [thread:$0]  %s6887_s2, 9216, %s43_s7, [#allocation8], %s5454_s21, %s5454_s21, %s5455_s22  }
  0x25   :  { %5447 = dma.done.wait [#allocation5], 8192  }
  0x26   :  { %5448 = vsyncadd [#allocation5], 4294959104 }
  0x27   :  { %5449 = dma.done.wait [#allocation8], 18432  }
  0x28   :  { %5450 = vsyncadd [#allocation8], 4294948864  ;;  %v5460_v0 = vmov 0.0   ;;  %v5219_v1 = vld [vmem:[#allocation7 + $0x78] sm:$0xff]   ;;  %v5221_v3 = vld [vmem:[#allocation7 + $0x70] sm:$0xff]  }
  0x29   :  { %178 = vst [vmem:[#allocation2] sm:$0xff] %v5460_v0  ;;  %179 = vst [vmem:[#allocation2 + $0x8] sm:$0x3] %v5460_v0  ;;  %v5220_v2 = vld [vmem:[#allocation7 + $0x38] sm:$0xff]   ;;  %4634 = vmatprep.subr.bf16.mxu0 %v5219_v1  ;;  %v5222_v4 = vld [vmem:[#allocation7 + $0x30] sm:$0xff]  }
  0x2a   :  { %180 = vst [vmem:[#allocation2 + $0xa0] sm:$0xff] %v5460_v0  ;;  %181 = vst [vmem:[#allocation2 + $0xa8] sm:$0x3] %v5460_v0  ;;  %4666 = vmatprep.subr.bf16.mxu1 %v5220_v2  ;;  %4635 = vmatpush3.bf16.msra.mxu0 %v5219_v1  ;;  %v5223_v5 = vld [vmem:[#allocation7 + $0x68] sm:$0xff]   ;;  %v5225_v7 = vld [vmem:[#allocation7 + $0x60] sm:$0xff]  }
  0x2b   :  { %183 = vst [vmem:[#allocation2 + $0x90] sm:$0xff] %v5460_v0  ;;  %184 = vst [vmem:[#allocation2 + $0x98] sm:$0x3] %v5460_v0  ;;  %4667 = vmatpush3.bf16.msra.mxu1 %v5220_v2  ;;  %4636 = vmatprep.subr.bf16.mxu0 %v5221_v3  ;;  %v5224_v6 = vld [vmem:[#allocation7 + $0x28] sm:$0xff]   ;;  %v5226_v8 = vld [vmem:[#allocation7 + $0x20] sm:$0xff]  }
  0x2c   :  { %185 = vst [vmem:[#allocation2 + $0x130] sm:$0xff] %v5460_v0  ;;  %186 = vst [vmem:[#allocation2 + $0x138] sm:$0x3] %v5460_v0  ;;  %4668 = vmatprep.subr.bf16.mxu1 %v5222_v4  ;;  %v5227_v9 = vld [vmem:[#allocation7 + $0x58] sm:$0xff]   ;;  %v5229_v11 = vld [vmem:[#allocation7 + $0x50] sm:$0xff]  }
  0x2d   :  { %188 = vst [vmem:[#allocation2 + $0x10] sm:$0x1] %v5460_v0  ;;  %189 = vst [vmem:[#allocation2 + $0x20] sm:$0x1] %v5460_v0  ;;  %v5228_v10 = vld [vmem:[#allocation7 + $0x18] sm:$0xff]   ;;  %v63_v12 = vld [vmem:[#allocation4] sm:$0xff] }
  0x2e   :  { %190 = vst [vmem:[#allocation2 + $0x30] sm:$0x1] %v5460_v0  ;;  %191 = vst [vmem:[#allocation2 + $0x40] sm:$0x1] %v5460_v0  ;;  %4637 = vmatpush3.bf16.msra.mxu0 %v5221_v3  ;;  %v80_v13 = vld [vmem:[#allocation4 + $0x80] sm:$0xff]  ;;  %v5230_v15 = vld [vmem:[#allocation7 + $0x10] sm:$0xff]  }
  0x2f   :  { %192 = vst [vmem:[#allocation2 + $0x50] sm:$0x1] %v5460_v0  ;;  %193 = vst [vmem:[#allocation2 + $0x60] sm:$0x1] %v5460_v0  ;;  %4669 = vmatpush3.bf16.msra.mxu1 %v5222_v4  ;;  %4638 = vmatprep.subr.bf16.mxu0 %v5223_v5  ;;  %v113_v14 = vld [vmem:[#allocation4 + $0x100] sm:$0xff]  ;;  %v96_v16 = vmax.f32 %v63_v12, %v80_v13  ;;  %v5231_v19 = vld [vmem:[#allocation7 + $0x48] sm:$0xff]  }
  0x30   :  { %194 = vst [vmem:[#allocation2 + $0x70] sm:$0x1] %v5460_v0  ;;  %195 = vst [vmem:[#allocation2 + $0x80] sm:$0x1] %v5460_v0  ;;  %4670 = vmatprep.subr.bf16.mxu1 %v5224_v6  ;;  %v130_v17 = vld [vmem:[#allocation4 + $0x180] sm:$0xff]  ;;  %v64_v21 = vld [vmem:[#allocation4 + $0x8] sm:$0xff] }
  0x31   :  { %198 = vst [vmem:[#allocation2 + $0xb0] sm:$0x1] %v5460_v0  ;;  %199 = vst [vmem:[#allocation2 + $0xc0] sm:$0x1] %v5460_v0  ;;  %v284_v18 = vld [vmem:[#allocation2 + $0x1] sm:$0xff]  ;;  %v146_v20 = vmax.f32 %v113_v14, %v130_v17  ;;  %v65_v22 = vld [vmem:[#allocation4 + $0x10] sm:$0xff] }
  0x32   :  { %200 = vst [vmem:[#allocation2 + $0xd0] sm:$0x1] %v5460_v0  ;;  %201 = vst [vmem:[#allocation2 + $0xe0] sm:$0x1] %v5460_v0  ;;  %4639 = vmatpush3.bf16.msra.mxu0 %v5223_v5  ;;  %v81_v23 = vld [vmem:[#allocation4 + $0x88] sm:$0xff]  ;;  %v82_v24 = vld [vmem:[#allocation4 + $0x90] sm:$0xff] }
  0x33   :  { %202 = vst [vmem:[#allocation2 + $0xf0] sm:$0x1] %v5460_v0  ;;  %203 = vst [vmem:[#allocation2 + $0x100] sm:$0x1] %v5460_v0  ;;  %4671 = vmatpush3.bf16.msra.mxu1 %v5224_v6  ;;  %4640 = vmatprep.subr.bf16.mxu0 %v5225_v7  ;;  %v97_v25 = vmax.f32 %v64_v21, %v81_v23  ;;  %v114_v26 = vld [vmem:[#allocation4 + $0x108] sm:$0xff]  ;;  %v115_v27 = vld [vmem:[#allocation4 + $0x110] sm:$0xff]  ;;  %v5600_v28 = vmax.f32 %v96_v16, %v146_v20 }
  0x34   :  { %204 = vst [vmem:[#allocation2 + $0x110] sm:$0x1] %v5460_v0  ;;  %205 = vst [vmem:[#allocation2 + $0x120] sm:$0x1] %v5460_v0  ;;  %4672 = vmatprep.subr.bf16.mxu1 %v5226_v8  ;;  %v98_v29 = vmax.f32 %v65_v22, %v82_v24  ;;  %v131_v30 = vld [vmem:[#allocation4 + $0x188] sm:$0xff]  ;;  %v132_v31 = vld [vmem:[#allocation4 + $0x190] sm:$0xff] }
  0x35   :  { %208 = vst [vmem:[#allocation2 + $0x19] sm:$0x1] %v5460_v0  ;;  %209 = vst [vmem:[#allocation2 + $0x29] sm:$0x1] %v5460_v0  ;;  %v5232_v32 = vld [vmem:[#allocation7 + $0x8] sm:$0xff]   ;;  %v147_v33 = vmax.f32 %v114_v26, %v131_v30  ;;  %v148_v34 = vmax.f32 %v115_v27, %v132_v31  ;;  %v300_v35 = vpack.c.bf16 %v5600_v28, %v284_v18  ;;  %v5233_v36 = vld [vmem:[#allocation7 + $0x40] sm:$0xff]  }
  0x36   :  { %210 = vst [vmem:[#allocation2 + $0x39] sm:$0x1] %v5460_v0  ;;  %211 = vst [vmem:[#allocation2 + $0x49] sm:$0x1] %v5460_v0  ;;  %4641 = vmatpush3.bf16.msra.mxu0 %v5225_v7  ;;  %v5234_v39 = vld [vmem:[#allocation7] sm:$0xff]   ;;  %v66_v40 = vld [vmem:[#allocation4 + $0x18] sm:$0xff] }
  0x37   :  { %212 = vst [vmem:[#allocation2 + $0x59] sm:$0x1] %v5460_v0  ;;  %213 = vst [vmem:[#allocation2 + $0x69] sm:$0x1] %v5460_v0  ;;  %4673 = vmatpush3.bf16.msra.mxu1 %v5226_v8  ;;  %4642 = vmatprep.subr.bf16.mxu0 %v5227_v9  ;;  %v5604_v37 = vmax.f32 %v97_v25, %v147_v33  ;;  %v5606_v38 = vmax.f32 %v98_v29, %v148_v34  ;;  %v67_v42 = vld [vmem:[#allocation4 + $0x20] sm:$0xff]  ;;  %v83_v43 = vld [vmem:[#allocation4 + $0x98] sm:$0xff] }
  0x38   :  { %214 = vst [vmem:[#allocation2 + $0x79] sm:$0x1] %v5460_v0  ;;  %215 = vst [vmem:[#allocation2 + $0x89] sm:$0x1] %v5460_v0  ;;  %4674 = vmatprep.subr.bf16.mxu1 %v5228_v10  ;;  %4650 = vmatprep.mubr.bf16.mxu0 %v300_v35  ;;  %v84_v44 = vld [vmem:[#allocation4 + $0xa0] sm:$0xff]  ;;  %v99_v46 = vmax.f32 %v66_v40, %v83_v43  ;;  %v116_v48 = vld [vmem:[#allocation4 + $0x118] sm:$0xff] }
  0x39   :  { %218 = vst [vmem:[#allocation2 + $0xb9] sm:$0x1] %v5460_v0  ;;  %219 = vst [vmem:[#allocation2 + $0xc9] sm:$0x1] %v5460_v0  ;;  %v1035_v45 = vpack.c.bf16 %v5604_v37, %v5600_v28  ;;  %v100_v47 = vmax.f32 %v67_v42, %v84_v44  ;;  %v117_v49 = vld [vmem:[#allocation4 + $0x120] sm:$0xff]  ;;  %v133_v50 = vld [vmem:[#allocation4 + $0x198] sm:$0xff]  ;;  %v301_v4 = vpack.c.bf16 %v5606_v38, %v5604_v37 }
  0x3a   :  { %220 = vst [vmem:[#allocation2 + $0xd9] sm:$0x1] %v5460_v0  ;;  %221 = vst [vmem:[#allocation2 + $0xe9] sm:$0x1] %v5460_v0  ;;  %4643 = vmatpush3.bf16.msra.mxu0 %v5227_v9  ;;  %v5235_v51 = vld [vmem:[#allocation7 + $0xb8] sm:$0xff]   ;;  %v134_v53 = vld [vmem:[#allocation4 + $0x1a0] sm:$0xff]  ;;  %v149_v54 = vmax.f32 %v116_v48, %v133_v50 }
  0x3b   :  { %222 = vst [vmem:[#allocation2 + $0xf9] sm:$0x1] %v5460_v0  ;;  %223 = vst [vmem:[#allocation2 + $0x109] sm:$0x1] %v5460_v0  ;;  %4675 = vmatpush3.bf16.msra.mxu1 %v5228_v10  ;;  %4644 = vmatprep.subr.bf16.mxu0 %v5229_v11  ;;  %v5236_v52 = vld [vmem:[#allocation7 + $0xf8] sm:$0xff]   ;;  %v68_v55 = vld [vmem:[#allocation4 + $0x28] sm:$0xff]  ;;  %v150_v57 = vmax.f32 %v117_v49, %v134_v53 }
  0x3c   :  { %224 = vst [vmem:[#allocation2 + $0x119] sm:$0x1] %v5460_v0  ;;  %225 = vst [vmem:[#allocation2 + $0x129] sm:$0x1] %v5460_v0  ;;  %4676 = vmatprep.subr.bf16.mxu1 %v5230_v15  ;;  %v69_v56 = vld [vmem:[#allocation4 + $0x30] sm:$0xff]  ;;  %v85_v58 = vld [vmem:[#allocation4 + $0xa8] sm:$0xff]  ;;  %v5614_v62 = vmax.f32 %v99_v46, %v149_v54 }
  0x3d   :  { %2173 = vst [vmem:[#allocation3] sm:$0xff] %v5460_v0  ;;  %2174 = vst [vmem:[#allocation3 + $0x8] sm:$0x3] %v5460_v0  ;;  %v86_v59 = vld [vmem:[#allocation4 + $0xb0] sm:$0xff]  ;;  %v118_v60 = vld [vmem:[#allocation4 + $0x128] sm:$0xff]  ;;  %v101_v63 = vmax.f32 %v68_v55, %v85_v58  ;;  %v5619_v5 = vmax.f32 %v100_v47, %v150_v57 }
  0x3e   :  { %2175 = vst [vmem:[#allocation3 + $0xa0] sm:$0xff] %v5460_v0  ;;  %2176 = vst [vmem:[#allocation3 + $0xa8] sm:$0x3] %v5460_v0  ;;  %4645 = vmatpush3.bf16.msra.mxu0 %v5229_v11  ;;  %v119_v1 = vld [vmem:[#allocation4 + $0x130] sm:$0xff]  ;;  %v135_v2 = vld [vmem:[#allocation4 + $0x1a8] sm:$0xff] }
  0x3f   :  { %2178 = vst [vmem:[#allocation3 + $0x90] sm:$0xff] %v5460_v0  ;;  %2179 = vst [vmem:[#allocation3 + $0x98] sm:$0x3] %v5460_v0  ;;  %4677 = vmatpush3.bf16.msra.mxu1 %v5230_v15  ;;  %4646 = vmatprep.subr.bf16.mxu0 %v5231_v19  ;;  %v136_v6 = vld [vmem:[#allocation4 + $0x1b0] sm:$0xff]  ;;  %v151_v7 = vmax.f32 %v118_v60, %v135_v2  ;;  %v5635_v16 = vpack.c.bf16 %v5619_v5, %v5614_v62  ;;  %v5239_v18 = vld [vmem:[#allocation7 + $0xa8] sm:$0xff]  }
  0x40   :  { %2180 = vst [vmem:[#allocation3 + $0x130] sm:$0xff] %v5460_v0  ;;  %2181 = vst [vmem:[#allocation3 + $0x138] sm:$0x3] %v5460_v0  ;;  %4678 = vmatprep.subr.bf16.mxu1 %v5232_v32  ;;  %v152_v8 = vmax.f32 %v119_v1, %v136_v6  ;;  %v5237_v12 = vld [vmem:[#allocation7 + $0xb0] sm:$0xff]   ;;  %v71_v20 = vld [vmem:[#allocation4 + $0x40] sm:$0xff] }
  0x41   :  { %2183 = vst [vmem:[#allocation3 + $0x10] sm:$0x1] %v5460_v0  ;;  %2184 = vst [vmem:[#allocation3 + $0x20] sm:$0x1] %v5460_v0  ;;  %v5629_v13 = vmax.f32 %v101_v63, %v151_v7  ;;  %v5238_v15 = vld [vmem:[#allocation7 + $0xf0] sm:$0xff]   ;;  %v88_v21 = vld [vmem:[#allocation4 + $0xc0] sm:$0xff] }
  0x42   :  { %2185 = vst [vmem:[#allocation3 + $0x30] sm:$0x1] %v5460_v0  ;;  %2186 = vst [vmem:[#allocation3 + $0x40] sm:$0x1] %v5460_v0  ;;  %4647 = vmatpush3.bf16.msra.mxu0 %v5231_v19  ;;  %v121_v22 = vld [vmem:[#allocation4 + $0x140] sm:$0xff]  ;;  %v5240_v23 = vld [vmem:[#allocation7 + $0xe8] sm:$0xff]   ;;  %v104_v24 = vmax.f32 %v71_v20, %v88_v21 }
  0x43   :  { %2187 = vst [vmem:[#allocation3 + $0x50] sm:$0x1] %v5460_v0  ;;  %2188 = vst [vmem:[#allocation3 + $0x60] sm:$0x1] %v5460_v0  ;;  %4679 = vmatpush3.bf16.msra.mxu1 %v5232_v32  ;;  %4648 = vmatprep.subr.bf16.mxu0 %v5233_v36  ;;  %v138_v25 = vld [vmem:[#allocation4 + $0x1c0] sm:$0xff]  ;;  %v72_v29 = vld [vmem:[#allocation4 + $0x48] sm:$0xff] }
  0x44   :  { %2189 = vst [vmem:[#allocation3 + $0x70] sm:$0x1] %v5460_v0  ;;  %2190 = vst [vmem:[#allocation3 + $0x80] sm:$0x1] %v5460_v0  ;;  %4680 = vmatprep.subr.bf16.mxu1 %v5234_v39  ;;  %v292_v26 = vld [vmem:[#allocation2 + $0xa1] sm:$0xff]  ;;  %v154_v27 = vmax.f32 %v121_v22, %v138_v25  ;;  %v73_v30 = vld [vmem:[#allocation4 + $0x50] sm:$0xff] }
  0x45   :  { %2193 = vst [vmem:[#allocation3 + $0xb0] sm:$0x1] %v5460_v0  ;;  %2194 = vst [vmem:[#allocation3 + $0xc0] sm:$0x1] %v5460_v0  ;;  %v89_v31 = vld [vmem:[#allocation4 + $0xc8] sm:$0xff]  ;;  %v5241_v34 = vld [vmem:[#allocation7 + $0xa0] sm:$0xff]  }
  0x46   :  { %2195 = vst [vmem:[#allocation3 + $0xd0] sm:$0x1] %v5460_v0  ;;  %2196 = vst [vmem:[#allocation3 + $0xe0] sm:$0x1] %v5460_v0  ;;  %4649 = vmatpush3.bf16.msra.mxu0 %v5233_v36  ;;  %v90_v35 = vld [vmem:[#allocation4 + $0xd0] sm:$0xff]  ;;  %v105_v36 = vmax.f32 %v72_v29, %v89_v31  ;;  %v139_v44 = vld [vmem:[#allocation4 + $0x1c8] sm:$0xff] }
  0x47   :  { %2197 = vst [vmem:[#allocation3 + $0xf0] sm:$0x1] %v5460_v0  ;;  %2198 = vst [vmem:[#allocation3 + $0x100] sm:$0x1] %v5460_v0  ;;  %4681 = vmatpush3.bf16.msra.mxu1 %v5234_v39  ;;  %4698 = vmatprep.subr.bf16.mxu0 %v5235_v51  ;;  %v122_v39 = vld [vmem:[#allocation4 + $0x148] sm:$0xff]  ;;  %v106_v42 = vmax.f32 %v73_v30, %v90_v35  ;;  %v123_v43 = vld [vmem:[#allocation4 + $0x150] sm:$0xff] }
  0x48   :  { %2199 = vst [vmem:[#allocation3 + $0x110] sm:$0x1] %v5460_v0  ;;  %2200 = vst [vmem:[#allocation3 + $0x120] sm:$0x1] %v5460_v0  ;;  %4730 = vmatprep.subr.bf16.mxu1 %v5236_v52  ;;  %v140_v47 = vld [vmem:[#allocation4 + $0x1d0] sm:$0xff]  ;;  %v155_v48 = vmax.f32 %v122_v39, %v139_v44  ;;  %v5242_v50 = vld [vmem:[#allocation7 + $0xe0] sm:$0xff]  }
  0x49   :  { %2203 = vst [vmem:[#allocation3 + $0x19] sm:$0x1] %v5460_v0  ;;  %2204 = vst [vmem:[#allocation3 + $0x29] sm:$0x1] %v5460_v0  ;;  %4651 = vmatmul.mubr.bf16.vlgmr.msra.gmra.mxu0 %v301_v4  ;;  %v5243_v57 = vld [vmem:[#allocation7 + $0x98] sm:$0xff]   ;;  %v75_v63 = vld [vmem:[#allocation4 + $0x60] sm:$0xff] }
  0x4a   :  { %2205 = vst [vmem:[#allocation3 + $0x39] sm:$0x1] %v5460_v0  ;;  %2206 = vst [vmem:[#allocation3 + $0x49] sm:$0x1] %v5460_v0  ;;  %4699 = vmatpush3.bf16.msra.mxu0 %v5235_v51  ;;  %4654 = vmatprep.mubr.bf16.mxu0 %v5635_v16  ;;  %v5666_v54 = vmax.f32 %v105_v36, %v155_v48  ;;  %v74_v60 = vld [vmem:[#allocation4 + $0x58] sm:$0xff]  ;;  %v5245_v2 = vld [vmem:[#allocation7 + $0x90] sm:$0xff]  }
  0x4b   :  { %2207 = vst [vmem:[#allocation3 + $0x59] sm:$0x1] %v5460_v0  ;;  %2208 = vst [vmem:[#allocation3 + $0x69] sm:$0x1] %v5460_v0  ;;  %4700 = vmatprep.subr.bf16.mxu0 %v5237_v12  ;;  %v124_v6 = vld [vmem:[#allocation4 + $0x158] sm:$0xff]  ;;  %v125_v7 = vld [vmem:[#allocation4 + $0x160] sm:$0xff] }
  0x4c   :  { %2209 = vst [vmem:[#allocation3 + $0x79] sm:$0x1] %v5460_v0  ;;  %2210 = vst [vmem:[#allocation3 + $0x89] sm:$0x1] %v5460_v0  ;;  %v126_v29 = vld [vmem:[#allocation4 + $0x168] sm:$0xff]  ;;  %v127_v30 = vld [vmem:[#allocation4 + $0x170] sm:$0xff] }
  0x4d   :  { %2213 = vst [vmem:[#allocation3 + $0xb9] sm:$0x1] %v5460_v0  ;;  %2214 = vst [vmem:[#allocation3 + $0xc9] sm:$0x1] %v5460_v0  ;;  %v143_v36 = vld [vmem:[#allocation4 + $0x1e8] sm:$0xff]  ;;  %v144_v39 = vld [vmem:[#allocation4 + $0x1f0] sm:$0xff] }
  0x4e   :  { %2215 = vst [vmem:[#allocation3 + $0xd9] sm:$0x1] %v5460_v0  ;;  %2216 = vst [vmem:[#allocation3 + $0xe9] sm:$0x1] %v5460_v0  ;;  %4701 = vmatpush3.bf16.msra.mxu0 %v5237_v12  ;;  %v160_v44 = vmax.f32 %v127_v30, %v144_v39  ;;  %v70_v30 = vld [vmem:[#allocation4 + $0x38] sm:$0xff] }
  0x4f   :  { %2217 = vst [vmem:[#allocation3 + $0xf9] sm:$0x1] %v5460_v0  ;;  %2218 = vst [vmem:[#allocation3 + $0x109] sm:$0x1] %v5460_v0  ;;  %4702 = vmatprep.subr.bf16.mxu0 %v5239_v18  ;;  %v120_v39 = vld [vmem:[#allocation4 + $0x138] sm:$0xff] }
  0x50   :  { %2219 = vst [vmem:[#allocation3 + $0x119] sm:$0x1] %v5460_v0  ;;  %2220 = vst [vmem:[#allocation3 + $0x129] sm:$0x1] %v5460_v0 }
  0x51   :  { %207 = vst [vmem:[#allocation2 + $0x9] sm:$0x1] %v5460_v0  ;;  %187 = vst [vmem:[#allocation2] sm:$0x1] %v5460_v0 }
  0x52   :  { %196 = vst [vmem:[#allocation2 + $0x90] sm:$0x1] %v5460_v0  ;;  %197 = vst [vmem:[#allocation2 + $0xa0] sm:$0x1] %v5460_v0  ;;  %4703 = vmatpush3.bf16.msra.mxu0 %v5239_v18  ;;  %v76_v18 = vld [vmem:[#allocation4 + $0x68] sm:$0xff] }
  0x53   :  { %206 = vst [vmem:[#allocation2 + $0x130] sm:$0x1] %v5460_v0  ;;  %216 = vst [vmem:[#allocation2 + $0x99] sm:$0x1] %v5460_v0  ;;  %4704 = vmatprep.subr.bf16.mxu0 %v5241_v34 }
  0x54   :  { %217 = vst [vmem:[#allocation2 + $0xa9] sm:$0x1] %v5460_v0  ;;  %226 = vst [vmem:[#allocation2 + $0x139] sm:$0x1] %v5460_v0 }
  0x55   :  { %2182 = vst [vmem:[#allocation3] sm:$0x1] %v5460_v0  ;;  %2191 = vst [vmem:[#allocation3 + $0x90] sm:$0x1] %v5460_v0 }
  0x56   :  { %2192 = vst [vmem:[#allocation3 + $0xa0] sm:$0x1] %v5460_v0  ;;  %2201 = vst [vmem:[#allocation3 + $0x130] sm:$0x1] %v5460_v0  ;;  %4705 = vmatpush3.bf16.msra.mxu0 %v5241_v34 }
  0x57   :  { %2202 = vst [vmem:[#allocation3 + $0x9] sm:$0x1] %v5460_v0  ;;  %2211 = vst [vmem:[#allocation3 + $0x99] sm:$0x1] %v5460_v0  ;;  %4706 = vmatprep.subr.bf16.mxu0 %v5243_v57 }
  0x58   :  { %2212 = vst [vmem:[#allocation3 + $0xa9] sm:$0x1] %v5460_v0  ;;  %2221 = vst [vmem:[#allocation3 + $0x139] sm:$0x1] %v5460_v0  ;;  %v244_v41 = vld [vmem:[#allocation2] sm:$0xff]  ;;  %v102_v0 = vmax.f32 %v69_v56, %v86_v59  ;;  %v5244_v59 = vld [vmem:[#allocation7 + $0xd8] sm:$0xff]  }
  0x59   :  { %228 = vst [vmem:[#allocation2 + $0x11] sm:$0xff] %v5600_v28  ;;  %229 = vst [vmem:[#allocation2 + $0x21] sm:$0xff] %v5604_v37  ;;  %v252_v58 = vld [vmem:[#allocation2 + $0xa0] sm:$0xff]  ;;  %v6893_v28 = vpack.c.bf16 %v5614_v62, %v5606_v38  ;;  %v5268_v37 = vld [vmem:[#allocation7 + $0x1f8] sm:$0xff]  }
  0x5a   :  { %230 = vst [vmem:[#allocation2 + $0x31] sm:$0xff] %v5606_v38  ;;  %231 = vst [vmem:[#allocation2 + $0x41] sm:$0xff] %v5614_v62  ;;  %v5637_v17 = vmax.f32 %v102_v0, %v152_v8  ;;  %v91_v0 = vld [vmem:[#allocation4 + $0xd8] sm:$0xff]  ;;  %v5246_v8 = vld [vmem:[#allocation7 + $0xd0] sm:$0xff]   ;;  %4707 = vmatpush3.bf16.msra.mxu0 %v5243_v57 }
  0x5b   :  { %232 = vst [vmem:[#allocation2 + $0x51] sm:$0xff] %v5619_v5  ;;  %233 = vst [vmem:[#allocation2 + $0x61] sm:$0xff] %v5629_v13  ;;  %v107_v4 = vmax.f32 %v74_v60, %v91_v0  ;;  %4708 = vmatprep.subr.bf16.mxu0 %v5245_v2  ;;  %v615_v60 = vld [vmem:[#allocation2 + $0x2] sm:$0xff] }
  0x5c   :  { %234 = vst [vmem:[#allocation2 + $0x71] sm:$0xff] %v5637_v17  ;;  %v5648_v33 = vpack.c.bf16 %v5637_v17, %v5629_v13  ;;  %237 = vst [vmem:[#allocation2 + $0xc1] sm:$0xff] %v5666_v54  ;;  %v5249_v0 = vld [vmem:[#allocation7 + $0x80] sm:$0xff]  }
  0x5e   :  { %4655 = vmatmul.mubr.bf16.gmra.mxu0 %v5648_v33 }
  0x5f   :  { %4709 = vmatpush3.bf16.msra.mxu0 %v5245_v2 }
  0x60   :  { %v5612_v61 = vld [vmem:[#allocation2 + $0x10] sm:$0xff]  ;;  %v5624_v10 = vld [vmem:[#allocation2 + $0x20] sm:$0xff] }
  0x61   :  { %v260_v3 = vpack.c.bf16 %v5612_v61, %v244_v41  ;;  %v5626_v11 = vld [vmem:[#allocation2 + $0x30] sm:$0xff]  ;;  %v5644_v32 = vld [vmem:[#allocation2 + $0x40] sm:$0xff]  ;;  %v5652_v41 = vmax.f32 %v104_v24, %v154_v27  ;;  %v93_v24 = vld [vmem:[#allocation4 + $0xe8] sm:$0xff] }
  0x62   :  { %v261_v14 = vpack.c.bf16 %v5626_v11, %v5624_v10  ;;  %v5650_v40 = vld [vmem:[#allocation2 + $0x50] sm:$0xff]  ;;  %v5658_v49 = vld [vmem:[#allocation2 + $0x60] sm:$0xff]  ;;  %v109_v27 = vmax.f32 %v76_v18, %v93_v24 }
  0x63   :  { %4682 = vmatprep.mubr.bf16.mxu1 %v260_v3  ;;  %v5656_v46 = vpack.c.bf16 %v5650_v40, %v5644_v32  ;;  %236 = vst [vmem:[#allocation2 + $0xb1] sm:$0xff] %v5652_v41  ;;  %v304_v51 = vpack.c.bf16 %v5652_v41, %v292_v26  ;;  %v5664_v53 = vld [vmem:[#allocation2 + $0x70] sm:$0xff]  ;;  %v92_v3 = vld [vmem:[#allocation4 + $0xe0] sm:$0xff]  ;;  %v1039_v62 = vpack.c.bf16 %v5666_v54, %v5652_v41 }
  0x64   :  { %4683 = vmatmul.mubr.bf16.vlgmr.msra.gmra.mxu1 %v261_v14  ;;  %v5670_v55 = vpack.c.bf16 %v5664_v53, %v5658_v49  ;;  %v108_v12 = vmax.f32 %v75_v63, %v92_v3  ;;  %v141_v14 = vld [vmem:[#allocation4 + $0x1d8] sm:$0xff]  ;;  %v94_v26 = vld [vmem:[#allocation4 + $0xf0] sm:$0xff]  ;;  %v5250_v3 = vld [vmem:[#allocation7 + $0xc0] sm:$0xff]  }
  0x65   :  { %4731 = vmatpush3.bf16.msra.mxu1 %v5236_v52  ;;  %v156_v52 = vmax.f32 %v123_v43, %v140_v47  ;;  %4686 = vmatprep.mubr.bf16.mxu1 %v5656_v46  ;;  %v157_v21 = vmax.f32 %v124_v6, %v141_v14  ;;  %v159_v43 = vmax.f32 %v126_v29, %v143_v36  ;;  %v5247_v47 = vld [vmem:[#allocation7 + $0x88] sm:$0xff]   ;;  %v5715_v63 = vld [vmem:[#allocation2 + $0x12] sm:$0xff] }
  0x66   :  { %4732 = vmatprep.subr.bf16.mxu1 %v5238_v15  ;;  %4658 = vmatprep.mubr.bf16.mxu0 %v304_v51  ;;  %v5718_v6 = vld [vmem:[#allocation2 + $0x22] sm:$0xff]  ;;  %v5721_v2 = vld [vmem:[#allocation2 + $0x32] sm:$0xff] }
  0x67   :  { %v5672_v56 = vmax.f32 %v106_v42, %v156_v52  ;;  %v5685_v31 = vmax.f32 %v107_v4, %v157_v21  ;;  %v5689_v42 = vld [vmem:[#allocation2 + $0xc0] sm:$0xff]  ;;  %v5703_v52 = vmax.f32 %v109_v27, %v159_v43  ;;  %4710 = vmatprep.subr.bf16.mxu0 %v5247_v47  ;;  %v631_v4 = vpack.c.bf16 %v5715_v63, %v615_v60  ;;  %v5251_v14 = vld [vmem:[#allocation7 + $0x138] sm:$0xff]   ;;  %v5253_v29 = vld [vmem:[#allocation7 + $0x130] sm:$0xff]  }
  0x68   :  { %4711 = vmatpush3.bf16.msra.mxu0 %v5247_v47  ;;  %v5731_v18 = vld [vmem:[#allocation2 + $0x42] sm:$0xff]  ;;  %v5733_v21 = vld [vmem:[#allocation2 + $0x52] sm:$0xff]  ;;  %v5742_v24 = vpack.c.bf16 %v5721_v2, %v5718_v6  ;;  %v834_v60 = vpack.c.bf16 %v5644_v32, %v5626_v11 }
  0x69   :  { %4733 = vmatpush3.bf16.msra.mxu1 %v5238_v15  ;;  %238 = vst [vmem:[#allocation2 + $0xd1] sm:$0xff] %v5672_v56  ;;  %v5679_v1 = vpack.c.bf16 %v5672_v56, %v5666_v54  ;;  %v142_v15 = vld [vmem:[#allocation4 + $0x1e0] sm:$0xff]  ;;  %239 = vst [vmem:[#allocation2 + $0xe1] sm:$0xff] %v5685_v31  ;;  %4712 = vmatprep.subr.bf16.mxu0 %v5249_v0  ;;  %v5752_v27 = vpack.c.bf16 %v5733_v21, %v5731_v18  ;;  %v5255_v47 = vld [vmem:[#allocation7 + $0x128] sm:$0xff]  }
  0x6a   :  { %4734 = vmatprep.subr.bf16.mxu1 %v5240_v23  ;;  %v5681_v20 = vld [vmem:[#allocation2 + $0xb0] sm:$0xff]  ;;  %v158_v22 = vmax.f32 %v125_v7, %v142_v15  ;;  %241 = vst [vmem:[#allocation2 + $0x101] sm:$0xff] %v5703_v52  ;;  %v5252_v15 = vld [vmem:[#allocation7 + $0x178] sm:$0xff]   ;;  %v5256_v11 = vld [vmem:[#allocation7 + $0x168] sm:$0xff]   ;;  %v1040_v54 = vpack.c.bf16 %v5685_v31, %v5672_v56 }
  0x6b   :  { %v264_v25 = vpack.c.bf16 %v5681_v20, %v252_v58  ;;  %4659 = vmatmul.mubr.bf16.gmra.mxu0 %v5679_v1  ;;  %v5248_v58 = vld [vmem:[#allocation7 + $0xc8] sm:$0xff]   ;;  %v837_v9 = vpack.c.bf16 %v5689_v42, %v5681_v20 }
  0x6c   :  { %4687 = vmatmul.mubr.bf16.gmra.mxu1 %v5670_v55  ;;  %v5687_v34 = vmax.f32 %v108_v12, %v158_v22  ;;  %4713 = vmatpush3.bf16.msra.mxu0 %v5249_v0  ;;  %v623_v0 = vld [vmem:[#allocation2 + $0xa2] sm:$0xff] }
  0x6d   :  { %4735 = vmatpush3.bf16.msra.mxu1 %v5240_v23  ;;  %v77_v23 = vld [vmem:[#allocation4 + $0x70] sm:$0xff]  ;;  %4690 = vmatprep.mubr.bf16.mxu1 %v264_v25  ;;  %v833_v25 = vpack.c.bf16 %v5624_v10, %v5612_v61  ;;  %v137_v61 = vld [vmem:[#allocation4 + $0x1b8] sm:$0xff]  ;;  %v5756_v10 = vld [vmem:[#allocation2 + $0x62] sm:$0xff] }
  0x6e   :  { %4736 = vmatprep.subr.bf16.mxu1 %v5242_v50  ;;  %v110_v35 = vmax.f32 %v77_v23, %v94_v26  ;;  %240 = vst [vmem:[#allocation2 + $0xf1] sm:$0xff] %v5687_v34  ;;  %4762 = vmatprep.subr.bf16.mxu0 %v5251_v14  ;;  %v153_v43 = vmax.f32 %v120_v39, %v137_v61  ;;  %v5776_v32 = vld [vmem:[#allocation2 + $0xc2] sm:$0xff]  ;;  %v95_v61 = vld [vmem:[#allocation4 + $0xf8] sm:$0xff] }
  0x70   :  { %v5691_v48 = vld [vmem:[#allocation2 + $0xd0] sm:$0xff]  ;;  %v5705_v57 = vmax.f32 %v110_v35, %v160_v44  ;;  %v5723_v7 = vld [vmem:[#allocation2 + $0xe0] sm:$0xff]  ;;  %v87_v35 = vld [vmem:[#allocation4 + $0xb8] sm:$0xff] }
  0x71   :  { %4737 = vmatpush3.bf16.msra.mxu1 %v5242_v50  ;;  %v5697_v50 = vpack.c.bf16 %v5687_v34, %v5685_v31  ;;  %v5701_v51 = vpack.c.bf16 %v5691_v48, %v5689_v42  ;;  %v5736_v22 = vld [vmem:[#allocation2 + $0x100] sm:$0xff]  ;;  %v103_v36 = vmax.f32 %v70_v30, %v87_v35  ;;  %v5759_v44 = vld [vmem:[#allocation2 + $0x72] sm:$0xff]  ;;  %v5263_v42 = vld [vmem:[#allocation7 + $0x108] sm:$0xff]  }
  0x72   :  { %4738 = vmatprep.subr.bf16.mxu1 %v5244_v59  ;;  %242 = vst [vmem:[#allocation2 + $0x111] sm:$0xff] %v5705_v57  ;;  %v5257_v35 = vld [vmem:[#allocation7 + $0x120] sm:$0xff]   ;;  %v5278_v31 = vld [vmem:[#allocation7 + $0x1d0] sm:$0xff]  }
  0x73   :  { %4662 = vmatprep.mubr.bf16.mxu0 %v5697_v50  ;;  %v5780_v39 = vld [vmem:[#allocation2 + $0xe2] sm:$0xff] }
  0x74   :  { %4691 = vmatmul.mubr.bf16.gmra.mxu1 %v5701_v51 }
  0x75   :  { %4739 = vmatpush3.bf16.msra.mxu1 %v5244_v59  ;;  %v5713_v59 = vpack.c.bf16 %v5705_v57, %v5703_v52  ;;  %v5725_v12 = vld [vmem:[#allocation2 + $0xf0] sm:$0xff] }
  0x76   :  { %4740 = vmatprep.subr.bf16.mxu1 %v5246_v8 }
  0x77   :  { %4663 = vmatmul.mubr.bf16.gmra.mxu0 %v5713_v59 }
  0x78   :  { %4714 = vmatprep.mubr.bf16.mxu0 %v631_v4  ;;  %v5769_v4 = vpack.c.bf16 %v5759_v44, %v5756_v10 }
  0x79   :  { %4741 = vmatpush3.bf16.msra.mxu1 %v5246_v8  ;;  %v5729_v8 = vpack.c.bf16 %v5725_v12, %v5723_v7  ;;  %v5738_v23 = vld [vmem:[#allocation2 + $0x110] sm:$0xff] }
  0x7a   :  { %4742 = vmatprep.subr.bf16.mxu1 %v5248_v58  ;;  %v5748_v26 = vpack.c.bf16 %v5738_v23, %v5736_v22  ;;  %v5804_v20 = vld [vmem:[#allocation2 + $0x112] sm:$0xff] }
  0x7b   :  { %4694 = vmatprep.mubr.bf16.mxu1 %v5729_v8 }
  0x7c   :  { %4695 = vmatmul.mubr.bf16.gmra.mxu1 %v5748_v26 }
  0x7d   :  { %4743 = vmatpush3.bf16.msra.mxu1 %v5248_v58  ;;  %4746 = vmatprep.mubr.bf16.mxu1 %v833_v25  ;;  %v5761_v58 = vmax.f32 %v103_v36, %v153_v43  ;;  %v835_v25 = vpack.c.bf16 %v5658_v49, %v5650_v40  ;;  %v5778_v36 = vld [vmem:[#allocation2 + $0xd2] sm:$0xff] }
  0x7e   :  { %4744 = vmatprep.subr.bf16.mxu1 %v5250_v3  ;;  %v5782_v40 = vld [vmem:[#allocation2 + $0xf2] sm:$0xff]  ;;  %v1242_v56 = vpack.c.bf16 %v5780_v39, %v5778_v36 }
  0x7f   :  { %4715 = vmatmul.mubr.bf16.vlgmr.msra.gmra.mxu0 %v5742_v24  ;;  %235 = vst [vmem:[#allocation2 + $0x81] sm:$0xff] %v5761_v58  ;;  %v78_v49 = vld [vmem:[#allocation4 + $0x78] sm:$0xff]  ;;  %v1038_v38 = vpack.c.bf16 %v5761_v58, %v5637_v17  ;;  %v5274_v17 = vld [vmem:[#allocation7 + $0x1e0] sm:$0xff]  }
  0x80   :  { %4763 = vmatpush3.bf16.msra.mxu0 %v5251_v14  ;;  %4718 = vmatprep.mubr.bf16.mxu0 %v5752_v27  ;;  %v5254_v14 = vld [vmem:[#allocation7 + $0x170] sm:$0xff]  }
  0x81   :  { %4745 = vmatpush3.bf16.msra.mxu1 %v5250_v3  ;;  %4764 = vmatprep.subr.bf16.mxu0 %v5253_v29  ;;  %v5765_v3 = vld [vmem:[#allocation2 + $0xb2] sm:$0xff] }
  0x82   :  { %4794 = vmatprep.subr.bf16.mxu1 %v5252_v15  ;;  %v635_v30 = vpack.c.bf16 %v5765_v3, %v623_v0  ;;  %v145_v0 = vld [vmem:[#allocation4 + $0x1f8] sm:$0xff]  ;;  %v1241_v41 = vpack.c.bf16 %v5776_v32, %v5765_v3  ;;  %v5281_v3 = vld [vmem:[#allocation7 + $0x180] sm:$0xff]  }
  0x84   :  { %4765 = vmatpush3.bf16.msra.mxu0 %v5253_v29  ;;  %4747 = vmatmul.mubr.bf16.vlgmr.msra.gmra.mxu1 %v834_v60  ;;  %v5259_v29 = vld [vmem:[#allocation7 + $0x118] sm:$0xff]  }
  0x85   :  { %4766 = vmatprep.subr.bf16.mxu0 %v5255_v47  ;;  %4795 = vmatpush3.bf16.msra.mxu1 %v5252_v15  ;;  %v111_v15 = vmax.f32 %v78_v49, %v95_v61  ;;  %v128_v60 = vld [vmem:[#allocation4 + $0x178] sm:$0xff]  ;;  %v5796_v49 = vpack.c.bf16 %v5782_v40, %v5780_v39 }
  0x86   :  { %4796 = vmatprep.subr.bf16.mxu1 %v5254_v14  ;;  %4750 = vmatprep.mubr.bf16.mxu1 %v835_v25  ;;  %v5784_v43 = vld [vmem:[#allocation2 + $0x80] sm:$0xff]  ;;  %v5790_v25 = vpack.c.bf16 %v5778_v36, %v5776_v32  ;;  %v1627_v36 = vld [vmem:[#allocation2 + $0x31] sm:$0xff] }
  0x87   :  { %4719 = vmatmul.mubr.bf16.gmra.mxu0 %v5769_v4  ;;  %v836_v19 = vpack.c.bf16 %v5784_v43, %v5664_v53  ;;  %v5260_v53 = vld [vmem:[#allocation7 + $0x158] sm:$0xff]  }
  0x88   :  { %4767 = vmatpush3.bf16.msra.mxu0 %v5255_v47  ;;  %4722 = vmatprep.mubr.bf16.mxu0 %v635_v30  ;;  %v161_v47 = vmax.f32 %v128_v60, %v145_v0  ;;  %v5258_v30 = vld [vmem:[#allocation7 + $0x160] sm:$0xff]   ;;  %v5283_v39 = vld [vmem:[#allocation7 + $0x238] sm:$0xff]  }
  0x89   :  { %4768 = vmatprep.subr.bf16.mxu0 %v5257_v35  ;;  %4797 = vmatpush3.bf16.msra.mxu1 %v5254_v14  ;;  %v5261_v14 = vld [vmem:[#allocation7 + $0x110] sm:$0xff]   ;;  %v5801_v60 = vld [vmem:[#allocation2 + $0x102] sm:$0xff] }
  0x8a   :  { %4798 = vmatprep.subr.bf16.mxu1 %v5256_v11  ;;  %v5798_v61 = vmax.f32 %v111_v15, %v161_v47  ;;  %v1237_v15 = vpack.c.bf16 %v5718_v6, %v5715_v63  ;;  %v5266_v0 = vld [vmem:[#allocation7 + $0x140] sm:$0xff]   ;;  %v5269_v47 = vld [vmem:[#allocation7 + $0x1b0] sm:$0xff]   ;;  %v1238_v63 = vpack.c.bf16 %v5731_v18, %v5721_v2  ;;  %v5271_v6 = vld [vmem:[#allocation7 + $0x1a8] sm:$0xff]  }
  0x8b   :  { %v5272_v2 = vld [vmem:[#allocation7 + $0x1e8] sm:$0xff]  }
  0x8c   :  { %4769 = vmatpush3.bf16.msra.mxu0 %v5257_v35  ;;  %4751 = vmatmul.mubr.bf16.gmra.mxu1 %v836_v19  ;;  %243 = vst [vmem:[#allocation2 + $0x121] sm:$0xff] %v5798_v61  ;;  %v838_v19 = vpack.c.bf16 %v5723_v7, %v5691_v48  ;;  %v5811_v35 = vpack.c.bf16 %v5804_v20, %v5801_v60  ;;  %v5264_v7 = vld [vmem:[#allocation7 + $0x148] sm:$0xff]  }
  0x8d   :  { %4770 = vmatprep.subr.bf16.mxu0 %v5259_v29  ;;  %4799 = vmatpush3.bf16.msra.mxu1 %v5256_v11  ;;  %v5262_v11 = vld [vmem:[#allocation7 + $0x150] sm:$0xff]  }
  0x8e   :  { %4800 = vmatprep.subr.bf16.mxu1 %v5258_v30  ;;  %4754 = vmatprep.mubr.bf16.mxu1 %v837_v9  ;;  %v839_v9 = vpack.c.bf16 %v5736_v22, %v5725_v12  ;;  %v5267_v22 = vld [vmem:[#allocation7 + $0x1b8] sm:$0xff]  }
  0x8f   :  { %4723 = vmatmul.mubr.bf16.gmra.mxu0 %v5790_v25 }
  0x90   :  { %4771 = vmatpush3.bf16.msra.mxu0 %v5259_v29  ;;  %4726 = vmatprep.mubr.bf16.mxu0 %v5796_v49  ;;  %v5265_v29 = vld [vmem:[#allocation7 + $0x100] sm:$0xff]  }
  0x91   :  { %4772 = vmatprep.subr.bf16.mxu0 %v5261_v14  ;;  %4801 = vmatpush3.bf16.msra.mxu1 %v5258_v30  ;;  %v5270_v30 = vld [vmem:[#allocation7 + $0x1f0] sm:$0xff]  }
  0x92   :  { %4802 = vmatprep.subr.bf16.mxu1 %v5260_v53 }
  0x93   :  { %v5816_v48 = vld [vmem:[#allocation2 + $0x120] sm:$0xff] }
  0x94   :  { %4773 = vmatpush3.bf16.msra.mxu0 %v5261_v14  ;;  %4755 = vmatmul.mubr.bf16.gmra.mxu1 %v838_v19  ;;  %v840_v12 = vpack.c.bf16 %v5816_v48, %v5738_v23  ;;  %v1239_v23 = vpack.c.bf16 %v5756_v10, %v5733_v21  ;;  %v5275_v21 = vld [vmem:[#allocation7 + $0x198] sm:$0xff]   ;;  %v5277_v10 = vld [vmem:[#allocation7 + $0x190] sm:$0xff]   ;;  %v1424_v19 = vld [vmem:[#allocation2 + $0x20] sm:$0xff] }
  0x95   :  { %4774 = vmatprep.subr.bf16.mxu0 %v5263_v42  ;;  %4803 = vmatpush3.bf16.msra.mxu1 %v5260_v53  ;;  %v1041_v53 = vpack.c.bf16 %v5703_v52, %v5687_v34  ;;  %v5276_v14 = vld [vmem:[#allocation7 + $0x1d8] sm:$0xff]   ;;  %v1243_v34 = vpack.c.bf16 %v5801_v60, %v5782_v40  ;;  %v1042_v52 = vpack.c.bf16 %v5798_v61, %v5705_v57  ;;  %v5855_v32 = vld [vmem:[#allocation2 + $0x122] sm:$0xff] }
  0x96   :  { %4804 = vmatprep.subr.bf16.mxu1 %v5262_v11  ;;  %4758 = vmatprep.mubr.bf16.mxu1 %v839_v9  ;;  %v5280_v9 = vld [vmem:[#allocation7 + $0x1c8] sm:$0xff]   ;;  %v1244_v57 = vpack.c.bf16 %v5855_v32, %v5804_v20  ;;  %v5282_v40 = vld [vmem:[#allocation7 + $0x1c0] sm:$0xff]  }
  0x97   :  { %4727 = vmatmul.mubr.bf16.gmra.mxu0 %v5811_v35 }
  0x98   :  { %4775 = vmatpush3.bf16.msra.mxu0 %v5263_v42  ;;  %4778 = vmatprep.mubr.bf16.mxu0 %v1035_v45  ;;  %v6894_v45 = vpack.c.bf16 %v5629_v13, %v5619_v5  ;;  %v5273_v5 = vld [vmem:[#allocation7 + $0x1a0] sm:$0xff]   ;;  %v1425_v42 = vld [vmem:[#allocation2 + $0x30] sm:$0xff] }
  0x99   :  { %4776 = vmatprep.subr.bf16.mxu0 %v5265_v29  ;;  %4805 = vmatpush3.bf16.msra.mxu1 %v5262_v11  ;;  %v5839_v13 = vld [vmem:[#allocation2 + $0x82] sm:$0xff]  ;;  %v1440_v11 = vpack.c.bf16 %v1425_v42, %v1424_v19 }
  0x9a   :  { %4806 = vmatprep.subr.bf16.mxu1 %v5264_v7  ;;  %v1240_v18 = vpack.c.bf16 %v5839_v13, %v5759_v44  ;;  %v5279_v44 = vld [vmem:[#allocation7 + $0x188] sm:$0xff]  }
  0x9c   :  { %4777 = vmatpush3.bf16.msra.mxu0 %v5265_v29  ;;  %4759 = vmatmul.mubr.bf16.gmra.mxu1 %v840_v12  ;;  %v1626_v29 = vld [vmem:[#allocation2 + $0x21] sm:$0xff]  ;;  %v1431_v12 = vld [vmem:[#allocation2 + $0x90] sm:$0xff] }
  0x9d   :  { %4826 = vmatprep.subr.bf16.mxu0 %v5267_v22  ;;  %4807 = vmatpush3.bf16.msra.mxu1 %v5264_v7  ;;  %v1642_v60 = vpack.c.bf16 %v1627_v36, %v1626_v29  ;;  %v5284_v7 = vld [vmem:[#allocation7 + $0x230] sm:$0xff]   ;;  %v1443_v20 = vpack.c.bf16 %v1431_v12, %v5784_v43 }
  0x9e   :  { %4810 = vmatprep.mubr.bf16.mxu1 %v1237_v15  ;;  %4808 = vmatprep.subr.bf16.mxu1 %v5266_v0  ;;  %v5286_v15 = vld [vmem:[#allocation7 + $0x220] sm:$0xff]   ;;  %v1439_v43 = vld [vmem:[#allocation2 + $0x130] sm:$0xff] }
  0x9f   :  { %4779 = vmatmul.mubr.bf16.vlgmr.msra.gmra.mxu0 %v6893_v28 }
  0xa0   :  { %4827 = vmatpush3.bf16.msra.mxu0 %v5267_v22  ;;  %4782 = vmatprep.mubr.bf16.mxu0 %v6894_v45  ;;  %v5285_v22 = vld [vmem:[#allocation7 + $0x228] sm:$0xff]  }
  0xa1   :  { %4828 = vmatprep.subr.bf16.mxu0 %v5269_v47  ;;  %4809 = vmatpush3.bf16.msra.mxu1 %v5266_v0  ;;  %v1633_v0 = vld [vmem:[#allocation2 + $0x91] sm:$0xff] }
  0xa2   :  { %4858 = vmatprep.subr.bf16.mxu1 %v5268_v37 }
  0xa4   :  { %4829 = vmatpush3.bf16.msra.mxu0 %v5269_v47  ;;  %4811 = vmatmul.mubr.bf16.vlgmr.msra.gmra.mxu1 %v1238_v63  ;;  %v5287_v47 = vld [vmem:[#allocation7 + $0x218] sm:$0xff]  }
  0xa5   :  { %4830 = vmatprep.subr.bf16.mxu0 %v5271_v6  ;;  %4859 = vmatpush3.bf16.msra.mxu1 %v5268_v37 }
  0xa6   :  { %4814 = vmatprep.mubr.bf16.mxu1 %v1239_v23  ;;  %4860 = vmatprep.subr.bf16.mxu1 %v5270_v30 }
  0xa7   :  { %4783 = vmatmul.mubr.bf16.gmra.mxu0 %v1038_v38 }
  0xa8   :  { %4831 = vmatpush3.bf16.msra.mxu0 %v5271_v6  ;;  %4786 = vmatprep.mubr.bf16.mxu0 %v1039_v62 }
  0xa9   :  { %4832 = vmatprep.subr.bf16.mxu0 %v5273_v5  ;;  %4861 = vmatpush3.bf16.msra.mxu1 %v5270_v30 }
  0xaa   :  { %4862 = vmatprep.subr.bf16.mxu1 %v5272_v2 }
  0xac   :  { %4833 = vmatpush3.bf16.msra.mxu0 %v5273_v5  ;;  %4815 = vmatmul.mubr.bf16.gmra.mxu1 %v1240_v18 }
  0xad   :  { %4834 = vmatprep.subr.bf16.mxu0 %v5275_v21  ;;  %4863 = vmatpush3.bf16.msra.mxu1 %v5272_v2 }
  0xae   :  { %4818 = vmatprep.mubr.bf16.mxu1 %v1241_v41  ;;  %4864 = vmatprep.subr.bf16.mxu1 %v5274_v17 }
  0xaf   :  { %4787 = vmatmul.mubr.bf16.gmra.mxu0 %v1040_v54 }
  0xb0   :  { %4835 = vmatpush3.bf16.msra.mxu0 %v5275_v21  ;;  %4790 = vmatprep.mubr.bf16.mxu0 %v1041_v53 }
  0xb1   :  { %4836 = vmatprep.subr.bf16.mxu0 %v5277_v10  ;;  %4865 = vmatpush3.bf16.msra.mxu1 %v5274_v17 }
  0xb2   :  { %4866 = vmatprep.subr.bf16.mxu1 %v5276_v14 }
  0xb4   :  { %4837 = vmatpush3.bf16.msra.mxu0 %v5277_v10  ;;  %4819 = vmatmul.mubr.bf16.gmra.mxu1 %v1242_v56 }
  0xb5   :  { %4838 = vmatprep.subr.bf16.mxu0 %v5279_v44  ;;  %4867 = vmatpush3.bf16.msra.mxu1 %v5276_v14 }
  0xb6   :  { %4822 = vmatprep.mubr.bf16.mxu1 %v1243_v34  ;;  %4868 = vmatprep.subr.bf16.mxu1 %v5278_v31 }
  0xb7   :  { %4791 = vmatmul.mubr.bf16.gmra.mxu0 %v1042_v52 }
  0xb8   :  { %4839 = vmatpush3.bf16.msra.mxu0 %v5279_v44  ;;  %4842 = vmatprep.mubr.bf16.mxu0 %v1440_v11 }
  0xb9   :  { %4840 = vmatprep.subr.bf16.mxu0 %v5281_v3  ;;  %4869 = vmatpush3.bf16.msra.mxu1 %v5278_v31 }
  0xba   :  { %4870 = vmatprep.subr.bf16.mxu1 %v5280_v9 }
  0xbc   :  { %4841 = vmatpush3.bf16.msra.mxu0 %v5281_v3  ;;  %4823 = vmatmul.mubr.bf16.gmra.mxu1 %v1244_v57 }
  0xbd   :  { %4890 = vmatprep.subr.bf16.mxu0 %v5283_v39  ;;  %4871 = vmatpush3.bf16.msra.mxu1 %v5280_v9 }
  0xbe   :  { %4874 = vmatprep.mubr.bf16.mxu1 %v1642_v60  ;;  %4872 = vmatprep.subr.bf16.mxu1 %v5282_v40 }
  0xbf   :  { %4843 = vmatmul.mubr.bf16.vlgmr.msra.gmra.mxu0 %v5656_v46  ;;  %v1645_v46 = vpack.c.bf16 %v1633_v0, %v5761_v58  ;;  %v1641_v58 = vld [vmem:[#allocation2 + $0x131] sm:$0xff] }
  0xc0   :  { %4891 = vmatpush3.bf16.msra.mxu0 %v5283_v39  ;;  %4846 = vmatprep.mubr.bf16.mxu0 %v5670_v55  ;;  %v5288_v55 = vld [vmem:[#allocation7 + $0x210] sm:$0xff]  }
  0xc1   :  { %4892 = vmatprep.subr.bf16.mxu0 %v5284_v7  ;;  %4873 = vmatpush3.bf16.msra.mxu1 %v5282_v40 }
  0xc4   :  { %4893 = vmatpush3.bf16.msra.mxu0 %v5284_v7  ;;  %4875 = vmatmul.mubr.bf16.vlgmr.msra.gmra.mxu1 %v5635_v16  ;;  %v5289_v16 = vld [vmem:[#allocation7 + $0x208] sm:$0xff]  }
  0xc5   :  { %4894 = vmatprep.subr.bf16.mxu0 %v5285_v22  ;;  %4878 = vmatprep.mubr.bf16.mxu1 %v5648_v33  ;;  %v1447_v33 = vpack.c.bf16 %v1439_v43, %v5816_v48 }
  0xc7   :  { %4847 = vmatmul.mubr.bf16.gmra.mxu0 %v1443_v20 }
  0xc8   :  { %4895 = vmatpush3.bf16.msra.mxu0 %v5285_v22  ;;  %4850 = vmatprep.mubr.bf16.mxu0 %v5701_v51  ;;  %v5290_v51 = vld [vmem:[#allocation7 + $0x200] sm:$0xff]  }
  0xc9   :  { %4896 = vmatprep.subr.bf16.mxu0 %v5286_v15 }
  0xcc   :  { %4897 = vmatpush3.bf16.msra.mxu0 %v5286_v15  ;;  %4879 = vmatmul.mubr.bf16.gmra.mxu1 %v1645_v46 }
  0xcd   :  { %4898 = vmatprep.subr.bf16.mxu0 %v5287_v47  ;;  %4882 = vmatprep.mubr.bf16.mxu1 %v5679_v1  ;;  %v1649_v1 = vpack.c.bf16 %v1641_v58, %v5798_v61 }
  0xcf   :  { %4851 = vmatmul.mubr.bf16.gmra.mxu0 %v5729_v8  ;;  %v1835_v8 = vld [vmem:[#allocation2 + $0x92] sm:$0xff] }
  0xd0   :  { %4899 = vmatpush3.bf16.msra.mxu0 %v5287_v47  ;;  %4854 = vmatprep.mubr.bf16.mxu0 %v5748_v26  ;;  %v1847_v26 = vpack.c.bf16 %v1835_v8, %v5839_v13 }
  0xd1   :  { %4900 = vmatprep.subr.bf16.mxu0 %v5288_v55 }
  0xd4   :  { %4901 = vmatpush3.bf16.msra.mxu0 %v5288_v55  ;;  %4883 = vmatmul.mubr.bf16.gmra.mxu1 %v5697_v50  ;;  %v1843_v50 = vld [vmem:[#allocation2 + $0x132] sm:$0xff] }
  0xd5   :  { %4902 = vmatprep.subr.bf16.mxu0 %v5289_v16  ;;  %4886 = vmatprep.mubr.bf16.mxu1 %v5713_v59  ;;  %v1851_v59 = vpack.c.bf16 %v1843_v50, %v5855_v32 }
  0xd7   :  { %4855 = vmatmul.mubr.bf16.gmra.mxu0 %v1447_v33 }
  0xd8   :  { %4903 = vmatpush3.bf16.msra.mxu0 %v5289_v16  ;;  %4906 = vmatprep.mubr.bf16.mxu0 %v5742_v24 }
  0xd9   :  { %4904 = vmatprep.subr.bf16.mxu0 %v5290_v51 }
  0xdc   :  { %4905 = vmatpush3.bf16.msra.mxu0 %v5290_v51  ;;  %4887 = vmatmul.mubr.bf16.gmra.mxu1 %v1649_v1 }
  0xdf   :  { %4907 = vmatmul.mubr.bf16.vlgmr.msra.gmra.mxu0 %v5752_v27 }
  0xe0   :  { %4910 = vmatprep.mubr.bf16.mxu0 %v5769_v4 }
  0xe7   :  { %4911 = vmatmul.mubr.bf16.gmra.mxu0 %v1847_v26 }
  0xe8   :  { %4914 = vmatprep.mubr.bf16.mxu0 %v5790_v25 }
  0xef   :  { %4915 = vmatmul.mubr.bf16.gmra.mxu0 %v5796_v49 }
  0xf0   :  { %4918 = vmatprep.mubr.bf16.mxu0 %v5811_v35 }
  0xf7   :  { %4919 = vmatmul.mubr.bf16.gmra.mxu0 %v1851_v59 }
 0x109   :  { %v4652_v24 = vpop.f32.mrf.mxu0 }
 0x10b   :  { %v407_v27 = vpop.f32.mrf.mxu0 }
 0x10d   :  { %v4653_v37 = vpop.f32.mrf.mxu0 }
 0x10f   :  { %v5881_v6 = vpop.f32.mrf.mxu0 }
 0x11e   :  { %v4656_v49 = vpop.f32.mrf.mxu0 }
 0x120   :  { %v423_v23 = vpop.f32.mrf.mxu0 }
 0x122   :  { %v4657_v38 = vpop.f32.mrf.mxu0 }
 0x124   :  { %v4684_v61 = vpop.f32.mrf.mxu1  ;;  %v5885_v13 = vpop.f32.mrf.mxu0 }
 0x125   :  { %v561_v48 = vadd.f32 %v4684_v61, %v4652_v24 }
 0x126   :  { %v552_v28 = vpop.f32.mrf.mxu1 }
 0x127   :  { %v553_v4 = vadd.f32 %v552_v28, %v407_v27 }
 0x128   :  { %v4685_v45 = vpop.f32.mrf.mxu1 }
 0x129   :  { %v564_v63 = vadd.f32 %v4685_v45, %v4653_v37 }
 0x12a   :  { %v5883_v25 = vpop.f32.mrf.mxu1 }
 0x12b   :  { %v4660_v17 = vpop.f32.mrf.mxu0 }
 0x12c   :  { %v4688_v35 = vpop.f32.mrf.mxu1 }
 0x12d   :  { %v577_v30 = vadd.f32 %v4688_v35, %v4656_v49  ;;  %v439_v41 = vpop.f32.mrf.mxu0 }
 0x12e   :  { %v568_v62 = vpop.f32.mrf.mxu1 }
 0x12f   :  { %v569_v5 = vadd.f32 %v568_v62, %v423_v23  ;;  %v4661_v54 = vpop.f32.mrf.mxu0 }
 0x130   :  { %v4689_v2 = vpop.f32.mrf.mxu1 }
 0x131   :  { %v580_v18 = vadd.f32 %v4689_v2, %v4657_v38  ;;  %v5889_v14 = vpop.f32.mrf.mxu0 }
 0x132   :  { %v5887_v21 = vpop.f32.mrf.mxu1 }
 0x134   :  { %v4692_v10 = vpop.f32.mrf.mxu1 }
 0x135   :  { %v593_v53 = vadd.f32 %v4692_v10, %v4660_v17 }
 0x136   :  { %v584_v44 = vpop.f32.mrf.mxu1 }
 0x137   :  { %v585_v19 = vadd.f32 %v584_v44, %v439_v41  ;;  %v4664_v42 = vpop.f32.mrf.mxu0 }
 0x138   :  { %v4693_v56 = vpop.f32.mrf.mxu1 }
 0x139   :  { %v596_v31 = vadd.f32 %v4693_v56, %v4661_v54  ;;  %v455_v34 = vpop.f32.mrf.mxu0 }
 0x13a   :  { %v5891_v52 = vpop.f32.mrf.mxu1 }
 0x13b   :  { %v4665_v3 = vpop.f32.mrf.mxu0 }
 0x13c   :  { %v4696_v11 = vpop.f32.mrf.mxu1 }
 0x13d   :  { %v5893_v32 = vpop.f32.mrf.mxu0  ;;  %v609_v9 = vadd.f32 %v4696_v11, %v4664_v42 }
 0x13e   :  { %v600_v36 = vpop.f32.mrf.mxu1 }
 0x13f   :  { %v4716_v29 = vpop.f32.mrf.mxu0  ;;  %v601_v57 = vadd.f32 %v600_v36, %v455_v34 }
 0x140   :  { %v803_v39 = vadd.f32 %v4716_v29, %v561_v48  ;;  %v4697_v60 = vpop.f32.mrf.mxu1 }
 0x141   :  { %v738_v40 = vpop.f32.mrf.mxu0  ;;  %v612_v12 = vadd.f32 %v4697_v60, %v4665_v3 }
 0x142   :  { %v5895_v7 = vadd.f32 %v738_v40, %v553_v4  ;;  %v5897_v20 = vpop.f32.mrf.mxu1 }
 0x143   :  { %v4717_v22 = vpop.f32.mrf.mxu0 }
 0x144   :  { %v5899_v15 = vadd.f32 %v4717_v22, %v564_v63  ;;  %v4748_v47 = vpop.f32.mrf.mxu1 }
 0x145   :  { %v5901_v0 = vpop.f32.mrf.mxu0  ;;  %v1005_v46 = vadd.f32 %v4748_v47, %v803_v39 }
 0x146   :  { %v5903_v43 = vpop.f32.mrf.mxu1 }
 0x147   :  { %v4720_v55 = vpop.f32.mrf.mxu0 }
 0x148   :  { %v807_v16 = vadd.f32 %v4720_v55, %v577_v30  ;;  %v5905_v51 = vpop.f32.mrf.mxu1 }
 0x149   :  { %v754_v33 = vpop.f32.mrf.mxu0 }
 0x14a   :  { %v5907_v58 = vadd.f32 %v754_v33, %v569_v5  ;;  %v5909_v8 = vpop.f32.mrf.mxu1 }
 0x14b   :  { %v4721_v1 = vpop.f32.mrf.mxu0 }
 0x14c   :  { %v5911_v26 = vadd.f32 %v4721_v1, %v580_v18  ;;  %v4752_v59 = vpop.f32.mrf.mxu1 }
 0x14d   :  { %v5913_v50 = vpop.f32.mrf.mxu0  ;;  %v1009_v24 = vadd.f32 %v4752_v59, %v807_v16 }
 0x14e   :  { %v5915_v48 = vpop.f32.mrf.mxu1 }
 0x14f   :  { %v4724_v61 = vpop.f32.mrf.mxu0 }
 0x150   :  { %v811_v27 = vadd.f32 %v4724_v61, %v593_v53  ;;  %v5917_v4 = vpop.f32.mrf.mxu1 }
 0x151   :  { %v770_v28 = vpop.f32.mrf.mxu0 }
 0x152   :  { %v5919_v37 = vadd.f32 %v770_v28, %v585_v19  ;;  %v5921_v63 = vpop.f32.mrf.mxu1 }
 0x153   :  { %v4725_v45 = vpop.f32.mrf.mxu0 }
 0x154   :  { %v5923_v49 = vadd.f32 %v4725_v45, %v596_v31  ;;  %v4756_v35 = vpop.f32.mrf.mxu1 }
 0x155   :  { %v5925_v23 = vpop.f32.mrf.mxu0  ;;  %v1013_v30 = vadd.f32 %v4756_v35, %v811_v27 }
 0x156   :  { %6895 = vst [vmem:[#allocation14_spill] sm:$0xff] %v5923_v49  ;;  %v5927_v62 = vpop.f32.mrf.mxu1 }
 0x157   :  { %v4728_v38 = vpop.f32.mrf.mxu0 }
 0x158   :  { %v815_v5 = vadd.f32 %v4728_v38, %v609_v9  ;;  %v5929_v18 = vpop.f32.mrf.mxu1 }
 0x159   :  { %v786_v2 = vpop.f32.mrf.mxu0  ;;  %6896 = vst [vmem:[#allocation15_spill] sm:$0xff] %v5929_v18  ;;  %v5297_v18 = vld [vmem:[#allocation9 + $0x60] sm:$0xff]  }
 0x15a   :  { %v5931_v17 = vadd.f32 %v786_v2, %v601_v57  ;;  %v5933_v54 = vpop.f32.mrf.mxu1 }
 0x15b   :  { %v4729_v41 = vpop.f32.mrf.mxu0 }
 0x15c   :  { %6897 = vst [vmem:[#allocation16_spill] sm:$0xff] %v5931_v17  ;;  %v5935_v10 = vadd.f32 %v4729_v41, %v612_v12  ;;  %v4760_v44 = vpop.f32.mrf.mxu1  ;;  %v5295_v17 = vld [vmem:[#allocation9 + $0x68] sm:$0xff]  }
 0x15d   :  { %v5937_v53 = vpop.f32.mrf.mxu0  ;;  %v1017_v19 = vadd.f32 %v4760_v44, %v815_v5 }
 0x15e   :  { %6898 = vst [vmem:[#allocation17_spill] sm:$0xff] %v5935_v10  ;;  %6899 = vst [vmem:[#allocation18_spill] sm:$0xff] %v5937_v53  ;;  %v5939_v42 = vpop.f32.mrf.mxu1 }
 0x15f   :  { %6900 = vst [vmem:[#allocation19_spill] sm:$0xff] %v5939_v42  ;;  %v4780_v56 = vpop.f32.mrf.mxu0  ;;  %v5292_v42 = vld [vmem:[#allocation9 + $0x38] sm:$0xff]  }
 0x160   :  { %v5941_v31 = vadd.f32 %v4780_v56, %v1005_v46  ;;  %v5943_v34 = vpop.f32.mrf.mxu1  ;;  %4954 = vmatprep.subr.bf16.mxu0 %v5292_v42 }
 0x161   :  { %6901 = vst [vmem:[#allocation20_spill] sm:$0xff] %v5943_v34  ;;  %v5945_v3 = vpop.f32.mrf.mxu0  ;;  %4955 = vmatpush3.bf16.msra.mxu0 %v5292_v42 }
 0x162   :  { %v5947_v11 = vpop.f32.mrf.mxu1 }
 0x163   :  { %6902 = vst [vmem:[#allocation21_spill] sm:$0xff] %v5947_v11  ;;  %v5949_v9 = vpop.f32.mrf.mxu0 }
 0x164   :  { %v5951_v29 = vpop.f32.mrf.mxu1 }
 0x165   :  { %v5953_v36 = vpop.f32.mrf.mxu0 }
 0x166   :  { %v5955_v39 = vpop.f32.mrf.mxu1 }
 0x167   :  { %v4784_v57 = vpop.f32.mrf.mxu0 }
 0x168   :  { %v5957_v40 = vadd.f32 %v4784_v57, %v1009_v24  ;;  %v5959_v60 = vpop.f32.mrf.mxu1 }
 0x169   :  { %v5961_v12 = vpop.f32.mrf.mxu0 }
 0x16a   :  { %v5963_v22 = vpop.f32.mrf.mxu1 }
 0x16b   :  { %v5965_v47 = vpop.f32.mrf.mxu0 }
 0x16c   :  { %v5967_v46 = vpop.f32.mrf.mxu1 }
 0x16d   :  { %v5969_v55 = vpop.f32.mrf.mxu0 }
 0x16e   :  { %v5971_v16 = vpop.f32.mrf.mxu1 }
 0x16f   :  { %v4788_v33 = vpop.f32.mrf.mxu0 }
 0x170   :  { %v5973_v1 = vadd.f32 %v4788_v33, %v1013_v30  ;;  %v5975_v59 = vpop.f32.mrf.mxu1 }
 0x171   :  { %v5977_v24 = vpop.f32.mrf.mxu0 }
 0x172   :  { %6903 = vst [vmem:[#allocation22_spill] sm:$0xff] %v5973_v1  ;;  %v5979_v61 = vpop.f32.mrf.mxu1  ;;  %v5293_v1 = vld [vmem:[#allocation9 + $0x70] sm:$0xff]  }
 0x173   :  { %v5981_v27 = vpop.f32.mrf.mxu0 }
 0x174   :  { %6904 = vst [vmem:[#allocation23_spill] sm:$0xff] %v5981_v27  ;;  %v5983_v28 = vpop.f32.mrf.mxu1 }
 0x175   :  { %6905 = vst [vmem:[#allocation24_spill] sm:$0xff] %v5983_v28  ;;  %v5985_v45 = vpop.f32.mrf.mxu0 }
 0x176   :  { %v5987_v35 = vpop.f32.mrf.mxu1 }
 0x177   :  { %6906 = vst [vmem:[#allocation25_spill] sm:$0xff] %v5987_v35  ;;  %v4792_v38 = vpop.f32.mrf.mxu0 }
 0x178   :  { %v5989_v5 = vadd.f32 %v4792_v38, %v1017_v19  ;;  %v5991_v2 = vpop.f32.mrf.mxu1 }
 0x179   :  { %6908 = vst [vmem:[#allocation27_spill] sm:$0xff] %v5991_v2  ;;  %v5993_v30 = vpop.f32.mrf.mxu0 }
 0x17a   :  { %6907 = vst [vmem:[#allocation26_spill] sm:$0xff] %v5989_v5  ;;  %6909 = vst [vmem:[#allocation28_spill] sm:$0xff] %v5993_v30  ;;  %v5995_v41 = vpop.f32.mrf.mxu1 }
 0x17b   :  { %6910 = vst [vmem:[#allocation29_spill] sm:$0xff] %v5995_v41  ;;  %v5997_v44 = vpop.f32.mrf.mxu0 }
 0x17c   :  { %6911 = vst [vmem:[#allocation30_spill] sm:$0xff] %v5997_v44  ;;  %v5999_v56 = vpop.f32.mrf.mxu1 }
 0x17d   :  { %6912 = vst [vmem:[#allocation31_spill] sm:$0xff] %v5999_v56  ;;  %v6001_v57 = vpop.f32.mrf.mxu0 }
 0x17e   :  { %6913 = vst [vmem:[#allocation32_spill] sm:$0xff] %v6001_v57  ;;  %v6003_v33 = vpop.f32.mrf.mxu1  ;;  %v5291_v57 = vld [vmem:[#allocation9 + $0x78] sm:$0xff]  }
 0x17f   :  { %6914 = vst [vmem:[#allocation33_spill] sm:$0xff] %v6003_v33  ;;  %v6005_v34 = vpop.f32.mrf.mxu0  ;;  %4922 = vmatprep.subr.bf16.mxu1 %v5291_v57 }
 0x180   :  { %v6007_v10 = vpop.f32.mrf.mxu1  ;;  %4923 = vmatpush3.bf16.msra.mxu1 %v5291_v57  ;;  %v556_v57 = vadd.f32 %v5883_v25, %v5881_v6  ;;  %v5299_v6 = vld [vmem:[#allocation9 + $0x58] sm:$0xff]   ;;  %v1003_v25 = vadd.f32 %v5903_v43, %v5895_v7  ;;  %v5298_v43 = vld [vmem:[#allocation9 + $0x20] sm:$0xff]  }
 0x181   :  { %6915 = vst [vmem:[#allocation34_spill] sm:$0xff] %v6007_v10  ;;  %v6009_v19 = vpop.f32.mrf.mxu0  ;;  %4924 = vmatprep.subr.bf16.mxu1 %v5293_v1 }
 0x182   :  { %v6011_v38 = vpop.f32.mrf.mxu1 }
 0x183   :  { %6916 = vst [vmem:[#allocation35_spill] sm:$0xff] %v6011_v38  ;;  %v6013_v5 = vpop.f32.mrf.mxu0 }
 0x184   :  { %v6015_v2 = vpop.f32.mrf.mxu1  ;;  %4925 = vmatpush3.bf16.msra.mxu1 %v5293_v1  ;;  %v802_v1 = vadd.f32 %v5901_v0, %v556_v57  ;;  %v572_v0 = vadd.f32 %v5887_v21, %v5885_v13  ;;  %v1006_v13 = vadd.f32 %v5905_v51, %v5899_v15  ;;  %v1007_v21 = vadd.f32 %v5915_v48, %v5907_v58  ;;  %v5300_v58 = vld [vmem:[#allocation9 + $0x18] sm:$0xff]   ;;  %v5303_v48 = vld [vmem:[#allocation9 + $0x48] sm:$0xff]  }
 0x185   :  { %v6017_v30 = vpop.f32.mrf.mxu0  ;;  %4926 = vmatprep.subr.bf16.mxu1 %v5295_v17  ;;  %v1409_v15 = vadd.f32 %v5951_v29, %v5941_v31  ;;  %v1010_v29 = vadd.f32 %v5917_v4, %v5911_v26 }
 0x186   :  { %v6019_v44 = vpop.f32.mrf.mxu1 }
 0x187   :  { %v6021_v56 = vpop.f32.mrf.mxu0 }
 0x188   :  { %v6023_v33 = vpop.f32.mrf.mxu1  ;;  %4927 = vmatpush3.bf16.msra.mxu1 %v5295_v17  ;;  %v1004_v17 = vadd.f32 %v5909_v8, %v802_v1  ;;  %v5301_v8 = vld [vmem:[#allocation9 + $0x50] sm:$0xff]  }
 0x189   :  { %v6025_v28 = vpop.f32.mrf.mxu0  ;;  %4928 = vmatprep.subr.bf16.mxu1 %v5297_v18 }
 0x18a   :  { %v6027_v10 = vpop.f32.mrf.mxu1 }
 0x18b   :  { %v6029_v38 = vpop.f32.mrf.mxu0 }
 0x18c   :  { %6917 = vst [vmem:[#allocation36_spill] sm:$0xff] %v6029_v38  ;;  %v6031_v11 = vpop.f32.mrf.mxu1  ;;  %v5294_v38 = vld [vmem:[#allocation9 + $0x30] sm:$0xff]   ;;  %4929 = vmatpush3.bf16.msra.mxu1 %v5297_v18  ;;  %v1205_v18 = vadd.f32 %v5945_v3, %v1003_v25  ;;  %v1208_v3 = vadd.f32 %v5949_v9, %v1006_v13 }
 0x18d   :  { %6918 = vst [vmem:[#allocation37_spill] sm:$0xff] %v6031_v11  ;;  %v6033_v41 = vpop.f32.mrf.mxu0  ;;  %4956 = vmatprep.subr.bf16.mxu0 %v5294_v38  ;;  %4930 = vmatprep.subr.bf16.mxu1 %v5299_v6 }
 0x18e   :  { %v6037_v35 = vpop.f32.mrf.mxu1  ;;  %4957 = vmatpush3.bf16.msra.mxu0 %v5294_v38  ;;  %v1206_v38 = vadd.f32 %v5953_v36, %v1004_v17  ;;  %v1612_v17 = vadd.f32 %v6005_v34, %v1409_v15  ;;  %v1410_v31 = vadd.f32 %v5959_v60, %v1208_v3  ;;  %v5305_v34 = vld [vmem:[#allocation9 + $0x40] sm:$0xff]  }
 0x18f   :  { %v6035_v27 = vpop.f32.mrf.mxu0  ;;  %6920 = vst [vmem:[#allocation39_spill] sm:$0xff] %v6037_v35  ;;  %v5296_v35 = vld [vmem:[#allocation9 + $0x28] sm:$0xff]   ;;  %v6925_v15 = vld [vmem:[#allocation14_spill] sm:$0xff] }
 0x190   :  { %6919 = vst [vmem:[#allocation38_spill] sm:$0xff] %v6035_v27  ;;  %v6046_v27 = vpop.f32.mrf.mxu1  ;;  %4958 = vmatprep.subr.bf16.mxu0 %v5296_v35  ;;  %4931 = vmatpush3.bf16.msra.mxu1 %v5299_v6  ;;  %v1408_v36 = vadd.f32 %v5963_v22, %v1206_v38  ;;  %v1209_v6 = vadd.f32 %v5961_v12, %v1007_v21 }
 0x191   :  { %v6039_v53 = vpop.f32.mrf.mxu0  ;;  %4932 = vmatprep.subr.bf16.mxu1 %v5301_v8  ;;  %v1011_v12 = vadd.f32 %v5927_v62, %v5919_v37  ;;  %v1212_v38 = vadd.f32 %v5965_v47, %v1010_v29  ;;  %v1814_v4 = vadd.f32 %v6015_v2, %v1612_v17  ;;  %v1413_v47 = vadd.f32 %v5967_v46, %v5957_v40  ;;  %v6931_v17 = vld [vmem:[#allocation19_spill] sm:$0xff] }
 0x192   :  { %6921 = vst [vmem:[#allocation40_spill] sm:$0xff] %v6039_v53  ;;  %v6057_v42 = vpop.f32.mrf.mxu1  ;;  %4959 = vmatpush3.bf16.msra.mxu0 %v5296_v35  ;;  %v1611_v9 = vadd.f32 %v6017_v30, %v1408_v36  ;;  %v1411_v30 = vadd.f32 %v5971_v16, %v1209_v6 }
 0x193   :  { %v6043_v11 = vpop.f32.mrf.mxu0  ;;  %4960 = vmatprep.subr.bf16.mxu0 %v5298_v43  ;;  %v1414_v40 = vadd.f32 %v5975_v59, %v1212_v38  ;;  %v6929_v6 = vld [vmem:[#allocation36_spill] sm:$0xff] }
 0x194   :  { %v6070_v1 = vpop.f32.mrf.mxu1  ;;  %4933 = vmatpush3.bf16.msra.mxu1 %v5301_v8  ;;  %v1813_v60 = vadd.f32 %v6027_v10, %v1611_v9  ;;  %v1614_v62 = vadd.f32 %v6025_v28, %v1411_v30 }
 0x195   :  { %v6048_v49 = vpop.f32.mrf.mxu0  ;;  %4934 = vmatprep.subr.bf16.mxu1 %v5303_v48 }
 0x196   :  { %4961 = vmatpush3.bf16.msra.mxu0 %v5298_v43  ;;  %v6113_v43 = vld [vmem:[#allocation9 + $0xb8] sm:$0xff]  }
 0x197   :  { %v6050_v53 = vpop.f32.mrf.mxu0  ;;  %4962 = vmatprep.subr.bf16.mxu0 %v5300_v58 }
 0x198   :  { %6922 = vst [vmem:[#allocation41_spill] sm:$0xff] %v6050_v53  ;;  %v806_v53 = vadd.f32 %v5913_v50, %v572_v0  ;;  %v1407_v50 = vadd.f32 %v5955_v39, %v1205_v18  ;;  %v588_v39 = vadd.f32 %v5891_v52, %v5889_v14  ;;  %4935 = vmatpush3.bf16.msra.mxu1 %v5303_v48  ;;  %v5304_v18 = vld [vmem:[#allocation9 + $0x8] sm:$0xff]  }
 0x199   :  { %v6059_v57 = vpop.f32.mrf.mxu0  ;;  %4936 = vmatprep.subr.bf16.mxu1 %v5305_v34 }
 0x19a   :  { %6923 = vst [vmem:[#allocation42_spill] sm:$0xff] %v6059_v57  ;;  %v1008_v35 = vadd.f32 %v5921_v63, %v806_v53  ;;  %v1610_v25 = vadd.f32 %v6009_v19, %v1407_v50  ;;  %v6087_v63 = vpop.f32.mrf.mxu1  ;;  %4963 = vmatpush3.bf16.msra.mxu0 %v5300_v58  ;;  %v810_v14 = vadd.f32 %v5925_v23, %v588_v39  ;;  %v6924_v50 = vld [vmem:[#allocation39_spill] sm:$0xff]  ;;  %v6928_v58 = vld [vmem:[#allocation25_spill] sm:$0xff] }
 0x19b   :  { %v6064_v7 = vpop.f32.mrf.mxu0  ;;  %v1613_v19 = vadd.f32 %v6013_v5, %v1410_v31  ;;  %v6932_v31 = vld [vmem:[#allocation23_spill] sm:$0xff] }
 0x19c   :  { %v1210_v22 = vadd.f32 %v5969_v55, %v1008_v35  ;;  %v5302_v55 = vld [vmem:[#allocation9 + $0x10] sm:$0xff]   ;;  %v1812_v0 = vadd.f32 %v6019_v44, %v1610_v25  ;;  %v6102_v37 = vpop.f32.mrf.mxu1  ;;  %4937 = vmatpush3.bf16.msra.mxu1 %v5305_v34  ;;  %v1012_v10 = vadd.f32 %v5933_v54, %v810_v14  ;;  %v5306_v44 = vld [vmem:[#allocation9] sm:$0xff]   ;;  %v604_v54 = vadd.f32 %v5897_v20, %v5893_v32  ;;  %v6934_v34 = vld [vmem:[#allocation37_spill] sm:$0xff] }
 0x19d   :  { %v6072_v57 = vpop.f32.mrf.mxu0  ;;  %4964 = vmatprep.subr.bf16.mxu0 %v5302_v55  ;;  %v1815_v28 = vadd.f32 %v6023_v33, %v1613_v19  ;;  %4986 = vmatprep.subr.bf16.mxu1 %v6113_v43  ;;  %v1616_v33 = vadd.f32 %v6021_v56, %v1413_v47  ;;  %v6927_v20 = vld [vmem:[#allocation18_spill] sm:$0xff]  ;;  %v1617_v25 = vadd.f32 %v6929_v6, %v1414_v40  ;;  %v6935_v19 = vld [vmem:[#allocation40_spill] sm:$0xff]  ;;  %v6940_v40 = vld [vmem:[#allocation27_spill] sm:$0xff] }
 0x19e   :  { %v1412_v26 = vadd.f32 %v5979_v61, %v1210_v22  ;;  %4965 = vmatpush3.bf16.msra.mxu0 %v5302_v55  ;;  %v1213_v61 = vadd.f32 %v5977_v24, %v1011_v12  ;;  %v1214_v46 = vadd.f32 %v5985_v45, %v1012_v10  ;;  %v1784_v24 = vpop.f32.mrf.mxu1  ;;  %v814_v59 = vadd.f32 %v6927_v20, %v604_v54  ;;  %v6930_v22 = vld [vmem:[#allocation16_spill] sm:$0xff]  ;;  %v6933_v12 = vld [vmem:[#allocation29_spill] sm:$0xff] }
 0x19f   :  { %v4908_v51 = vpop.f32.mrf.mxu0  ;;  %4966 = vmatprep.subr.bf16.mxu0 %v5304_v18  ;;  %v1818_v30 = vadd.f32 %v6934_v34, %v1616_v33  ;;  %v6945_v20 = vld [vmem:[#allocation33_spill] sm:$0xff] }
 0x1a0   :  { %v1615_v8 = vadd.f32 %v6033_v41, %v1412_v26  ;;  %v6117_v13 = vadd.f32 %v4908_v51, %v1814_v4  ;;  %v1816_v41 = vadd.f32 %v6924_v50, %v1614_v62  ;;  %v6926_v51 = vld [vmem:[#allocation15_spill] sm:$0xff]  ;;  %v1415_v45 = vadd.f32 %v6928_v58, %v1213_v61  ;;  %v6937_v26 = vld [vmem:[#allocation22_spill] sm:$0xff]  ;;  %v6938_v4 = vld [vmem:[#allocation24_spill] sm:$0xff] }
 0x1a1   :  { %v1951_v53 = vpop.f32.mrf.mxu0  ;;  %v1014_v32 = vadd.f32 %v6926_v51, %v6925_v15  ;;  %v1416_v14 = vadd.f32 %v6933_v12, %v1214_v46  ;;  %v6939_v62 = vld [vmem:[#allocation28_spill] sm:$0xff]  ;;  %v6153_v61 = vld [vmem:[#allocation9 + $0xf8] sm:$0xff]  }
 0x1a2   :  { %v6105_v16 = vadd.f32 %v1951_v53, %v1812_v0  ;;  %4967 = vmatpush3.bf16.msra.mxu0 %v5304_v18  ;;  %v1817_v56 = vadd.f32 %v6057_v42, %v1615_v8  ;;  %v1015_v53 = vadd.f32 %v6931_v17, %v6930_v22  ;;  %v1618_v0 = vadd.f32 %v6935_v19, %v1415_v45  ;;  %v6936_v18 = vld [vmem:[#allocation21_spill] sm:$0xff]  ;;  %v6941_v46 = vld [vmem:[#allocation32_spill] sm:$0xff] }
 0x1a3   :  { %v4909_v52 = vpop.f32.mrf.mxu0  ;;  %4968 = vmatprep.subr.bf16.mxu0 %v5306_v44  ;;  %v1216_v29 = vadd.f32 %v6932_v31, %v1014_v32  ;;  %v1016_v38 = vadd.f32 %v6936_v18, %v814_v59  ;;  %v1619_v8 = vadd.f32 %v6048_v49, %v1416_v14 }
 0x1a4   :  { %v6128_v36 = vadd.f32 %v4909_v52, %v1815_v28  ;;  %v4888_v52 = vpop.f32.mrf.mxu1  ;;  %v1217_v10 = vadd.f32 %v6939_v62, %v1015_v53  ;;  %v1819_v28 = vadd.f32 %v6046_v27, %v1617_v25  ;;  %v1820_v15 = vadd.f32 %v6087_v63, %v1618_v0  ;;  %v6943_v27 = vld [vmem:[#allocation17_spill] sm:$0xff]  ;;  %v6947_v63 = vld [vmem:[#allocation35_spill] sm:$0xff] }
 0x1a5   :  { %v1954_v23 = vpop.f32.mrf.mxu0  ;;  %v1821_v6 = vadd.f32 %v1784_v24, %v1619_v8  ;;  %v6950_v24 = vld [vmem:[#allocation31_spill] sm:$0xff] }
 0x1a6   :  { %v6107_v5 = vadd.f32 %v1954_v23, %v1813_v60  ;;  %4969 = vmatpush3.bf16.msra.mxu0 %v5306_v44  ;;  %v1417_v23 = vadd.f32 %v6938_v4, %v6937_v26  ;;  %v1418_v44 = vadd.f32 %v6940_v40, %v1216_v29  ;;  %v1797_v33 = vpop.f32.mrf.mxu1  ;;  %v1419_v59 = vadd.f32 %v6945_v20, %v1217_v10  ;;  %v6948_v29 = vld [vmem:[#allocation42_spill] sm:$0xff] }
 0x1a7   :  { %v4912_v2 = vpop.f32.mrf.mxu0  ;;  %5018 = vmatprep.subr.bf16.mxu0 %v6153_v61 }
 0x1a8   :  { %v2032_v21 = vadd.f32 %v6107_v5, %v6105_v16  ;;  %v1621_v45 = vadd.f32 %v6043_v11, %v1418_v44  ;;  %v4889_v17 = vpop.f32.mrf.mxu1  ;;  %v1622_v12 = vadd.f32 %v6948_v29, %v1419_v59  ;;  %v6949_v11 = vld [vmem:[#allocation26_spill] sm:$0xff] }
 0x1a9   :  { %v1967_v3 = vpop.f32.mrf.mxu0  ;;  %v1421_v34 = vadd.f32 %v6950_v24, %v6949_v11 }
 0x1aa   :  { %v2033_v35 = vadd.f32 %v2032_v21, %v6117_v13  ;;  %v6137_v9 = vadd.f32 %v1967_v3, %v1816_v41  ;;  %v6157_v21 = vadd.f32 %v4912_v2, %v1818_v30  ;;  %v1218_v3 = vadd.f32 %v6941_v46, %v1016_v38  ;;  %v6942_v41 = vld [vmem:[#allocation38_spill] sm:$0xff]  ;;  %v6944_v2 = vld [vmem:[#allocation20_spill] sm:$0xff]  ;;  %v1800_v26 = vpop.f32.mrf.mxu1 }
 0x1ab   :  { %v4913_v48 = vpop.f32.mrf.mxu0  ;;  %v1018_v32 = vadd.f32 %v6944_v2, %v6943_v27  ;;  %v1823_v19 = vadd.f32 %v6102_v37, %v1621_v45  ;;  %v6951_v38 = vld [vmem:[#allocation34_spill] sm:$0xff]  ;;  %v1824_v10 = vadd.f32 %v1797_v33, %v1622_v12 }
 0x1ac   :  { %v2034_v39 = vadd.f32 %v2033_v35, %v6128_v36  ;;  %v1620_v35 = vadd.f32 %v6942_v41, %v1417_v23  ;;  %v6165_v51 = vadd.f32 %v4913_v48, %v1819_v28  ;;  %v1420_v48 = vadd.f32 %v6947_v63, %v1218_v3  ;;  %v6952_v23 = vld [vmem:[#allocation41_spill] sm:$0xff] }
 0x1ad   :  { %v1970_v55 = vpop.f32.mrf.mxu0  ;;  %v1624_v62 = vadd.f32 %v6952_v23, %v1421_v34 }
 0x1ae   :  { %v2035_v60 = vadd.f32 %v2034_v39, %v6137_v9  ;;  %v6147_v42 = vadd.f32 %v1970_v55, %v1817_v56  ;;  %v6946_v39 = vld [vmem:[#allocation30_spill] sm:$0xff]  ;;  %v1822_v31 = vadd.f32 %v6070_v1, %v1620_v35  ;;  %v1623_v0 = vadd.f32 %v6072_v57, %v1420_v48 }
 0x1af   :  { %v4916_v47 = vpop.f32.mrf.mxu0  ;;  %v1220_v22 = vadd.f32 %v6946_v39, %v1018_v32  ;;  %v1826_v46 = vadd.f32 %v4888_v52, %v1624_v62 }
 0x1b0   :  { %v2036_v54 = vadd.f32 %v2035_v60, %v6147_v42  ;;  %v6186_v60 = vadd.f32 %v4916_v47, %v1822_v31  ;;  %v1825_v40 = vadd.f32 %v1800_v26, %v1623_v0 }
 0x1b1   :  { %v1983_v50 = vpop.f32.mrf.mxu0  ;;  %v1422_v1 = vadd.f32 %v6951_v38, %v1220_v22 }
 0x1b2   :  { %v2037_v49 = vadd.f32 %v2036_v54, %v6157_v21  ;;  %v6172_v25 = vadd.f32 %v1983_v50, %v1820_v15 }
 0x1b3   :  { %v4917_v58 = vpop.f32.mrf.mxu0  ;;  %v1625_v37 = vadd.f32 %v6064_v7, %v1422_v1 }
 0x1b4   :  { %v2038_v56 = vadd.f32 %v2037_v49, %v6165_v51  ;;  %v6191_v28 = vadd.f32 %v4917_v58, %v1823_v19 }
 0x1b5   :  { %v1986_v53 = vpop.f32.mrf.mxu0  ;;  %v1827_v41 = vadd.f32 %v4889_v17, %v1625_v37 }
 0x1b6   :  { %v2039_v14 = vadd.f32 %v2038_v56, %v6172_v25  ;;  %v6180_v55 = vadd.f32 %v1986_v53, %v1821_v6 }
 0x1b7   :  { %v4920_v30 = vpop.f32.mrf.mxu0 }
 0x1b8   :  { %v2040_v18 = vadd.f32 %v2039_v14, %v6180_v55  ;;  %v6201_v33 = vadd.f32 %v4920_v30, %v1826_v46 }
 0x1b9   :  { %v1999_v4 = vpop.f32.mrf.mxu0 }
 0x1ba   :  { %v2041_v8 = vadd.f32 %v2040_v18, %v6186_v60  ;;  %v6195_v57 = vadd.f32 %v1999_v4, %v1824_v10 }
 0x1bb   :  { %v4921_v54 = vpop.f32.mrf.mxu0 }
 0x1bc   :  { %v2042_v47 = vadd.f32 %v2041_v8, %v6191_v28  ;;  %v6204_v15 = vadd.f32 %v4921_v54, %v1827_v41 }
 0x1bd   :  { %v2002_v44 = vpop.f32.mrf.mxu0 }
 0x1be   :  { %v2043_v3 = vadd.f32 %v2042_v47, %v6195_v57  ;;  %v6199_v50 = vadd.f32 %v2002_v44, %v1825_v40 }
 0x1c0   :  { %v2044_v35 = vadd.f32 %v2043_v3, %v6199_v50 }
 0x1c2   :  { %v2045_v7 = vadd.f32 %v2044_v35, %v6201_v33 }
 0x1c4   :  { %v2046_v49 = vadd.f32 %v2045_v7, %v6204_v15 }
 0x1c6   :  { %v2047_v27 = vrot.slane %v2046_v49, 4 }
 0x1c8   :  { %v2048_v2 = vadd.f32 %v2047_v27, %v2046_v49 }
 0x1ca   :  { %v2049_v32 = vrot.slane %v2048_v2, 2 }
 0x1cc   :  { %v2050_v20 = vadd.f32 %v2049_v32, %v2048_v2 }
 0x1ce   :  { %v2051_v52 = vrot.slane %v2050_v20, 1 }
 0x1d0   :  { %v2052_v59 = vadd.f32 %v2051_v52, %v2050_v20 }
 0x1d2   :  { %v6208_v58 = vmul.f32 0.0078125, %v2052_v59 }
 0x1d4   :  { %v2054_v45 = vsub.f32 %v6105_v16, %v6208_v58  ;;  %v2055_v6 = vsub.f32 %v6107_v5, %v6208_v58  ;;  %v2056_v56 = vsub.f32 %v6117_v13, %v6208_v58  ;;  %v2057_v63 = vsub.f32 %v6128_v36, %v6208_v58 }
 0x1d5   :  { %v2058_v48 = vsub.f32 %v6137_v9, %v6208_v58  ;;  %v2059_v31 = vsub.f32 %v6147_v42, %v6208_v58  ;;  %v2060_v14 = vsub.f32 %v6157_v21, %v6208_v58  ;;  %v2061_v34 = vsub.f32 %v6165_v51, %v6208_v58 }
 0x1d6   :  { %v2070_v39 = vmul.f32 %v2054_v45, %v2054_v45  ;;  %v2071_v22 = vmul.f32 %v2055_v6, %v2055_v6  ;;  %v2072_v17 = vmul.f32 %v2056_v56, %v2056_v56  ;;  %v2073_v29 = vmul.f32 %v2057_v63, %v2057_v63 }
 0x1d7   :  { %v2074_v11 = vmul.f32 %v2058_v48, %v2058_v48  ;;  %v2075_v30 = vmul.f32 %v2059_v31, %v2059_v31  ;;  %v2062_v0 = vsub.f32 %v6172_v25, %v6208_v58  ;;  %v2076_v18 = vmul.f32 %v2060_v14, %v2060_v14  ;;  %v2030_v14 = vld [vmem:[%s6888_s3] sm:$0x1] }
 0x1d8   :  { %v2086_v53 = vadd.f32 %v2071_v22, %v2070_v39  ;;  %v2063_v1 = vsub.f32 %v6180_v55, %v6208_v58  ;;  %v2077_v26 = vmul.f32 %v2061_v34, %v2061_v34  ;;  %v2064_v23 = vsub.f32 %v6186_v60, %v6208_v58 }
 0x1d9   :  { %v2078_v62 = vmul.f32 %v2062_v0, %v2062_v0  ;;  %v2065_v8 = vsub.f32 %v6191_v28, %v6208_v58  ;;  %v2066_v40 = vsub.f32 %v6195_v57, %v6208_v58  ;;  %v2067_v46 = vsub.f32 %v6199_v50, %v6208_v58 }
 0x1da   :  { %v2087_v12 = vadd.f32 %v2086_v53, %v2072_v17  ;;  %v2079_v54 = vmul.f32 %v2063_v1, %v2063_v1  ;;  %v2080_v47 = vmul.f32 %v2064_v23, %v2064_v23  ;;  %v2068_v35 = vsub.f32 %v6201_v33, %v6208_v58 }
 0x1db   :  { %v2081_v3 = vmul.f32 %v2065_v8, %v2065_v8  ;;  %v2082_v7 = vmul.f32 %v2066_v40, %v2066_v40  ;;  %v2069_v27 = vsub.f32 %v6204_v15, %v6208_v58  ;;  %v2083_v2 = vmul.f32 %v2067_v46, %v2067_v46 }
 0x1dc   :  { %v2088_v24 = vadd.f32 %v2087_v12, %v2073_v29  ;;  %v2084_v20 = vmul.f32 %v2068_v35, %v2068_v35  ;;  %v2114_v29 = vlaneseq }
 0x1dd   :  { %v2085_v59 = vmul.f32 %v2069_v27, %v2069_v27 }
 0x1de   :  { %v2089_v19 = vadd.f32 %v2088_v24, %v2074_v11  ;;  %v2115_v12 = vshrl.u32 %v2114_v29, 7  ;;  %v2239_v29 = vld [vmem:[#allocation3] sm:$0xff] }
 0x1e0   :  { %v2090_v38 = vadd.f32 %v2089_v19, %v2075_v30  ;;  %v6245_v11 = vsub.s32 0, %v2115_v12  ;;  %v2031_v30 = vld [vmem:[%s6889_s4] sm:$0x1]  ;;  %v5311_v12 = vld [vmem:[#allocation9 + $0xa8] sm:$0xff]  }
 0x1e2   :  { %v2091_v4 = vadd.f32 %v2090_v38, %v2076_v18  ;;  %6953 = vst [vmem:[#allocation39_spill] sm:$0xff] %v6245_v11 }
 0x1e4   :  { %v2092_v10 = vadd.f32 %v2091_v4, %v2077_v26 }
 0x1e6   :  { %v2093_v37 = vadd.f32 %v2092_v10, %v2078_v62 }
 0x1e8   :  { %v2094_v44 = vadd.f32 %v2093_v37, %v2079_v54 }
 0x1ea   :  { %v2095_v41 = vadd.f32 %v2094_v44, %v2080_v47 }
 0x1ec   :  { %v2096_v49 = vadd.f32 %v2095_v41, %v2081_v3 }
 0x1ee   :  { %v2097_v32 = vadd.f32 %v2096_v49, %v2082_v7 }
 0x1f0   :  { %v2098_v52 = vadd.f32 %v2097_v32, %v2083_v2 }
 0x1f2   :  { %v2099_v45 = vadd.f32 %v2098_v52, %v2084_v20  ;;  %v5309_v20 = vld [vmem:[#allocation9 + $0xb0] sm:$0xff]  }
 0x1f4   :  { %v2100_v6 = vadd.f32 %v2099_v45, %v2085_v59 }
 0x1f6   :  { %v2101_v56 = vrot.slane %v2100_v6, 4 }
 0x1f8   :  { %v2102_v39 = vadd.f32 %v2101_v56, %v2100_v6 }
 0x1fa   :  { %v2103_v22 = vrot.slane %v2102_v39, 2 }
 0x1fc   :  { %v2104_v63 = vadd.f32 %v2103_v22, %v2102_v39 }
 0x1fe   :  { %v2105_v48 = vrot.slane %v2104_v63, 1 }
 0x200   :  { %v2106_v17 = vadd.f32 %v2105_v48, %v2104_v63 }
 0x202   :  { %v2107_v53 = vmul.f32 0.0078125, %v2106_v17 }
 0x204   :  { %v2108_v31 = vadd.f32 1e-05, %v2107_v53 }
 0x206   :  { %5363 = vrsqrt.f32 %v2108_v31 }
 0x213   :  { %v5364_v24 = vpop.eup %5363 }
 0x214   :  { %v2110_v34 = vmul.f32 %v5364_v24, %v2030_v14 }
 0x216   :  { %v2111_v19 = vmul.f32 %v2110_v34, %v6208_v58  ;;  %v2117_v0 = vrot.slane %v2110_v34, %v6245_v11 }
 0x218   :  { %v2112_v18 = vsub.f32 %v2031_v30, %v2111_v19  ;;  %v2132_v38 = vmul.f32 %v2117_v0, %v6199_v50  ;;  %v2119_v1 = vmul.f32 %v2117_v0, %v6105_v16  ;;  %v2120_v26 = vmul.f32 %v2117_v0, %v6107_v5 }
 0x219   :  { %v2121_v4 = vmul.f32 %v2117_v0, %v6117_v13  ;;  %v2122_v23 = vmul.f32 %v2117_v0, %v6128_v36  ;;  %v2123_v62 = vmul.f32 %v2117_v0, %v6137_v9  ;;  %v2124_v10 = vmul.f32 %v2117_v0, %v6147_v42 }
 0x21a   :  { %v6260_v8 = vrot.slane %v2112_v18, %v6245_v11  ;;  %v2125_v58 = vmul.f32 %v2117_v0, %v6157_v21  ;;  %v2127_v54 = vmul.f32 %v2117_v0, %v6172_v25  ;;  %v2128_v50 = vmul.f32 %v2117_v0, %v6180_v55  ;;  %v2279_v25 = vld [vmem:[#allocation3 + $0x1] sm:$0xff] }
 0x21b   :  { %v2129_v16 = vmul.f32 %v2117_v0, %v6186_v60  ;;  %v2130_v5 = vmul.f32 %v2117_v0, %v6191_v28  ;;  %v2131_v13 = vmul.f32 %v2117_v0, %v6195_v57  ;;  %v2133_v36 = vmul.f32 %v2117_v0, %v6201_v33 }
 0x21c   :  { %v6270_v9 = vadd.f32 %v6260_v8, %v2132_v38  ;;  %v2141_v42 = vadd.f32 %v6260_v8, %v2119_v1  ;;  %v2142_v37 = vadd.f32 %v6260_v8, %v2120_v26  ;;  %v2143_v21 = vadd.f32 %v6260_v8, %v2121_v4  ;;  %v5332_v38 = vld [vmem:[#allocation9 + $0x158] sm:$0xff]  }
 0x21d   :  { %v2144_v55 = vadd.f32 %v6260_v8, %v2122_v23  ;;  %v2145_v60 = vadd.f32 %v6260_v8, %v2123_v62  ;;  %v2146_v28 = vadd.f32 %v6260_v8, %v2124_v10  ;;  %v2147_v57 = vadd.f32 %v6260_v8, %v2125_v58  ;;  %v2287_v62 = vld [vmem:[#allocation3 + $0xa1] sm:$0xff]  ;;  %v5310_v10 = vld [vmem:[#allocation9 + $0xf0] sm:$0xff]  }
 0x21e   :  { %v2170_v33 = vmax.f32 %v6270_v9, 0.0  ;;  %v6280_v40 = vmax.f32 %v2141_v42, 0.0  ;;  %v6282_v47 = vmax.f32 %v2142_v37, 0.0  ;;  %v6284_v44 = vmax.f32 %v2143_v21, 0.0  ;;  %v2247_v37 = vld [vmem:[#allocation3 + $0xa0] sm:$0xff]  ;;  %v5320_v9 = vld [vmem:[#allocation9 + $0xc8] sm:$0xff]  }
 0x21f   :  { %v6286_v46 = vmax.f32 %v2144_v55, 0.0  ;;  %v6288_v3 = vmax.f32 %v2145_v60, 0.0  ;;  %v6290_v41 = vmax.f32 %v2146_v28, 0.0  ;;  %v6292_v35 = vmax.f32 %v2147_v57, 0.0  ;;  %v5314_v55 = vld [vmem:[#allocation9 + $0xe0] sm:$0xff]   ;;  %v5315_v60 = vld [vmem:[#allocation9 + $0x98] sm:$0xff]  }
 0x220   :  { %2236 = vst [vmem:[#allocation3 + $0x101] sm:$0xff] %v2170_v33  ;;  %2223 = vst [vmem:[#allocation3 + $0x11] sm:$0xff] %v6280_v40  ;;  %v2295_v7 = vpack.c.bf16 %v6280_v40, %v2279_v25  ;;  %v6302_v49 = vpack.c.bf16 %v6284_v44, %v6282_v47  ;;  %v2149_v27 = vadd.f32 %v6260_v8, %v2127_v54  ;;  %v5317_v57 = vld [vmem:[#allocation9 + $0x90] sm:$0xff]  }
 0x221   :  { %2224 = vst [vmem:[#allocation3 + $0x21] sm:$0xff] %v6282_v47  ;;  %2225 = vst [vmem:[#allocation3 + $0x31] sm:$0xff] %v6284_v44  ;;  %v2150_v2 = vadd.f32 %v6260_v8, %v2128_v50  ;;  %v6310_v32 = vpack.c.bf16 %v6288_v3, %v6286_v46  ;;  %v2151_v52 = vadd.f32 %v6260_v8, %v2129_v16 }
 0x222   :  { %2226 = vst [vmem:[#allocation3 + $0x41] sm:$0xff] %v6286_v46  ;;  %2227 = vst [vmem:[#allocation3 + $0x51] sm:$0xff] %v6288_v3  ;;  %v2152_v59 = vadd.f32 %v6260_v8, %v2130_v5  ;;  %4938 = vmatprep.mubr.bf16.mxu1 %v2295_v7  ;;  %v6316_v45 = vmax.f32 %v2149_v27, 0.0  ;;  %v2153_v56 = vadd.f32 %v6260_v8, %v2131_v13  ;;  %v5313_v5 = vld [vmem:[#allocation9 + $0xa0] sm:$0xff]   ;;  %v5312_v13 = vld [vmem:[#allocation9 + $0xe8] sm:$0xff]  }
 0x223   :  { %2228 = vst [vmem:[#allocation3 + $0x61] sm:$0xff] %v6290_v41  ;;  %2229 = vst [vmem:[#allocation3 + $0x71] sm:$0xff] %v6292_v35  ;;  %v6318_v6 = vmax.f32 %v2150_v2, 0.0  ;;  %v2155_v39 = vadd.f32 %v6260_v8, %v2133_v36  ;;  %4939 = vmatmul.mubr.bf16.vlgmr.msra.gmra.mxu1 %v6302_v49  ;;  %v6323_v22 = vmax.f32 %v2151_v52, 0.0  ;;  %v2126_v48 = vmul.f32 %v2117_v0, %v6165_v51  ;;  %v5316_v27 = vld [vmem:[#allocation9 + $0xd8] sm:$0xff]  }
 0x224   :  { %v6325_v63 = vmax.f32 %v2152_v59, 0.0  ;;  %v2134_v17 = vmul.f32 %v2117_v0, %v6204_v15  ;;  %4942 = vmatprep.mubr.bf16.mxu1 %v6310_v32  ;;  %4987 = vmatpush3.bf16.msra.mxu1 %v6113_v43  ;;  %2231 = vst [vmem:[#allocation3 + $0xb1] sm:$0xff] %v6316_v45  ;;  %v6333_v53 = vmax.f32 %v2153_v56, 0.0  ;;  %v3031_v43 = vpack.c.bf16 %v6286_v46, %v6284_v44  ;;  %v2610_v56 = vld [vmem:[#allocation3 + $0x2] sm:$0xff] }
 0x225   :  { %2232 = vst [vmem:[#allocation3 + $0xc1] sm:$0xff] %v6318_v6  ;;  %v6335_v31 = vmax.f32 %v2155_v39, 0.0  ;;  %4988 = vmatprep.subr.bf16.mxu1 %v5309_v20  ;;  %2233 = vst [vmem:[#allocation3 + $0xd1] sm:$0xff] %v6323_v22  ;;  %v2148_v51 = vadd.f32 %v6260_v8, %v2126_v48  ;;  %v3032_v14 = vpack.c.bf16 %v6290_v41, %v6288_v3  ;;  %v5318_v48 = vld [vmem:[#allocation9 + $0xd0] sm:$0xff]   ;;  %v5345_v44 = vld [vmem:[#allocation9 + $0x1a0] sm:$0xff]  }
 0x226   :  { %2234 = vst [vmem:[#allocation3 + $0xe1] sm:$0xff] %v6325_v63  ;;  %v2156_v15 = vadd.f32 %v6260_v8, %v2134_v17  ;;  %2235 = vst [vmem:[#allocation3 + $0xf1] sm:$0xff] %v6333_v53  ;;  %v6372_v8 = vpack.c.bf16 %v6292_v35, %v6290_v41  ;;  %v2299_v16 = vpack.c.bf16 %v6316_v45, %v2287_v62  ;;  %v5344_v46 = vld [vmem:[#allocation9 + $0x1e8] sm:$0xff]  }
 0x227   :  { %2237 = vst [vmem:[#allocation3 + $0x111] sm:$0xff] %v6335_v31  ;;  %v6349_v34 = vld [vmem:[#allocation3 + $0x10] sm:$0xff]  ;;  %v6355_v0 = vmax.f32 %v2148_v51, 0.0  ;;  %v6408_v7 = vpack.c.bf16 %v6333_v53, %v6325_v63  ;;  %v2302_v17 = vpack.c.bf16 %v6335_v31, %v2170_v33  ;;  %v6435_v33 = vld [vmem:[#allocation3 + $0x100] sm:$0xff]  ;;  %v3030_v24 = vpack.c.bf16 %v6282_v47, %v6280_v40  ;;  %v5340_v47 = vld [vmem:[#allocation9 + $0x1f8] sm:$0xff]  }
 0x228   :  { %v6351_v30 = vld [vmem:[#allocation3 + $0x20] sm:$0xff]  ;;  %v6353_v19 = vld [vmem:[#allocation3 + $0x30] sm:$0xff]  ;;  %v6357_v18 = vmax.f32 %v2156_v15, 0.0  ;;  %v2255_v1 = vpack.c.bf16 %v6349_v34, %v2239_v29  ;;  %4989 = vmatpush3.bf16.msra.mxu1 %v5309_v20  ;;  %v5319_v29 = vld [vmem:[#allocation9 + $0x88] sm:$0xff]   ;;  %v6954_v41 = vpack.c.bf16 %v6318_v6, %v6316_v45 }
 0x229   :  { %v6364_v26 = vpack.c.bf16 %v6353_v19, %v6351_v30  ;;  %v6366_v4 = vld [vmem:[#allocation3 + $0x40] sm:$0xff]  ;;  %v6368_v23 = vld [vmem:[#allocation3 + $0x50] sm:$0xff]  ;;  %4990 = vmatprep.subr.bf16.mxu1 %v5311_v12  ;;  %2230 = vst [vmem:[#allocation3 + $0x81] sm:$0xff] %v6355_v0  ;;  %v3033_v58 = vpack.c.bf16 %v6355_v0, %v6292_v35 }
 0x22a   :  { %2238 = vst [vmem:[#allocation3 + $0x121] sm:$0xff] %v6357_v18  ;;  %4970 = vmatprep.mubr.bf16.mxu0 %v2255_v1  ;;  %v6380_v54 = vpack.c.bf16 %v6368_v23, %v6366_v4  ;;  %v6389_v36 = vld [vmem:[#allocation3 + $0x60] sm:$0xff]  ;;  %v6391_v42 = vld [vmem:[#allocation3 + $0x70] sm:$0xff] }
 0x22b   :  { %4971 = vmatmul.mubr.bf16.vlgmr.msra.gmra.mxu0 %v6364_v26  ;;  %4943 = vmatmul.mubr.bf16.gmra.mxu1 %v6372_v8  ;;  %v6393_v21 = vld [vmem:[#allocation3 + $0xb0] sm:$0xff]  ;;  %v6397_v25 = vpack.c.bf16 %v6391_v42, %v6389_v36  ;;  %v5321_v15 = vld [vmem:[#allocation9 + $0x80] sm:$0xff]  }
 0x22c   :  { %4974 = vmatprep.mubr.bf16.mxu0 %v6380_v54  ;;  %5019 = vmatpush3.bf16.msra.mxu0 %v6153_v61  ;;  %v6401_v61 = vpack.c.bf16 %v6323_v22, %v6318_v6  ;;  %v2259_v28 = vpack.c.bf16 %v6393_v21, %v2247_v37  ;;  %v6410_v2 = vld [vmem:[#allocation3 + $0xc0] sm:$0xff]  ;;  %v6412_v20 = vld [vmem:[#allocation3 + $0xd0] sm:$0xff]  ;;  %v6955_v6 = vpack.c.bf16 %v6325_v63, %v6323_v22  ;;  %v5352_v63 = vld [vmem:[#allocation9 + $0x1c8] sm:$0xff]  }
 0x22d   :  { %5020 = vmatprep.subr.bf16.mxu0 %v5310_v10  ;;  %4946 = vmatprep.mubr.bf16.mxu1 %v2299_v16  ;;  %v6415_v52 = vld [vmem:[#allocation3 + $0xe0] sm:$0xff]  ;;  %v6417_v59 = vld [vmem:[#allocation3 + $0xf0] sm:$0xff]  ;;  %v6421_v39 = vpack.c.bf16 %v6412_v20, %v6410_v2  ;;  %v6956_v22 = vpack.c.bf16 %v6357_v18, %v6335_v31 }
 0x22e   :  { %4991 = vmatpush3.bf16.msra.mxu1 %v5311_v12  ;;  %v6426_v12 = vld [vmem:[#allocation3 + $0x12] sm:$0xff]  ;;  %v6430_v51 = vpack.c.bf16 %v6417_v59, %v6415_v52  ;;  %v6439_v16 = vld [vmem:[#allocation3 + $0x22] sm:$0xff] }
 0x22f   :  { %4992 = vmatprep.subr.bf16.mxu1 %v5313_v5  ;;  %v2626_v1 = vpack.c.bf16 %v6426_v12, %v2610_v56  ;;  %v6437_v62 = vld [vmem:[#allocation3 + $0x110] sm:$0xff]  ;;  %v5322_v37 = vld [vmem:[#allocation9 + $0xc0] sm:$0xff]  }
 0x230   :  { %5021 = vmatpush3.bf16.msra.mxu0 %v5310_v10  ;;  %v5323_v10 = vld [vmem:[#allocation9 + $0x138] sm:$0xff]   ;;  %v6480_v50 = vld [vmem:[#allocation3 + $0x80] sm:$0xff]  ;;  %v5341_v40 = vld [vmem:[#allocation9 + $0x1b0] sm:$0xff]  }
 0x231   :  { %5022 = vmatprep.subr.bf16.mxu0 %v5312_v13  ;;  %v6538_v3 = vld [vmem:[#allocation3 + $0x82] sm:$0xff] }
 0x232   :  { %4993 = vmatpush3.bf16.msra.mxu1 %v5313_v5  ;;  %v6441_v5 = vld [vmem:[#allocation3 + $0x32] sm:$0xff] }
 0x233   :  { %4975 = vmatmul.mubr.bf16.gmra.mxu0 %v6397_v25  ;;  %4947 = vmatmul.mubr.bf16.gmra.mxu1 %v6401_v61 }
 0x234   :  { %4978 = vmatprep.mubr.bf16.mxu0 %v2259_v28  ;;  %5023 = vmatpush3.bf16.msra.mxu0 %v5312_v13  ;;  %v6445_v13 = vpack.c.bf16 %v6437_v62, %v6435_v33  ;;  %v2828_v28 = vpack.c.bf16 %v6351_v30, %v6349_v34  ;;  %v5327_v34 = vld [vmem:[#allocation9 + $0x128] sm:$0xff]  }
 0x235   :  { %5024 = vmatprep.subr.bf16.mxu0 %v5314_v55  ;;  %4994 = vmatprep.subr.bf16.mxu1 %v5315_v60  ;;  %v6464_v30 = vld [vmem:[#allocation3 + $0x62] sm:$0xff] }
 0x236   :  { %4950 = vmatprep.mubr.bf16.mxu1 %v6408_v7  ;;  %4995 = vmatpush3.bf16.msra.mxu1 %v5315_v60  ;;  %v6449_v60 = vld [vmem:[#allocation3 + $0x52] sm:$0xff] }
 0x237   :  { %4996 = vmatprep.subr.bf16.mxu1 %v5317_v57 }
 0x238   :  { %5025 = vmatpush3.bf16.msra.mxu0 %v5314_v55  ;;  %v6447_v55 = vld [vmem:[#allocation3 + $0x42] sm:$0xff] }
 0x239   :  { %5026 = vmatprep.subr.bf16.mxu0 %v5316_v27  ;;  %v6460_v56 = vpack.c.bf16 %v6449_v60, %v6447_v55 }
 0x23a   :  { %4997 = vmatpush3.bf16.msra.mxu1 %v5317_v57  ;;  %v6456_v57 = vpack.c.bf16 %v6441_v5, %v6439_v16 }
 0x23b   :  { %4979 = vmatmul.mubr.bf16.gmra.mxu0 %v6421_v39  ;;  %4951 = vmatmul.mubr.bf16.gmra.mxu1 %v2302_v17  ;;  %v6466_v17 = vld [vmem:[#allocation3 + $0x72] sm:$0xff] }
 0x23c   :  { %4982 = vmatprep.mubr.bf16.mxu0 %v6430_v51  ;;  %5027 = vmatpush3.bf16.msra.mxu0 %v5316_v27  ;;  %v5325_v27 = vld [vmem:[#allocation9 + $0x130] sm:$0xff]  }
 0x23d   :  { %5028 = vmatprep.subr.bf16.mxu0 %v5318_v48  ;;  %4998 = vmatprep.subr.bf16.mxu1 %v5319_v29 }
 0x23e   :  { %4999 = vmatpush3.bf16.msra.mxu1 %v5319_v29  ;;  %5002 = vmatprep.mubr.bf16.mxu1 %v2626_v1  ;;  %v2829_v29 = vpack.c.bf16 %v6366_v4, %v6353_v19  ;;  %v2618_v1 = vld [vmem:[#allocation3 + $0xa2] sm:$0xff] }
 0x23f   :  { %5000 = vmatprep.subr.bf16.mxu1 %v5321_v15  ;;  %v5328_v4 = vld [vmem:[#allocation9 + $0x168] sm:$0xff]  }
 0x240   :  { %5029 = vmatpush3.bf16.msra.mxu0 %v5318_v48  ;;  %v5324_v48 = vld [vmem:[#allocation9 + $0x178] sm:$0xff]  }
 0x241   :  { %5030 = vmatprep.subr.bf16.mxu0 %v5320_v9 }
 0x242   :  { %5001 = vmatpush3.bf16.msra.mxu1 %v5321_v15  ;;  %v5326_v15 = vld [vmem:[#allocation9 + $0x170] sm:$0xff]  }
 0x243   :  { %4983 = vmatmul.mubr.bf16.gmra.mxu0 %v6445_v13  ;;  %5050 = vmatprep.subr.bf16.mxu1 %v5323_v10 }
 0x244   :  { %5031 = vmatpush3.bf16.msra.mxu0 %v5320_v9  ;;  %5034 = vmatprep.mubr.bf16.mxu0 %v2828_v28  ;;  %v6470_v9 = vld [vmem:[#allocation3 + $0xb2] sm:$0xff]  ;;  %v2830_v28 = vpack.c.bf16 %v6389_v36, %v6368_v23  ;;  %v6482_v36 = vld [vmem:[#allocation3 + $0xc2] sm:$0xff] }
 0x245   :  { %5032 = vmatprep.subr.bf16.mxu0 %v5322_v37  ;;  %5003 = vmatmul.mubr.bf16.vlgmr.msra.gmra.mxu1 %v6456_v57  ;;  %v2630_v19 = vpack.c.bf16 %v6470_v9, %v2618_v1  ;;  %v5331_v23 = vld [vmem:[#allocation9 + $0x118] sm:$0xff]   ;;  %v6488_v1 = vld [vmem:[#allocation3 + $0xe2] sm:$0xff]  ;;  %v3236_v35 = vpack.c.bf16 %v6482_v36, %v6470_v9  ;;  %v5350_v9 = vld [vmem:[#allocation9 + $0x1d0] sm:$0xff]  }
 0x246   :  { %5006 = vmatprep.mubr.bf16.mxu1 %v6460_v56  ;;  %5051 = vmatpush3.bf16.msra.mxu1 %v5323_v10  ;;  %v6476_v10 = vpack.c.bf16 %v6466_v17, %v6464_v30 }
 0x247   :  { %5052 = vmatprep.subr.bf16.mxu1 %v5325_v27 }
 0x248   :  { %5033 = vmatpush3.bf16.msra.mxu0 %v5322_v37  ;;  %v5329_v37 = vld [vmem:[#allocation9 + $0x120] sm:$0xff]  }
 0x249   :  { %5082 = vmatprep.subr.bf16.mxu0 %v5324_v48 }
 0x24a   :  { %5053 = vmatpush3.bf16.msra.mxu1 %v5325_v27  ;;  %v6484_v27 = vld [vmem:[#allocation3 + $0xd2] sm:$0xff] }
 0x24b   :  { %5035 = vmatmul.mubr.bf16.vlgmr.msra.gmra.mxu0 %v2829_v29  ;;  %5054 = vmatprep.subr.bf16.mxu1 %v5327_v34  ;;  %v5330_v29 = vld [vmem:[#allocation9 + $0x160] sm:$0xff]  }
 0x24c   :  { %5038 = vmatprep.mubr.bf16.mxu0 %v2830_v28  ;;  %5083 = vmatpush3.bf16.msra.mxu0 %v5324_v48  ;;  %v2831_v48 = vpack.c.bf16 %v6480_v50, %v6391_v42  ;;  %v6490_v28 = vld [vmem:[#allocation3 + $0xf2] sm:$0xff] }
 0x24d   :  { %5084 = vmatprep.subr.bf16.mxu0 %v5326_v15  ;;  %5007 = vmatmul.mubr.bf16.gmra.mxu1 %v6476_v10  ;;  %v6500_v42 = vpack.c.bf16 %v6490_v28, %v6488_v1 }
 0x24e   :  { %5010 = vmatprep.mubr.bf16.mxu1 %v2630_v19  ;;  %5055 = vmatpush3.bf16.msra.mxu1 %v5327_v34  ;;  %v2832_v19 = vpack.c.bf16 %v6410_v2, %v6393_v21  ;;  %v6496_v34 = vpack.c.bf16 %v6484_v27, %v6482_v36  ;;  %v5335_v21 = vld [vmem:[#allocation9 + $0x108] sm:$0xff]  }
 0x24f   :  { %5056 = vmatprep.subr.bf16.mxu1 %v5329_v37  ;;  %v6504_v2 = vld [vmem:[#allocation3 + $0x102] sm:$0xff] }
 0x250   :  { %5085 = vmatpush3.bf16.msra.mxu0 %v5326_v15  ;;  %v5333_v15 = vld [vmem:[#allocation9 + $0x110] sm:$0xff]   ;;  %v3238_v36 = vpack.c.bf16 %v6504_v2, %v6490_v28  ;;  %v5354_v28 = vld [vmem:[#allocation9 + $0x1c0] sm:$0xff]  }
 0x251   :  { %5086 = vmatprep.subr.bf16.mxu0 %v5328_v4 }
 0x252   :  { %5057 = vmatpush3.bf16.msra.mxu1 %v5329_v37  ;;  %v6506_v37 = vld [vmem:[#allocation3 + $0x112] sm:$0xff] }
 0x253   :  { %5039 = vmatmul.mubr.bf16.gmra.mxu0 %v2831_v48  ;;  %5058 = vmatprep.subr.bf16.mxu1 %v5331_v23  ;;  %v5334_v48 = vld [vmem:[#allocation9 + $0x150] sm:$0xff]  }
 0x254   :  { %5042 = vmatprep.mubr.bf16.mxu0 %v2832_v19  ;;  %5087 = vmatpush3.bf16.msra.mxu0 %v5328_v4  ;;  %v2833_v4 = vpack.c.bf16 %v6415_v52, %v6412_v20  ;;  %v2834_v19 = vpack.c.bf16 %v6435_v33, %v6417_v59  ;;  %v5336_v20 = vld [vmem:[#allocation9 + $0x148] sm:$0xff]   ;;  %v6519_v52 = vld [vmem:[#allocation3 + $0x120] sm:$0xff]  ;;  %v5339_v59 = vld [vmem:[#allocation9 + $0x1b8] sm:$0xff]  }
 0x255   :  { %5088 = vmatprep.subr.bf16.mxu0 %v5330_v29  ;;  %5011 = vmatmul.mubr.bf16.gmra.mxu1 %v6496_v34  ;;  %v2835_v33 = vpack.c.bf16 %v6519_v52, %v6437_v62  ;;  %v5342_v62 = vld [vmem:[#allocation9 + $0x1f0] sm:$0xff]  }
 0x256   :  { %5014 = vmatprep.mubr.bf16.mxu1 %v6500_v42  ;;  %5059 = vmatpush3.bf16.msra.mxu1 %v5331_v23  ;;  %v6514_v23 = vpack.c.bf16 %v6506_v37, %v6504_v2  ;;  %v5356_v2 = vld [vmem:[#allocation9 + $0x230] sm:$0xff]  }
 0x257   :  { %5060 = vmatprep.subr.bf16.mxu1 %v5333_v15 }
 0x258   :  { %5089 = vmatpush3.bf16.msra.mxu0 %v5330_v29  ;;  %v5337_v29 = vld [vmem:[#allocation9 + $0x100] sm:$0xff]  }
 0x259   :  { %5090 = vmatprep.subr.bf16.mxu0 %v5332_v38 }
 0x25a   :  { %5061 = vmatpush3.bf16.msra.mxu1 %v5333_v15  ;;  %v5338_v15 = vld [vmem:[#allocation9 + $0x140] sm:$0xff]  }
 0x25b   :  { %5043 = vmatmul.mubr.bf16.gmra.mxu0 %v2833_v4  ;;  %5062 = vmatprep.subr.bf16.mxu1 %v5335_v21  ;;  %v3426_v4 = vld [vmem:[#allocation3 + $0x90] sm:$0xff] }
 0x25c   :  { %5046 = vmatprep.mubr.bf16.mxu0 %v2834_v19  ;;  %5091 = vmatpush3.bf16.msra.mxu0 %v5332_v38  ;;  %v3232_v38 = vpack.c.bf16 %v6439_v16, %v6426_v12  ;;  %v3233_v12 = vpack.c.bf16 %v6447_v55, %v6441_v5  ;;  %v3234_v16 = vpack.c.bf16 %v6464_v30, %v6449_v60  ;;  %v5346_v5 = vld [vmem:[#allocation9 + $0x1e0] sm:$0xff]   ;;  %v5348_v60 = vld [vmem:[#allocation9 + $0x1d8] sm:$0xff]   ;;  %v5351_v30 = vld [vmem:[#allocation9 + $0x188] sm:$0xff]  }
 0x25d   :  { %5092 = vmatprep.subr.bf16.mxu0 %v5334_v48  ;;  %5015 = vmatmul.mubr.bf16.gmra.mxu1 %v6514_v23  ;;  %v6545_v55 = vld [vmem:[#allocation3 + $0x101] sm:$0xff]  ;;  %v5360_v19 = vld [vmem:[#allocation9 + $0x210] sm:$0xff]  }
 0x25e   :  { %5063 = vmatpush3.bf16.msra.mxu1 %v5335_v21  ;;  %5066 = vmatprep.mubr.bf16.mxu1 %v3030_v24  ;;  %v5343_v24 = vld [vmem:[#allocation9 + $0x1a8] sm:$0xff]   ;;  %v3036_v45 = vpack.c.bf16 %v6545_v55, %v6333_v53  ;;  %v5353_v53 = vld [vmem:[#allocation9 + $0x180] sm:$0xff]  }
 0x25f   :  { %5064 = vmatprep.subr.bf16.mxu1 %v5337_v29  ;;  %v6561_v21 = vld [vmem:[#allocation3 + $0x122] sm:$0xff] }
 0x260   :  { %5093 = vmatpush3.bf16.msra.mxu0 %v5334_v48  ;;  %v5358_v48 = vld [vmem:[#allocation9 + $0x220] sm:$0xff]  }
 0x261   :  { %5094 = vmatprep.subr.bf16.mxu0 %v5336_v20 }
 0x262   :  { %5065 = vmatpush3.bf16.msra.mxu1 %v5337_v29 }
 0x263   :  { %5047 = vmatmul.mubr.bf16.gmra.mxu0 %v2835_v33  ;;  %5114 = vmatprep.subr.bf16.mxu1 %v5339_v59 }
 0x264   :  { %5095 = vmatpush3.bf16.msra.mxu0 %v5336_v20  ;;  %5098 = vmatprep.mubr.bf16.mxu0 %v3232_v38 }
 0x265   :  { %5096 = vmatprep.subr.bf16.mxu0 %v5338_v15  ;;  %5067 = vmatmul.mubr.bf16.vlgmr.msra.gmra.mxu1 %v3031_v43  ;;  %v5347_v43 = vld [vmem:[#allocation9 + $0x198] sm:$0xff]  }
 0x266   :  { %5070 = vmatprep.mubr.bf16.mxu1 %v3032_v14  ;;  %5115 = vmatpush3.bf16.msra.mxu1 %v5339_v59  ;;  %v3235_v14 = vpack.c.bf16 %v6538_v3, %v6466_v17  ;;  %v3237_v17 = vpack.c.bf16 %v6488_v1, %v6484_v27  ;;  %v5355_v27 = vld [vmem:[#allocation9 + $0x238] sm:$0xff]   ;;  %v3239_v1 = vpack.c.bf16 %v6561_v21, %v6506_v37 }
 0x267   :  { %5116 = vmatprep.subr.bf16.mxu1 %v5341_v40  ;;  %v3438_v37 = vpack.c.bf16 %v3426_v4, %v6480_v50  ;;  %v3643_v50 = vpack.c.bf16 %v6335_v31, %v6545_v55  ;;  %v3830_v31 = vld [vmem:[#allocation3 + $0x92] sm:$0xff] }
 0x268   :  { %5097 = vmatpush3.bf16.msra.mxu0 %v5338_v15 }
 0x269   :  { %5146 = vmatprep.subr.bf16.mxu0 %v5340_v47 }
 0x26a   :  { %5117 = vmatpush3.bf16.msra.mxu1 %v5341_v40 }
 0x26b   :  { %5099 = vmatmul.mubr.bf16.vlgmr.msra.gmra.mxu0 %v3233_v12  ;;  %5118 = vmatprep.subr.bf16.mxu1 %v5343_v24 }
 0x26c   :  { %5102 = vmatprep.mubr.bf16.mxu0 %v3234_v16  ;;  %5147 = vmatpush3.bf16.msra.mxu0 %v5340_v47 }
 0x26d   :  { %5148 = vmatprep.subr.bf16.mxu0 %v5342_v62  ;;  %5071 = vmatmul.mubr.bf16.gmra.mxu1 %v3033_v58  ;;  %v5349_v58 = vld [vmem:[#allocation9 + $0x190] sm:$0xff]  }
 0x26e   :  { %5074 = vmatprep.mubr.bf16.mxu1 %v6954_v41  ;;  %5119 = vmatpush3.bf16.msra.mxu1 %v5343_v24 }
 0x26f   :  { %5120 = vmatprep.subr.bf16.mxu1 %v5345_v44 }
 0x270   :  { %5149 = vmatpush3.bf16.msra.mxu0 %v5342_v62 }
 0x271   :  { %5150 = vmatprep.subr.bf16.mxu0 %v5344_v46 }
 0x272   :  { %5121 = vmatpush3.bf16.msra.mxu1 %v5345_v44 }
 0x273   :  { %5103 = vmatmul.mubr.bf16.gmra.mxu0 %v3235_v14  ;;  %5122 = vmatprep.subr.bf16.mxu1 %v5347_v43 }
 0x274   :  { %5106 = vmatprep.mubr.bf16.mxu0 %v3236_v35  ;;  %5151 = vmatpush3.bf16.msra.mxu0 %v5344_v46 }
 0x275   :  { %5152 = vmatprep.subr.bf16.mxu0 %v5346_v5  ;;  %5075 = vmatmul.mubr.bf16.gmra.mxu1 %v6955_v6 }
 0x276   :  { %5078 = vmatprep.mubr.bf16.mxu1 %v3036_v45  ;;  %5123 = vmatpush3.bf16.msra.mxu1 %v5347_v43 }
 0x277   :  { %5124 = vmatprep.subr.bf16.mxu1 %v5349_v58 }
 0x278   :  { %5153 = vmatpush3.bf16.msra.mxu0 %v5346_v5 }
 0x279   :  { %5154 = vmatprep.subr.bf16.mxu0 %v5348_v60 }
 0x27a   :  { %5125 = vmatpush3.bf16.msra.mxu1 %v5349_v58 }
 0x27b   :  { %5107 = vmatmul.mubr.bf16.gmra.mxu0 %v3237_v17  ;;  %5126 = vmatprep.subr.bf16.mxu1 %v5351_v30 }
 0x27c   :  { %5110 = vmatprep.mubr.bf16.mxu0 %v3238_v36  ;;  %5155 = vmatpush3.bf16.msra.mxu0 %v5348_v60 }
 0x27d   :  { %5156 = vmatprep.subr.bf16.mxu0 %v5350_v9  ;;  %5079 = vmatmul.mubr.bf16.gmra.mxu1 %v6956_v22 }
 0x27e   :  { %5127 = vmatpush3.bf16.msra.mxu1 %v5351_v30  ;;  %5130 = vmatprep.mubr.bf16.mxu1 %v6364_v26  ;;  %v5357_v26 = vld [vmem:[#allocation9 + $0x228] sm:$0xff]  }
 0x27f   :  { %5128 = vmatprep.subr.bf16.mxu1 %v5353_v53 }
 0x280   :  { %5157 = vmatpush3.bf16.msra.mxu0 %v5350_v9 }
 0x281   :  { %5158 = vmatprep.subr.bf16.mxu0 %v5352_v63 }
 0x282   :  { %5129 = vmatpush3.bf16.msra.mxu1 %v5353_v53 }
 0x283   :  { %5111 = vmatmul.mubr.bf16.gmra.mxu0 %v3239_v1  ;;  %5178 = vmatprep.subr.bf16.mxu1 %v5355_v27 }
 0x284   :  { %5159 = vmatpush3.bf16.msra.mxu0 %v5352_v63  ;;  %5162 = vmatprep.mubr.bf16.mxu0 %v6302_v49  ;;  %v3628_v49 = vld [vmem:[#allocation3 + $0x91] sm:$0xff] }
 0x285   :  { %5160 = vmatprep.subr.bf16.mxu0 %v5354_v28  ;;  %5131 = vmatmul.mubr.bf16.vlgmr.msra.gmra.mxu1 %v6380_v54  ;;  %v5359_v54 = vld [vmem:[#allocation9 + $0x218] sm:$0xff]  }
 0x286   :  { %5134 = vmatprep.mubr.bf16.mxu1 %v6397_v25  ;;  %5179 = vmatpush3.bf16.msra.mxu1 %v5355_v27  ;;  %v3640_v25 = vpack.c.bf16 %v3628_v49, %v6355_v0 }
 0x287   :  { %5180 = vmatprep.subr.bf16.mxu1 %v5356_v2 }
 0x288   :  { %5161 = vmatpush3.bf16.msra.mxu0 %v5354_v28 }
 0x28a   :  { %5181 = vmatpush3.bf16.msra.mxu1 %v5356_v2 }
 0x28b   :  { %5163 = vmatmul.mubr.bf16.vlgmr.msra.gmra.mxu0 %v6310_v32  ;;  %5182 = vmatprep.subr.bf16.mxu1 %v5357_v26  ;;  %v5361_v32 = vld [vmem:[#allocation9 + $0x208] sm:$0xff]  }
 0x28c   :  { %5166 = vmatprep.mubr.bf16.mxu0 %v6372_v8  ;;  %v3434_v8 = vld [vmem:[#allocation3 + $0x130] sm:$0xff] }
 0x28d   :  { %5135 = vmatmul.mubr.bf16.gmra.mxu1 %v3438_v37  ;;  %v3442_v0 = vpack.c.bf16 %v3434_v8, %v6519_v52 }
 0x28e   :  { %5138 = vmatprep.mubr.bf16.mxu1 %v6421_v39  ;;  %5183 = vmatpush3.bf16.msra.mxu1 %v5357_v26  ;;  %v5362_v39 = vld [vmem:[#allocation9 + $0x200] sm:$0xff]  }
 0x28f   :  { %5184 = vmatprep.subr.bf16.mxu1 %v5358_v48 }
 0x292   :  { %5185 = vmatpush3.bf16.msra.mxu1 %v5358_v48 }
 0x293   :  { %5167 = vmatmul.mubr.bf16.gmra.mxu0 %v3640_v25  ;;  %5186 = vmatprep.subr.bf16.mxu1 %v5359_v54 }
 0x294   :  { %5170 = vmatprep.mubr.bf16.mxu0 %v6401_v61  ;;  %v3636_v61 = vld [vmem:[#allocation3 + $0x131] sm:$0xff] }
 0x295   :  { %5139 = vmatmul.mubr.bf16.gmra.mxu1 %v6430_v51  ;;  %v3644_v51 = vpack.c.bf16 %v3636_v61, %v6357_v18 }
 0x296   :  { %5142 = vmatprep.mubr.bf16.mxu1 %v6445_v13  ;;  %5187 = vmatpush3.bf16.msra.mxu1 %v5359_v54  ;;  %v3838_v13 = vld [vmem:[#allocation3 + $0x132] sm:$0xff] }
 0x297   :  { %5188 = vmatprep.subr.bf16.mxu1 %v5360_v19 }
 0x29a   :  { %5189 = vmatpush3.bf16.msra.mxu1 %v5360_v19 }
 0x29b   :  { %5171 = vmatmul.mubr.bf16.gmra.mxu0 %v6408_v7  ;;  %5190 = vmatprep.subr.bf16.mxu1 %v5361_v32  ;;  %v3842_v7 = vpack.c.bf16 %v3830_v31, %v6538_v3 }
 0x29c   :  { %5174 = vmatprep.mubr.bf16.mxu0 %v3643_v50 }
 0x29d   :  { %5143 = vmatmul.mubr.bf16.gmra.mxu1 %v3442_v0 }
 0x29e   :  { %5191 = vmatpush3.bf16.msra.mxu1 %v5361_v32  ;;  %5194 = vmatprep.mubr.bf16.mxu1 %v6456_v57  ;;  %v3846_v57 = vpack.c.bf16 %v3838_v13, %v6561_v21 }
 0x29f   :  { %5192 = vmatprep.subr.bf16.mxu1 %v5362_v39 }
 0x2a2   :  { %5193 = vmatpush3.bf16.msra.mxu1 %v5362_v39 }
 0x2a3   :  { %5175 = vmatmul.mubr.bf16.gmra.mxu0 %v3644_v51 }
 0x2a5   :  { %5195 = vmatmul.mubr.bf16.vlgmr.msra.gmra.mxu1 %v6460_v56 }
 0x2a6   :  { %5198 = vmatprep.mubr.bf16.mxu1 %v6476_v10 }
 0x2ad   :  { %5199 = vmatmul.mubr.bf16.gmra.mxu1 %v3842_v7 }
 0x2ae   :  { %5202 = vmatprep.mubr.bf16.mxu1 %v6496_v34 }
 0x2b5   :  { %5203 = vmatmul.mubr.bf16.gmra.mxu1 %v6500_v42 }
 0x2b6   :  { %5206 = vmatprep.mubr.bf16.mxu1 %v6514_v23 }
 0x2bd   :  { %5207 = vmatmul.mubr.bf16.gmra.mxu1 %v3846_v57 }
 0x2e3   :  { %v4940_v18 = vpop.f32.mrf.mxu1 }
 0x2e5   :  { %v2402_v29 = vpop.f32.mrf.mxu1 }
 0x2e7   :  { %v4941_v20 = vpop.f32.mrf.mxu1 }
 0x2e9   :  { %v2405_v56 = vpop.f32.mrf.mxu1 }
 0x2eb   :  { %v4972_v52 = vpop.f32.mrf.mxu0  ;;  %v4944_v10 = vpop.f32.mrf.mxu1 }
 0x2ec   :  { %v2556_v59 = vadd.f32 %v4972_v52, %v4940_v18 }
 0x2ed   :  { %v2547_v33 = vpop.f32.mrf.mxu0  ;;  %v2418_v15 = vpop.f32.mrf.mxu1 }
 0x2ee   :  { %v2548_v38 = vadd.f32 %v2547_v33, %v2402_v29 }
 0x2ef   :  { %v4973_v40 = vpop.f32.mrf.mxu0  ;;  %v4945_v34 = vpop.f32.mrf.mxu1 }
 0x2f0   :  { %v2559_v47 = vadd.f32 %v4973_v40, %v4941_v20 }
 0x2f1   :  { %v2550_v42 = vpop.f32.mrf.mxu0  ;;  %v2421_v24 = vpop.f32.mrf.mxu1 }
 0x2f2   :  { %v2551_v23 = vadd.f32 %v2550_v42, %v2405_v56 }
 0x2f3   :  { %v4976_v12 = vpop.f32.mrf.mxu0  ;;  %v4948_v62 = vpop.f32.mrf.mxu1 }
 0x2f4   :  { %v2572_v16 = vadd.f32 %v4976_v12, %v4944_v10 }
 0x2f5   :  { %v2563_v44 = vpop.f32.mrf.mxu0  ;;  %v2434_v46 = vpop.f32.mrf.mxu1 }
 0x2f6   :  { %v2564_v3 = vadd.f32 %v2563_v44, %v2418_v15 }
 0x2f7   :  { %v4977_v41 = vpop.f32.mrf.mxu0  ;;  %v4949_v43 = vpop.f32.mrf.mxu1 }
 0x2f8   :  { %v2575_v14 = vadd.f32 %v4977_v41, %v4945_v34 }
 0x2f9   :  { %v2566_v5 = vpop.f32.mrf.mxu0  ;;  %v2437_v55 = vpop.f32.mrf.mxu1 }
 0x2fa   :  { %v2567_v35 = vadd.f32 %v2566_v5, %v2421_v24 }
 0x2fb   :  { %v4980_v58 = vpop.f32.mrf.mxu0  ;;  %v4952_v45 = vpop.f32.mrf.mxu1 }
 0x2fc   :  { %v2588_v6 = vadd.f32 %v4980_v58, %v4948_v62 }
 0x2fd   :  { %v2579_v60 = vpop.f32.mrf.mxu0  ;;  %v2450_v30 = vpop.f32.mrf.mxu1 }
 0x2fe   :  { %v2580_v17 = vadd.f32 %v2579_v60, %v2434_v46 }
 0x2ff   :  { %v4981_v9 = vpop.f32.mrf.mxu0  ;;  %v4953_v36 = vpop.f32.mrf.mxu1 }
 0x300   :  { %v2591_v53 = vadd.f32 %v4981_v9, %v4949_v43 }
 0x301   :  { %v2582_v22 = vpop.f32.mrf.mxu0  ;;  %v2453_v63 = vpop.f32.mrf.mxu1 }
 0x302   :  { %v2583_v21 = vadd.f32 %v2582_v22, %v2437_v55 }
 0x303   :  { %v4984_v27 = vpop.f32.mrf.mxu0 }
 0x304   :  { %v2604_v1 = vadd.f32 %v4984_v27, %v4952_v45 }
 0x305   :  { %v2595_v28 = vpop.f32.mrf.mxu0  ;;  %v5004_v2 = vpop.f32.mrf.mxu1 }
 0x306   :  { %v2596_v26 = vadd.f32 %v2595_v28, %v2450_v30  ;;  %v2798_v4 = vadd.f32 %v5004_v2, %v2556_v59 }
 0x307   :  { %v4985_v37 = vpop.f32.mrf.mxu0  ;;  %v2733_v48 = vpop.f32.mrf.mxu1 }
 0x308   :  { %v2607_v49 = vadd.f32 %v4985_v37, %v4953_v36  ;;  %v6590_v54 = vadd.f32 %v2733_v48, %v2548_v38 }
 0x309   :  { %v2598_v25 = vpop.f32.mrf.mxu0  ;;  %v5005_v19 = vpop.f32.mrf.mxu1 }
 0x30a   :  { %v2599_v32 = vadd.f32 %v2598_v25, %v2453_v63  ;;  %v6592_v8 = vadd.f32 %v5005_v19, %v2559_v47 }
 0x30b   :  { %v5036_v50 = vpop.f32.mrf.mxu0  ;;  %v2736_v0 = vpop.f32.mrf.mxu1 }
 0x30c   :  { %v3000_v39 = vadd.f32 %v5036_v50, %v2798_v4  ;;  %v6594_v61 = vadd.f32 %v2736_v0, %v2551_v23 }
 0x30d   :  { %v6596_v51 = vpop.f32.mrf.mxu0  ;;  %v5008_v31 = vpop.f32.mrf.mxu1 }
 0x30e   :  { %v2802_v7 = vadd.f32 %v5008_v31, %v2572_v16 }
 0x30f   :  { %v6598_v13 = vpop.f32.mrf.mxu0  ;;  %v2749_v57 = vpop.f32.mrf.mxu1 }
 0x310   :  { %v6600_v18 = vadd.f32 %v2749_v57, %v2564_v3 }
 0x311   :  { %v6602_v29 = vpop.f32.mrf.mxu0  ;;  %v5009_v20 = vpop.f32.mrf.mxu1 }
 0x312   :  { %v6604_v56 = vadd.f32 %v5009_v20, %v2575_v14 }
 0x313   :  { %v5040_v52 = vpop.f32.mrf.mxu0  ;;  %v2752_v10 = vpop.f32.mrf.mxu1 }
 0x314   :  { %v3004_v59 = vadd.f32 %v5040_v52, %v2802_v7  ;;  %v6606_v33 = vadd.f32 %v2752_v10, %v2567_v35 }
 0x315   :  { %v6608_v15 = vpop.f32.mrf.mxu0  ;;  %v5012_v38 = vpop.f32.mrf.mxu1 }
 0x316   :  { %v2806_v40 = vadd.f32 %v5012_v38, %v2588_v6 }
 0x317   :  { %v6610_v34 = vpop.f32.mrf.mxu0  ;;  %v2765_v47 = vpop.f32.mrf.mxu1 }
 0x318   :  { %v6612_v42 = vadd.f32 %v2765_v47, %v2580_v17 }
 0x319   :  { %v6614_v24 = vpop.f32.mrf.mxu0  ;;  %v5013_v23 = vpop.f32.mrf.mxu1 }
 0x31a   :  { %v6616_v12 = vadd.f32 %v5013_v23, %v2591_v53 }
 0x31b   :  { %v5044_v62 = vpop.f32.mrf.mxu0  ;;  %v2768_v16 = vpop.f32.mrf.mxu1 }
 0x31c   :  { %v3008_v44 = vadd.f32 %v5044_v62, %v2806_v40  ;;  %v6618_v46 = vadd.f32 %v2768_v16, %v2583_v21 }
 0x31d   :  { %v6620_v3 = vpop.f32.mrf.mxu0  ;;  %v5016_v41 = vpop.f32.mrf.mxu1 }
 0x31e   :  { %v2810_v43 = vadd.f32 %v5016_v41, %v2604_v1 }
 0x31f   :  { %v6622_v14 = vpop.f32.mrf.mxu0  ;;  %v2781_v5 = vpop.f32.mrf.mxu1 }
 0x320   :  { %v6624_v55 = vadd.f32 %v2781_v5, %v2596_v26 }
 0x321   :  { %v6626_v35 = vpop.f32.mrf.mxu0  ;;  %v5017_v58 = vpop.f32.mrf.mxu1 }
 0x322   :  { %6957 = vst [vmem:[#allocation14_spill] sm:$0xff] %v6624_v55  ;;  %v6628_v45 = vadd.f32 %v5017_v58, %v2607_v49 }
 0x323   :  { %v5048_v6 = vpop.f32.mrf.mxu0  ;;  %v2784_v60 = vpop.f32.mrf.mxu1 }
 0x324   :  { %6958 = vst [vmem:[#allocation15_spill] sm:$0xff] %v6628_v45  ;;  %v3012_v30 = vadd.f32 %v5048_v6, %v2810_v43  ;;  %v6630_v17 = vadd.f32 %v2784_v60, %v2599_v32 }
 0x325   :  { %v6632_v9 = vpop.f32.mrf.mxu0  ;;  %v5068_v36 = vpop.f32.mrf.mxu1 }
 0x326   :  { %6959 = vst [vmem:[#allocation18_spill] sm:$0xff] %v6630_v17  ;;  %6960 = vst [vmem:[#allocation25_spill] sm:$0xff] %v6632_v9  ;;  %v6634_v53 = vadd.f32 %v5068_v36, %v3000_v39 }
 0x327   :  { %v6636_v22 = vpop.f32.mrf.mxu0  ;;  %v3137_v63 = vpop.f32.mrf.mxu1 }
 0x328   :  { %6961 = vst [vmem:[#allocation36_spill] sm:$0xff] %v6636_v22 }
 0x329   :  { %v6638_v21 = vpop.f32.mrf.mxu0  ;;  %v6640_v27 = vpop.f32.mrf.mxu1 }
 0x32a   :  { %6962 = vst [vmem:[#allocation16_spill] sm:$0xff] %v6638_v21 }
 0x32b   :  { %v6642_v1 = vpop.f32.mrf.mxu0  ;;  %v3140_v28 = vpop.f32.mrf.mxu1 }
 0x32d   :  { %v3339_v2 = vpop.f32.mrf.mxu0  ;;  %v5072_v26 = vpop.f32.mrf.mxu1 }
 0x32e   :  { %v6644_v4 = vadd.f32 %v5072_v26, %v3004_v59 }
 0x32f   :  { %v6646_v37 = vpop.f32.mrf.mxu0  ;;  %v6648_v48 = vpop.f32.mrf.mxu1 }
 0x331   :  { %v3342_v49 = vpop.f32.mrf.mxu0  ;;  %v6650_v25 = vpop.f32.mrf.mxu1 }
 0x333   :  { %v6652_v19 = vpop.f32.mrf.mxu0  ;;  %v6654_v32 = vpop.f32.mrf.mxu1 }
 0x335   :  { %v6656_v50 = vpop.f32.mrf.mxu0  ;;  %v5076_v0 = vpop.f32.mrf.mxu1 }
 0x336   :  { %v6658_v39 = vadd.f32 %v5076_v0, %v3008_v44 }
 0x337   :  { %v6660_v31 = vpop.f32.mrf.mxu0  ;;  %v6662_v7 = vpop.f32.mrf.mxu1 }
 0x338   :  { %6963 = vst [vmem:[#allocation19_spill] sm:$0xff] %v6658_v39  ;;  %v2998_v39 = vadd.f32 %v6596_v51, %v6590_v54 }
 0x339   :  { %v6664_v57 = vpop.f32.mrf.mxu0  ;;  %v6666_v20 = vpop.f32.mrf.mxu1 }
 0x33a   :  { %6964 = vst [vmem:[#allocation23_spill] sm:$0xff] %v6666_v20  ;;  %v3200_v55 = vadd.f32 %v3137_v63, %v2998_v39 }
 0x33b   :  { %v6668_v52 = vpop.f32.mrf.mxu0  ;;  %v6670_v10 = vpop.f32.mrf.mxu1 }
 0x33c   :  { %6965 = vst [vmem:[#allocation29_spill] sm:$0xff] %v6668_v52 }
 0x33d   :  { %v6672_v59 = vpop.f32.mrf.mxu0  ;;  %v5080_v38 = vpop.f32.mrf.mxu1 }
 0x33e   :  { %v6674_v40 = vadd.f32 %v5080_v38, %v3012_v30 }
 0x33f   :  { %v6676_v47 = vpop.f32.mrf.mxu0  ;;  %v6678_v23 = vpop.f32.mrf.mxu1 }
 0x340   :  { %6966 = vst [vmem:[#allocation37_spill] sm:$0xff] %v6674_v40  ;;  %6967 = vst [vmem:[#allocation40_spill] sm:$0xff] %v6676_v47 }
 0x341   :  { %6968 = vst [vmem:[#allocation21_spill] sm:$0xff] %v6678_v23  ;;  %v6680_v62 = vpop.f32.mrf.mxu0  ;;  %v6682_v16 = vpop.f32.mrf.mxu1 }
 0x342   :  { %6969 = vst [vmem:[#allocation22_spill] sm:$0xff] %v6680_v62  ;;  %6970 = vst [vmem:[#allocation24_spill] sm:$0xff] %v6682_v16 }
 0x343   :  { %v6684_v44 = vpop.f32.mrf.mxu0  ;;  %v6686_v41 = vpop.f32.mrf.mxu1 }
 0x344   :  { %6971 = vst [vmem:[#allocation28_spill] sm:$0xff] %v6684_v44  ;;  %6972 = vst [vmem:[#allocation27_spill] sm:$0xff] %v6686_v41 }
 0x345   :  { %v6688_v43 = vpop.f32.mrf.mxu0  ;;  %v5132_v5 = vpop.f32.mrf.mxu1 }
 0x346   :  { %6973 = vst [vmem:[#allocation32_spill] sm:$0xff] %v6688_v43 }
 0x347   :  { %v6690_v58 = vpop.f32.mrf.mxu0  ;;  %v3542_v6 = vpop.f32.mrf.mxu1 }
 0x348   :  { %6974 = vst [vmem:[#allocation38_spill] sm:$0xff] %v6690_v58 }
 0x349   :  { %v6692_v60 = vpop.f32.mrf.mxu0  ;;  %v5133_v30 = vpop.f32.mrf.mxu1 }
 0x34a   :  { %6975 = vst [vmem:[#allocation17_spill] sm:$0xff] %v6692_v60 }
 0x34b   :  { %v5164_v36 = vpop.f32.mrf.mxu0  ;;  %v3545_v26 = vpop.f32.mrf.mxu1 }
 0x34d   :  { %v3744_v0 = vpop.f32.mrf.mxu0  ;;  %v6694_v38 = vpop.f32.mrf.mxu1 }
 0x34f   :  { %v5165_v11 = vpop.f32.mrf.mxu0  ;;  %v3558_v16 = vpop.f32.mrf.mxu1 }
 0x351   :  { %v3747_v40 = vpop.f32.mrf.mxu0  ;;  %v6696_v44 = vpop.f32.mrf.mxu1 }
 0x353   :  { %v6698_v22 = vpop.f32.mrf.mxu0  ;;  %v3561_v45 = vpop.f32.mrf.mxu1 }
 0x355   :  { %v6700_v41 = vpop.f32.mrf.mxu1  ;;  %v3760_v58 = vpop.f32.mrf.mxu0 }
 0x356   :  { %6976 = vst [vmem:[#allocation20_spill] sm:$0xff] %v6700_v41  ;;  %v2999_v41 = vadd.f32 %v6602_v29, %v6594_v61  ;;  %v3404_v61 = vadd.f32 %v6642_v1, %v6634_v53 }
 0x357   :  { %v6702_v43 = vpop.f32.mrf.mxu1  ;;  %v6706_v23 = vpop.f32.mrf.mxu0 }
 0x358   :  { %6977 = vst [vmem:[#allocation33_spill] sm:$0xff] %v6702_v43  ;;  %6979 = vst [vmem:[#allocation35_spill] sm:$0xff] %v6706_v23  ;;  %v3201_v43 = vadd.f32 %v3140_v28, %v2999_v41  ;;  %v3402_v23 = vadd.f32 %v3339_v2, %v3200_v55  ;;  %v3003_v28 = vadd.f32 %v6614_v24, %v6606_v33 }
 0x359   :  { %v6704_v60 = vpop.f32.mrf.mxu1  ;;  %v3763_v17 = vpop.f32.mrf.mxu0  ;;  %v3607_v2 = vadd.f32 %v5132_v5, %v3404_v61  ;;  %v3005_v24 = vadd.f32 %v6610_v34, %v6604_v56  ;;  %v3408_v41 = vadd.f32 %v6652_v19, %v6644_v4 }
 0x35a   :  { %6978 = vst [vmem:[#allocation30_spill] sm:$0xff] %v6704_v60  ;;  %v3605_v29 = vadd.f32 %v3542_v6, %v3402_v23  ;;  %v3205_v39 = vadd.f32 %v6654_v32, %v3003_v28  ;;  %v3006_v23 = vadd.f32 %v6620_v3, %v6612_v42 }
 0x35b   :  { %v6708_v47 = vpop.f32.mrf.mxu1  ;;  %v6720_v9 = vpop.f32.mrf.mxu0  ;;  %v3611_v4 = vadd.f32 %v6694_v38, %v3408_v41 }
 0x35c   :  { %6980 = vst [vmem:[#allocation42_spill] sm:$0xff] %v6708_v47  ;;  %v3208_v42 = vadd.f32 %v6662_v7, %v3006_v23 }
 0x35d   :  { %v6710_v21 = vpop.f32.mrf.mxu1  ;;  %v6728_v62 = vpop.f32.mrf.mxu0  ;;  %v6997_v41 = vld [vmem:[#allocation20_spill] sm:$0xff] }
 0x35e   :  { %6981 = vst [vmem:[#allocation26_spill] sm:$0xff] %v6710_v21  ;;  %v3001_v21 = vadd.f32 %v6598_v13, %v6592_v8 }
 0x35f   :  { %v6712_v20 = vpop.f32.mrf.mxu1  ;;  %v6739_v53 = vpop.f32.mrf.mxu0  ;;  %v6985_v61 = vld [vmem:[#allocation35_spill] sm:$0xff] }
 0x360   :  { %6982 = vst [vmem:[#allocation31_spill] sm:$0xff] %v6712_v20  ;;  %v3403_v20 = vadd.f32 %v3342_v49, %v3201_v43  ;;  %v3203_v51 = vadd.f32 %v6640_v27, %v3001_v21  ;;  %v3809_v27 = vadd.f32 %v5164_v36, %v3607_v2  ;;  %v3207_v43 = vadd.f32 %v6650_v25, %v3005_v24  ;;  %v6991_v2 = vld [vmem:[#allocation23_spill] sm:$0xff]  ;;  %v6994_v24 = vld [vmem:[#allocation16_spill] sm:$0xff] }
 0x361   :  { %v6714_v52 = vpop.f32.mrf.mxu1  ;;  %v3779_v5 = vpop.f32.mrf.mxu0 }
 0x362   :  { %6983 = vst [vmem:[#allocation34_spill] sm:$0xff] %v6714_v52  ;;  %v3002_v52 = vadd.f32 %v6608_v15, %v6600_v18  ;;  %v3606_v63 = vadd.f32 %v3545_v26, %v3403_v20  ;;  %v3405_v55 = vadd.f32 %v6646_v37, %v3203_v51  ;;  %v3807_v18 = vadd.f32 %v3744_v0, %v3605_v29  ;;  %v6984_v0 = vld [vmem:[#allocation22_spill] sm:$0xff]  ;;  %v6986_v51 = vld [vmem:[#allocation33_spill] sm:$0xff] }
 0x363   :  { %v6722_v60 = vpop.f32.mrf.mxu1  ;;  %v3407_v37 = vadd.f32 %v6664_v57, %v3205_v39  ;;  %v5176_v36 = vpop.f32.mrf.mxu0 }
 0x364   :  { %v3204_v8 = vadd.f32 %v6648_v48, %v3002_v52  ;;  %v3808_v15 = vadd.f32 %v3747_v40, %v3606_v63  ;;  %v3608_v1 = vadd.f32 %v5133_v30, %v3405_v55  ;;  %v6987_v63 = vld [vmem:[#allocation14_spill] sm:$0xff] }
 0x365   :  { %v5196_v47 = vpop.f32.mrf.mxu1  ;;  %v3610_v57 = vadd.f32 %v3561_v45, %v3407_v37  ;;  %v3410_v45 = vadd.f32 %v6672_v59, %v3208_v42 }
 0x366   :  { %v3406_v49 = vadd.f32 %v6656_v50, %v3204_v8  ;;  %v3810_v52 = vadd.f32 %v5165_v11, %v3608_v1  ;;  %v6748_v50 = vadd.f32 %v5196_v47, %v3809_v27  ;;  %v3007_v47 = vadd.f32 %v6626_v35, %v6618_v46  ;;  %v6989_v8 = vld [vmem:[#allocation19_spill] sm:$0xff]  ;;  %v6993_v1 = vld [vmem:[#allocation18_spill] sm:$0xff] }
 0x367   :  { %v3946_v54 = vpop.f32.mrf.mxu1  ;;  %v3812_v19 = vadd.f32 %v3763_v17, %v3610_v57  ;;  %v3813_v46 = vadd.f32 %v6698_v22, %v3611_v4  ;;  %v3009_v17 = vadd.f32 %v6622_v14, %v6616_v12  ;;  %v3792_v12 = vpop.f32.mrf.mxu0  ;;  %v3011_v37 = vadd.f32 %v6994_v24, %v6993_v1  ;;  %v6998_v57 = vld [vmem:[#allocation32_spill] sm:$0xff] }
 0x368   :  { %v6741_v20 = vadd.f32 %v3946_v54, %v3807_v18  ;;  %v3609_v40 = vadd.f32 %v3558_v16, %v3406_v49  ;;  %v3409_v16 = vadd.f32 %v6660_v31, %v3207_v43  ;;  %v3209_v30 = vadd.f32 %v6670_v10, %v3007_v47  ;;  %v6992_v49 = vld [vmem:[#allocation42_spill] sm:$0xff]  ;;  %v6999_v47 = vld [vmem:[#allocation27_spill] sm:$0xff] }
 0x369   :  { %v5197_v13 = vpop.f32.mrf.mxu1  ;;  %v3613_v10 = vadd.f32 %v6986_v51, %v3410_v45  ;;  %v3211_v18 = vadd.f32 %v6991_v2, %v3009_v17  ;;  %v5177_v42 = vpop.f32.mrf.mxu0  ;;  %v7005_v51 = vld [vmem:[#allocation37_spill] sm:$0xff] }
 0x36a   :  { %v3811_v34 = vadd.f32 %v3760_v58, %v3609_v40  ;;  %v6757_v6 = vadd.f32 %v5197_v13, %v3810_v52  ;;  %v3612_v35 = vadd.f32 %v6696_v44, %v3409_v16  ;;  %v3411_v38 = vadd.f32 %v6984_v0, %v3209_v30  ;;  %v6988_v44 = vld [vmem:[#allocation25_spill] sm:$0xff] }
 0x36b   :  { %v3949_v21 = vpop.f32.mrf.mxu1  ;;  %v3010_v28 = vadd.f32 %v6988_v44, %v6987_v63  ;;  %v6990_v13 = vld [vmem:[#allocation29_spill] sm:$0xff]  ;;  %v3213_v16 = vadd.f32 %v6999_v47, %v3011_v37  ;;  %v7007_v63 = vld [vmem:[#allocation24_spill] sm:$0xff] }
 0x36c   :  { %v6743_v33 = vadd.f32 %v3949_v21, %v3808_v15  ;;  %v3814_v59 = vadd.f32 %v6985_v61, %v3612_v35  ;;  %v3412_v55 = vadd.f32 %v6990_v13, %v6989_v8  ;;  %v3815_v15 = vadd.f32 %v6728_v62, %v3613_v10  ;;  %v6996_v40 = vld [vmem:[#allocation21_spill] sm:$0xff]  ;;  %v7006_v10 = vld [vmem:[#allocation28_spill] sm:$0xff] }
 0x36d   :  { %v5200_v48 = vpop.f32.mrf.mxu1  ;;  %v3614_v39 = vadd.f32 %v6992_v49, %v3411_v38  ;;  %v7003_v35 = vld [vmem:[#allocation17_spill] sm:$0xff]  ;;  %v7004_v38 = vld [vmem:[#allocation31_spill] sm:$0xff] }
 0x36e   :  { %v4027_v32 = vadd.f32 %v6743_v33, %v6741_v20  ;;  %v6780_v29 = vadd.f32 %v5200_v48, %v3813_v46  ;;  %v6995_v48 = vld [vmem:[#allocation40_spill] sm:$0xff]  ;;  %v3615_v43 = vadd.f32 %v6997_v41, %v3412_v55 }
 0x36f   :  { %v3962_v56 = vpop.f32.mrf.mxu1  ;;  %v3413_v52 = vadd.f32 %v6995_v48, %v3211_v18  ;;  %v7008_v18 = vld [vmem:[#allocation38_spill] sm:$0xff] }
 0x370   :  { %v4028_v11 = vadd.f32 %v4027_v32, %v6748_v50  ;;  %v6765_v25 = vadd.f32 %v3962_v56, %v3811_v34  ;;  %v3212_v32 = vadd.f32 %v6996_v40, %v3010_v28  ;;  %v3816_v56 = vadd.f32 %v3779_v5, %v3614_v39  ;;  %v7002_v5 = vld [vmem:[#allocation36_spill] sm:$0xff]  ;;  %v3795_v28 = vpop.f32.mrf.mxu0  ;;  %v7010_v48 = vld [vmem:[#allocation34_spill] sm:$0xff] }
 0x371   :  { %v5201_v3 = vpop.f32.mrf.mxu1  ;;  %v3817_v4 = vadd.f32 %v6720_v9, %v3615_v43 }
 0x372   :  { %v4029_v58 = vadd.f32 %v4028_v11, %v6757_v6  ;;  %v6790_v21 = vadd.f32 %v5201_v3, %v3814_v59  ;;  %v3414_v11 = vadd.f32 %v6998_v57, %v3212_v32 }
 0x373   :  { %v3965_v26 = vpop.f32.mrf.mxu1 }
 0x374   :  { %v4030_v31 = vadd.f32 %v4029_v58, %v6765_v25  ;;  %v6773_v7 = vadd.f32 %v3965_v26, %v3812_v19  ;;  %v7000_v19 = vld [vmem:[#allocation30_spill] sm:$0xff]  ;;  %v7001_v26 = vld [vmem:[#allocation15_spill] sm:$0xff]  ;;  %v3617_v61 = vadd.f32 %v7004_v38, %v3414_v11 }
 0x375   :  { %v5204_v54 = vpop.f32.mrf.mxu1  ;;  %v3616_v58 = vadd.f32 %v7000_v19, %v3413_v52  ;;  %v3013_v46 = vadd.f32 %v7002_v5, %v7001_v26 }
 0x376   :  { %v4031_v22 = vadd.f32 %v4030_v31, %v6773_v7  ;;  %v3415_v31 = vadd.f32 %v7003_v35, %v3213_v16  ;;  %v6813_v59 = vadd.f32 %v5204_v54, %v3817_v4  ;;  %v3819_v13 = vadd.f32 %v3792_v12, %v3617_v61 }
 0x377   :  { %v3978_v14 = vpop.f32.mrf.mxu1  ;;  %v3818_v0 = vadd.f32 %v6739_v53, %v3616_v58  ;;  %v3215_v44 = vadd.f32 %v7007_v63, %v3013_v46 }
 0x378   :  { %v4032_v27 = vadd.f32 %v4031_v22, %v6780_v29  ;;  %v6798_v34 = vadd.f32 %v3978_v14, %v3815_v15  ;;  %v3416_v22 = vadd.f32 %v7006_v10, %v7005_v51  ;;  %v3618_v55 = vadd.f32 %v6722_v60, %v3415_v31  ;;  %v7009_v15 = vld [vmem:[#allocation26_spill] sm:$0xff] }
 0x379   :  { %v5205_v23 = vpop.f32.mrf.mxu1  ;;  %v3417_v14 = vadd.f32 %v7008_v18, %v3215_v44 }
 0x37a   :  { %v4033_v62 = vadd.f32 %v4032_v27, %v6790_v21  ;;  %v6820_v2 = vadd.f32 %v5205_v23, %v3818_v0  ;;  %v3619_v49 = vadd.f32 %v7009_v15, %v3416_v22  ;;  %v3820_v39 = vadd.f32 %v3795_v28, %v3618_v55 }
 0x37b   :  { %v3981_v3 = vpop.f32.mrf.mxu1  ;;  %v3620_v12 = vadd.f32 %v7010_v48, %v3417_v14 }
 0x37c   :  { %v4034_v45 = vadd.f32 %v4033_v62, %v6798_v34  ;;  %v6806_v30 = vadd.f32 %v3981_v3, %v3816_v56  ;;  %v3821_v37 = vadd.f32 %v5176_v36, %v3619_v49 }
 0x37d   :  { %v5208_v17 = vpop.f32.mrf.mxu1  ;;  %v3822_v40 = vadd.f32 %v5177_v42, %v3620_v12 }
 0x37e   :  { %v4035_v9 = vadd.f32 %v4034_v45, %v6806_v30  ;;  %v6832_v32 = vadd.f32 %v5208_v17, %v3821_v37 }
 0x37f   :  { %v3994_v8 = vpop.f32.mrf.mxu1 }
 0x380   :  { %v4036_v53 = vadd.f32 %v4035_v9, %v6813_v59  ;;  %v6825_v27 = vadd.f32 %v3994_v8, %v3819_v13 }
 0x381   :  { %v5209_v54 = vpop.f32.mrf.mxu1 }
 0x382   :  { %v4037_v1 = vadd.f32 %v4036_v53, %v6820_v2  ;;  %v6835_v41 = vadd.f32 %v5209_v54, %v3822_v40 }
 0x383   :  { %v3997_v24 = vpop.f32.mrf.mxu1 }
 0x384   :  { %v4038_v60 = vadd.f32 %v4037_v1, %v6825_v27  ;;  %v6830_v52 = vadd.f32 %v3997_v24, %v3820_v39 }
 0x386   :  { %v4039_v23 = vadd.f32 %v4038_v60, %v6830_v52 }
 0x388   :  { %v4040_v43 = vadd.f32 %v4039_v23, %v6832_v32 }
 0x38a   :  { %v4041_v56 = vadd.f32 %v4040_v43, %v6835_v41 }
 0x38c   :  { %v4042_v62 = vrot.slane %v4041_v56, 4 }
 0x38e   :  { %v4043_v57 = vadd.f32 %v4042_v62, %v4041_v56 }
 0x390   :  { %v4044_v36 = vrot.slane %v4043_v57, 2 }
 0x392   :  { %v4045_v11 = vadd.f32 %v4044_v36, %v4043_v57 }
 0x394   :  { %v4046_v47 = vrot.slane %v4045_v11, 1 }
 0x396   :  { %v4047_v16 = vadd.f32 %v4046_v47, %v4045_v11 }
 0x398   :  { %v4048_v3 = vmul.f32 0.0078125, %v4047_v16 }
 0x39a   :  { %v4049_v4 = vsub.f32 %v6741_v20, %v4048_v3  ;;  %v4050_v42 = vsub.f32 %v6743_v33, %v4048_v3  ;;  %v4051_v19 = vsub.f32 %v6748_v50, %v4048_v3  ;;  %v4052_v26 = vsub.f32 %v6757_v6, %v4048_v3 }
 0x39b   :  { %v4053_v5 = vsub.f32 %v6765_v25, %v4048_v3  ;;  %v4054_v31 = vsub.f32 %v6773_v7, %v4048_v3  ;;  %v4055_v38 = vsub.f32 %v6780_v29, %v4048_v3  ;;  %v4056_v51 = vsub.f32 %v6790_v21, %v4048_v3 }
 0x39c   :  { %v4065_v58 = vmul.f32 %v4049_v4, %v4049_v4  ;;  %v4066_v45 = vmul.f32 %v4050_v42, %v4050_v42  ;;  %v4067_v46 = vmul.f32 %v4051_v19, %v4051_v19  ;;  %v4068_v17 = vmul.f32 %v4052_v26, %v4052_v26 }
 0x39d   :  { %v4069_v61 = vmul.f32 %v4053_v5, %v4053_v5  ;;  %v4070_v10 = vmul.f32 %v4054_v31, %v4054_v31  ;;  %v4057_v63 = vsub.f32 %v6798_v34, %v4048_v3  ;;  %v4071_v44 = vmul.f32 %v4055_v38, %v4055_v38 }
 0x39e   :  { %v4081_v35 = vadd.f32 %v4066_v45, %v4065_v58  ;;  %v4058_v8 = vsub.f32 %v6806_v30, %v4048_v3  ;;  %v4072_v13 = vmul.f32 %v4056_v51, %v4056_v51  ;;  %v4059_v53 = vsub.f32 %v6813_v59, %v4048_v3 }
 0x39f   :  { %v4073_v18 = vmul.f32 %v4057_v63, %v4057_v63  ;;  %v4060_v54 = vsub.f32 %v6820_v2, %v4048_v3  ;;  %v4061_v39 = vsub.f32 %v6825_v27, %v4048_v3  ;;  %v4062_v37 = vsub.f32 %v6830_v52, %v4048_v3 }
 0x3a0   :  { %v4082_v0 = vadd.f32 %v4081_v35, %v4067_v46  ;;  %v4074_v15 = vmul.f32 %v4058_v8, %v4058_v8  ;;  %v4075_v1 = vmul.f32 %v4059_v53, %v4059_v53  ;;  %v4063_v60 = vsub.f32 %v6832_v32, %v4048_v3  ;;  %v4025_v35 = vld [vmem:[%s6888_s3] sm:$0x1]  ;;  %s5461_s3 = smov [#allocation10]  }
 0x3a1   :  { %v4076_v48 = vmul.f32 %v4060_v54, %v4060_v54  ;;  %v4077_v40 = vmul.f32 %v4061_v39, %v4061_v39  ;;  %v4064_v43 = vsub.f32 %v6835_v41, %v4048_v3  ;;  %v4078_v56 = vmul.f32 %v4062_v37, %v4062_v37 }
 0x3a2   :  { %v4083_v9 = vadd.f32 %v4082_v0, %v4068_v17  ;;  %v4079_v57 = vmul.f32 %v4063_v60, %v4063_v60  ;;  %v4026_v0 = vld [vmem:[%s6889_s4] sm:$0x1]  ;;  %s4189_s4 = sshll.u32 %s5461_s3, 4  ;;  %s4190_s4 = int_to_ptr.vmem [resolvable:$true] %s4189_s4 }
 0x3a3   :  { %v4080_v11 = vmul.f32 %v4064_v43, %v4064_v43  ;;  %s5427_s17 = scalar_lea.vmem %s4190_s4, 2048  ;;  %p5432_p2 = scmp.lt.s32.totalorder %s4190_s4, %s4190_s4 }
 0x3a4   :  { %v4084_v22 = vadd.f32 %v4083_v9, %v4069_v61  ;;  %v7011_v61 = vld [vmem:[#allocation39_spill] sm:$0xff]  ;;  %p5428_p1 = scmp.ne.s32.totalorder %s4190_s4, %s5427_s17  ;;  %p5433_p3 = scmp.lt.s32.totalorder %s5427_s17, %s5427_s17 }
 0x3a6   :  { %v4085_v28 = vadd.f32 %v4084_v22, %v4070_v10  ;;  %p5434_p4 = por %p5433_p3, %p5432_p2 }
 0x3a8   :  { %v4086_v55 = vadd.f32 %v4085_v28, %v4071_v44  ;;  %p5435_p5 = pnand %p5434_p4, %p5428_p1 }
 0x3aa   :  { %v4087_v14 = vadd.f32 %v4086_v55, %v4072_v13 }
 0x3ac   :  { %v4088_v49 = vadd.f32 %v4087_v14, %v4073_v18 }
 0x3ae   :  { %v4089_v24 = vadd.f32 %v4088_v49, %v4074_v15 }
 0x3b0   :  { %v4090_v12 = vadd.f32 %v4089_v24, %v4075_v1 }
 0x3b2   :  { %v4091_v23 = vadd.f32 %v4090_v12, %v4076_v48 }
 0x3b4   :  { %v4092_v62 = vadd.f32 %v4091_v23, %v4077_v40 }
 0x3b6   :  { %v4093_v36 = vadd.f32 %v4092_v62, %v4078_v56 }
 0x3b8   :  { %v4094_v47 = vadd.f32 %v4093_v36, %v4079_v57 }
 0x3ba   :  { %v4095_v16 = vadd.f32 %v4094_v47, %v4080_v11 }
 0x3bc   :  { %v4096_v4 = vrot.slane %v4095_v16, 4 }
 0x3be   :  { %v4097_v42 = vadd.f32 %v4096_v4, %v4095_v16 }
 0x3c0   :  { %v4098_v19 = vrot.slane %v4097_v42, 2 }
 0x3c2   :  { %v4099_v58 = vadd.f32 %v4098_v19, %v4097_v42 }
 0x3c4   :  { %v4100_v45 = vrot.slane %v4099_v58, 1 }
 0x3c6   :  { %v4101_v26 = vadd.f32 %v4100_v45, %v4099_v58 }
 0x3c8   :  { %v4102_v5 = vmul.f32 0.0078125, %v4101_v26 }
 0x3ca   :  { %v4103_v46 = vadd.f32 1e-05, %v4102_v5 }
 0x3cc   :  { %5365 = vrsqrt.f32 %v4103_v46 }
 0x3d9   :  { %v5366_v31 = vpop.eup %5365 }
 0x3da   :  { %v4105_v17 = vmul.f32 %v5366_v31, %v4025_v35 }
 0x3dc   :  { %v4106_v38 = vmul.f32 %v4105_v17, %v4048_v3  ;;  %v4112_v9 = vrot.slane %v4105_v17, %v7011_v61 }
 0x3de   :  { %v4107_v51 = vsub.f32 %v4026_v0, %v4106_v38  ;;  %v4127_v10 = vmul.f32 %v4112_v9, %v6830_v52  ;;  %v4114_v22 = vmul.f32 %v4112_v9, %v6741_v20  ;;  %v4115_v63 = vmul.f32 %v4112_v9, %v6743_v33 }
 0x3df   :  { %v4116_v44 = vmul.f32 %v4112_v9, %v6748_v50  ;;  %v4117_v28 = vmul.f32 %v4112_v9, %v6757_v6  ;;  %v4118_v8 = vmul.f32 %v4112_v9, %v6765_v25  ;;  %v4119_v13 = vmul.f32 %v4112_v9, %v6773_v7 }
 0x3e0   :  { %v4134_v55 = vrot.slane %v4107_v51, %v7011_v61  ;;  %v4120_v3 = vmul.f32 %v4112_v9, %v6780_v29  ;;  %v4121_v53 = vmul.f32 %v4112_v9, %v6790_v21  ;;  %v4122_v52 = vmul.f32 %v4112_v9, %v6798_v34 }
 0x3e1   :  { %v4123_v20 = vmul.f32 %v4112_v9, %v6806_v30  ;;  %v4124_v33 = vmul.f32 %v4112_v9, %v6813_v59  ;;  %v4125_v50 = vmul.f32 %v4112_v9, %v6820_v2  ;;  %v4126_v6 = vmul.f32 %v4112_v9, %v6825_v27 }
 0x3e2   :  { %v4149_v18 = vadd.f32 %v4134_v55, %v4127_v10  ;;  %v4128_v25 = vmul.f32 %v4112_v9, %v6832_v32  ;;  %v4129_v7 = vmul.f32 %v4112_v9, %v6835_v41  ;;  %v4136_v14 = vadd.f32 %v4134_v55, %v4114_v22 }
 0x3e3   :  { %v4137_v54 = vadd.f32 %v4134_v55, %v4115_v63  ;;  %v4138_v29 = vadd.f32 %v4134_v55, %v4116_v44  ;;  %v4139_v15 = vadd.f32 %v4134_v55, %v4117_v28  ;;  %v4140_v21 = vadd.f32 %v4134_v55, %v4118_v8 }
 0x3e4   :  { %v4165_v49 = vmax.f32 %v4149_v18, 0.0  ;;  %v4141_v34 = vadd.f32 %v4134_v55, %v4119_v13  ;;  %v4142_v39 = vadd.f32 %v4134_v55, %v4120_v3  ;;  %v4143_v30 = vadd.f32 %v4134_v55, %v4121_v53 }
 0x3e5   :  { %v4144_v1 = vadd.f32 %v4134_v55, %v4122_v52  ;;  %v4145_v59 = vadd.f32 %v4134_v55, %v4123_v20  ;;  %v4146_v24 = vadd.f32 %v4134_v55, %v4124_v33  ;;  %v4147_v2 = vadd.f32 %v4134_v55, %v4125_v50 }
 0x3e6   :  { %4181 = vst [vmem:[#allocation10 + $0x68] sm:$0xff] %v4165_v49  ;;  %v4148_v27 = vadd.f32 %v4134_v55, %v4126_v6  ;;  %v4150_v37 = vadd.f32 %v4134_v55, %v4128_v25  ;;  %v4151_v48 = vadd.f32 %v4134_v55, %v4129_v7  ;;  %v4152_v32 = vmax.f32 %v4136_v14, 0.0 }
 0x3e7   :  { %v4153_v12 = vmax.f32 %v4137_v54, 0.0  ;;  %v4154_v41 = vmax.f32 %v4138_v29, 0.0  ;;  %v4155_v60 = vmax.f32 %v4139_v15, 0.0  ;;  %v4156_v40 = vmax.f32 %v4140_v21, 0.0 }
 0x3e8   :  { %v4157_v23 = vmax.f32 %v4141_v34, 0.0  ;;  %v4158_v43 = vmax.f32 %v4142_v39, 0.0  ;;  %v4159_v56 = vmax.f32 %v4143_v30, 0.0  ;;  %v4160_v62 = vmax.f32 %v4144_v1, 0.0  ;;  %4168 = vst [vmem:[#allocation10] sm:$0xff] %v4152_v32 }
 0x3e9   :  { %v4161_v57 = vmax.f32 %v4145_v59, 0.0  ;;  %v4162_v36 = vmax.f32 %v4146_v24, 0.0  ;;  %v4163_v11 = vmax.f32 %v4147_v2, 0.0  ;;  %v4164_v47 = vmax.f32 %v4148_v27, 0.0  ;;  %4169 = vst [vmem:[#allocation10 + $0x8] sm:$0xff] %v4153_v12  ;;  %4170 = vst [vmem:[#allocation10 + $0x10] sm:$0xff] %v4154_v41 }
 0x3ea   :  { %4171 = vst [vmem:[#allocation10 + $0x18] sm:$0xff] %v4155_v60  ;;  %4172 = vst [vmem:[#allocation10 + $0x20] sm:$0xff] %v4156_v40  ;;  %v4166_v16 = vmax.f32 %v4150_v37, 0.0  ;;  %v4167_v4 = vmax.f32 %v4151_v48, 0.0 }
 0x3eb   :  { %4173 = vst [vmem:[#allocation10 + $0x28] sm:$0xff] %v4157_v23  ;;  %4174 = vst [vmem:[#allocation10 + $0x30] sm:$0xff] %v4158_v43 }
 0x3ec   :  { %4175 = vst [vmem:[#allocation10 + $0x38] sm:$0xff] %v4159_v56  ;;  %4176 = vst [vmem:[#allocation10 + $0x40] sm:$0xff] %v4160_v62 }
 0x3ed   :  { %4177 = vst [vmem:[#allocation10 + $0x48] sm:$0xff] %v4161_v57  ;;  %4178 = vst [vmem:[#allocation10 + $0x50] sm:$0xff] %v4162_v36 }
 0x3ee   :  { %4179 = vst [vmem:[#allocation10 + $0x58] sm:$0xff] %v4163_v11  ;;  %4180 = vst [vmem:[#allocation10 + $0x60] sm:$0xff] %v4164_v47 }
 0x3ef   :  { %4182 = vst [vmem:[#allocation10 + $0x70] sm:$0xff] %v4166_v16  ;;  %4183 = vst [vmem:[#allocation10 + $0x78] sm:$0xff] %v4167_v4 }
 0x3f0   :  { %5438 = shalt.err (!%p5435_p5)
}
 0x3f1   :  { %4195 = dma.vmem_to_hbm [thread:$0]  %s4190_s4, 2048, %s6890_s5, [#allocation6], %s5457_s28, %s5457_s28, %s5458_s29  }
 0x3f2   :  { %5451 = dma.done.wait [#allocation6], 2048  }
 0x3f3   :  { %5452 = vsyncadd [#allocation6], 4294965248 }
 0x3f4   :  { %4199 = vsyncpa [#allocation5], 1 }
 0x3f5   :  { %4200 = vsyncpa [#allocation8], 1 }
 0x3f6   :  { %4201 = vsyncpa [#allocation6], 1 }

</bundles_post_ra>
